<compile_context>
chip_gen: v7x
topology: tpu7x:2x2x1
jax: 0.10.0
libtpu: 0.0.40
codegen_flags: <defaults>
</compile_context>

<pallas_src>
import functools

import numpy as np
import jax
import jax.numpy as jnp
from jax.experimental import pallas as pl
from jax.experimental.pallas import tpu as pltpu


# ----------------------------- fused Pallas kernel -----------------------------

def _modmem_fused_kernel(T, B,
                         x_ref, task_ref, act_ref, rew_ref,
                         wc1_ref, bc1_ref, wc2_ref, bc2_ref,
                         gw_ref, gb_ref, bw_ref, bb_ref,
                         fcb_ref,
                         wact_ref, wrew_ref, bih_ref, wt_ref, bt_ref,
                         fcw_hbm, wm_hbm, whh_hbm,
                         out_ref, hn_ref, cn_ref,
                         fcw_v, wm_v, whh_v, dma_sems):
    # x_ref:   (H, N, L) f32, L = W*C (lane-dense), value = obs[n, c, h, w] at lane w*C+c
    # task_ref:(N, Dtask) f32   act_ref:(N, A) f32   rew_ref:(N, 1) f32
    # wc*_ref: (2, 3L, L) bf16 K-stacked block-banded conv weights, bc*_ref: (2, 1, L) f32
    # gw/bw:   (2, Dtask, L) f32 lane-tiled FiLM weights, gb/bb: (2, 1, L) f32
    # fcw_hbm: (H, L, Fc) bf16 (HBM, prefetched), fcb_ref: (1, Fc) f32
    # wact:(A,4Hh) f32  wrew:(1,4Hh) f32  wm:(Fc,4Hh) bf16  wt:(Dtask,4Hh) bf16
    # whh:(Hh,4Hh) bf16 (HBM, prefetched), bih/bt:(1,4Hh) f32
    H, N, L = x_ref.shape
    Hh = hn_ref.shape[-1]
    Fc = fcw_v.shape[-1]

    # Prefetch the late-stage weights; their HBM fetch overlaps the FiLM compute.
    cp_fcw = pltpu.make_async_copy(fcw_hbm, fcw_v, dma_sems.at[0])
    cp_wm = pltpu.make_async_copy(wm_hbm, wm_v, dma_sems.at[1])
    cp_whh = pltpu.make_async_copy(whh_hbm, whh_v, dma_sems.at[2])
    cp_fcw.start()
    cp_wm.start()
    cp_whh.start()

    task = task_ref[...]                                      # (N, Dtask) f32
    zrow = jnp.zeros((1, N, L), jnp.float32)                  # H-halo row (reused 4x)

    def conv3(x, wband_ref, blk, bias_ref):
        # One K=384 contraction: lane-concat the three H-shifted views of x against the
        # K-stacked band.  Halo handled by value concats (no scratch, no full zeroing).
        xp = jnp.concatenate([zrow, x, zrow], axis=0)         # (H+2, N, L)
        xin = jnp.concatenate([xp[0:H], xp[1:H + 1], xp[2:H + 2]], axis=-1)  # (H,N,3L)
        xin = xin.reshape(H * N, 3 * L).astype(jnp.bfloat16)
        return (jnp.dot(xin, wband_ref[blk], preferred_element_type=jnp.float32)
                + bias_ref[blk])                              # (H*N, L) f32

    def film_block(x, blk):
        h1 = jnp.maximum(conv3(x, wc1_ref, blk, bc1_ref), 0.0).reshape(H, N, L)
        h2 = conv3(h1, wc2_ref, blk, bc2_ref).reshape(H, N, L)
        gamma = jnp.dot(task, gw_ref[blk],
                        preferred_element_type=jnp.float32) + gb_ref[blk]   # (N, L) f32
        beta = jnp.dot(task, bw_ref[blk],
                       preferred_element_type=jnp.float32) + bb_ref[blk]    # (N, L) f32
        y = jnp.maximum(h2 * gamma[None] + beta[None], 0.0)
        return y + x                                          # residual

    x = x_ref[...]
    x = film_block(x, 0)
    x = film_block(x, 1)
    x = jnp.maximum(x, 0.0)                                   # relu(pool(x)), pool=identity
    xb = x.astype(jnp.bfloat16)

    # FC + ReLU (PyTorch (C,H,W) flatten order folded into fcw at prep time).
    cp_fcw.wait()
    mod = jnp.zeros((N, Fc), jnp.float32)
    for hrow in range(H):
        mod = mod + jnp.dot(xb[hrow], fcw_v[hrow],
                            preferred_element_type=jnp.float32)
    mod = jnp.maximum(mod + fcb_ref[...], 0.0)                # (N, Fc) f32

    # LSTM input-side matmuls, hoisted out of the recurrence (all T*B rows at once).
    cp_wm.wait()
    cp_whh.wait()
    gates_in = (jnp.dot(act_ref[...], wact_ref[...],
                        preferred_element_type=jnp.float32)
                + rew_ref[...] * wrew_ref[...]
                + jnp.dot(mod.astype(jnp.bfloat16), wm_v[...],
                          preferred_element_type=jnp.float32)
                + bih_ref[...])                               # (N, 4Hh) f32
    tg = jax.nn.sigmoid(
        jnp.dot(task.astype(jnp.bfloat16), wt_ref[...],
                preferred_element_type=jnp.float32) + bt_ref[...])          # (N, 4Hh)

    whh = whh_v[...]                                          # (Hh, 4Hh) bf16
    h = jnp.zeros((B, Hh), jnp.float32)                       # init_rnn_state=None -> zeros
    c = jnp.zeros((B, Hh), jnp.float32)
    hs = []
    for t in range(T):                                        # T static -> fully unrolled
        g = gates_in[t * B:(t + 1) * B] + jnp.dot(
            h.astype(jnp.bfloat16), whh, preferred_element_type=jnp.float32)
        tg_t = tg[t * B:(t + 1) * B]
        i = jax.nn.sigmoid(g[:, 0 * Hh:1 * Hh]) * tg_t[:, 0 * Hh:1 * Hh]
        f = jax.nn.sigmoid(g[:, 1 * Hh:2 * Hh]) * tg_t[:, 1 * Hh:2 * Hh]
        gg = jnp.tanh(g[:, 2 * Hh:3 * Hh])
        o = jax.nn.sigmoid(g[:, 3 * Hh:4 * Hh]) * tg_t[:, 3 * Hh:4 * Hh]
        c = f * c + i * gg
        h = o * jnp.tanh(c)
        hs.append(h)
    out_ref[...] = jnp.concatenate(hs, axis=0)                # single dense (N, Hh) store
    hn_ref[...] = h
    cn_ref[...] = c


# ----------------------------- param initialization -----------------------------

def init_params(key, C, Dtask, Hi, Wi, action_dim, fc_size, lstm_size):
    ks = list(jax.random.split(key, 24))

    def take(shape, scale):
        return (scale * jax.random.normal(ks.pop(0), shape)).astype(jnp.float32)

    params = {}
    for i in range(2):
        params[f'film{i}'] = dict(
            w1=take((3, 3, C, C), 0.1), b1=take((1, C), 0.01),
            w2=take((3, 3, C, C), 0.1), b2=take((1, C), 0.01),
            gw=take((Dtask, C), 0.1), gb=take((1, C), 0.01) + 1.0,
            bw=take((Dtask, C), 0.1), bb=take((1, C), 0.01),
        )
    params['fc_w'] = take((C * Hi * Wi, fc_size), 0.05)
    params['fc_b'] = take((1, fc_size), 0.01)
    Din = fc_size + action_dim + 1
    params['lstm'] = dict(
        wih=take((Din, 4 * lstm_size), 0.05),
        whh=take((lstm_size, 4 * lstm_size), 0.05),
        b=take((1, 4 * lstm_size), 0.01),
        wt=take((Dtask, 4 * lstm_size), 0.05),
        bt=take((1, 4 * lstm_size), 0.01),
    )
    return params


def prepare_kernel_params(params, C, Hi, Wi, action_dim):
    """One-time conversion of standard params into the kernel's lane-dense layout."""
    W_ = Wi
    L = W_ * C
    assert L == 128, "lane-dense layout assumes W*C == 128"
    bf16 = jnp.bfloat16

    def band_k384(w):  # (3,3,C,C) -> (3L, L): K-stacked block-banded-over-W weight
        w = np.asarray(w, np.float32)
        M = np.zeros((3, L, L), np.float32)
        for kh in range(3):
            for w_out in range(W_):
                for kw in range(3):
                    w_in = w_out + kw - 1
                    if 0 <= w_in < W_:
                        M[kh, w_in * C:(w_in + 1) * C,
                          w_out * C:(w_out + 1) * C] = w[kh, kw]
        return M.reshape(3 * L, L)      # rows ordered [x[h-1] | x[h] | x[h+1]]

    def lane_tile(v):  # (.., C) -> (.., W*C), lane index = w*C + c
        return np.tile(np.asarray(v, np.float32), (1, W_))

    wc1 = jnp.asarray(np.stack([band_k384(params[f'film{i}']['w1']) for i in range(2)]),
                      dtype=bf16)
    wc2 = jnp.asarray(np.stack([band_k384(params[f'film{i}']['w2']) for i in range(2)]),
                      dtype=bf16)
    bc1 = jnp.asarray(np.stack([lane_tile(params[f'film{i}']['b1']) for i in range(2)]))
    bc2 = jnp.asarray(np.stack([lane_tile(params[f'film{i}']['b2']) for i in range(2)]))
    gw = jnp.asarray(np.stack([lane_tile(params[f'film{i}']['gw']) for i in range(2)]))
    gb = jnp.asarray(np.stack([lane_tile(params[f'film{i}']['gb']) for i in range(2)]))
    bw = jnp.asarray(np.stack([lane_tile(params[f'film{i}']['bw']) for i in range(2)]))
    bb = jnp.asarray(np.stack([lane_tile(params[f'film{i}']['bb']) for i in range(2)]))

    # Permute FC weight rows to the kernel's (h, w*C + c) flatten order
    # (keeps PyTorch (C,H,W) flatten semantics without transposing activations).
    fc_w = np.asarray(params['fc_w'], np.float32)             # (C*H*W, Fc)
    Fc = fc_w.shape[-1]
    fcw = fc_w.reshape(C, Hi, W_, Fc).transpose(1, 2, 0, 3).reshape(Hi, L, Fc)
    fcw = jnp.asarray(fcw, dtype=bf16)
    fcb = jnp.asarray(params['fc_b'], np.float32)

    lstm = params['lstm']
    wih = np.asarray(lstm['wih'], np.float32)                 # (A+1+Fc, 4Hh)
    A = action_dim
    wact = jnp.asarray(wih[:A])                               # (A, 4Hh) f32 (tiny)
    wrew = jnp.asarray(wih[A:A + 1])                          # (1, 4Hh) f32 broadcast row
    wm = jnp.asarray(wih[A + 1:], dtype=bf16)                 # (Fc, 4Hh) bf16

    return dict(
        wc1=wc1, bc1=bc1, wc2=wc2, bc2=bc2,
        gw=gw, gb=gb, bw=bw, bb=bb,
        fcw=fcw, fcb=fcb,
        wact=wact, wrew=wrew, wm=wm,
        bih=jnp.asarray(lstm['b']),
        wt=jnp.asarray(lstm['wt'], dtype=bf16),
        bt=jnp.asarray(lstm['bt']),
        whh=jnp.asarray(lstm['whh'], dtype=bf16),
    )


# ----------------------------- forward wrapper -----------------------------

def modulated_memory_forward(kp, obs_emb, task_emb, prev_action, prev_reward):
    T, B, C, Hi, Wi = obs_emb.shape
    N = T * B
    L = Wi * C
    Hh = kp['whh'].shape[0]
    A = prev_action.shape[-1]

    # (T,B,C,H,W) -> lane-dense (H, N, W*C); single small input transpose.
    x = (obs_emb.astype(jnp.float32)
         .reshape(N, C, Hi, Wi)
         .transpose(2, 0, 3, 1)
         .reshape(Hi, N, L))
    task_flat = task_emb.reshape(N, -1).astype(jnp.float32)
    act = prev_action.reshape(N, A).astype(jnp.float32)
    rew = prev_reward.reshape(N, 1).astype(jnp.float32)

    vmem_spec = pl.BlockSpec(memory_space=pltpu.MemorySpace.VMEM)
    hbm_spec = pl.BlockSpec(memory_space=pl.ANY)

    kernel = functools.partial(_modmem_fused_kernel, T, B)
    out_flat, hn, cn = pl.pallas_call(
        kernel,
        out_shape=[
            jax.ShapeDtypeStruct((N, Hh), jnp.float32),       # lstm_out rows
            jax.ShapeDtypeStruct((B, Hh), jnp.float32),       # h_n
            jax.ShapeDtypeStruct((B, Hh), jnp.float32),       # c_n
        ],
        in_specs=[vmem_spec] * 18 + [hbm_spec, hbm_spec, hbm_spec],
        scratch_shapes=[
            pltpu.VMEM(kp['fcw'].shape, jnp.bfloat16),        # prefetched FC weight
            pltpu.VMEM(kp['wm'].shape, jnp.bfloat16),         # prefetched wih (mod rows)
            pltpu.VMEM(kp['whh'].shape, jnp.bfloat16),        # prefetched whh
            pltpu.SemaphoreType.DMA((3,)),
        ],
        compiler_params=pltpu.CompilerParams(vmem_limit_bytes=32 * 1024 * 1024),
        cost_estimate=pl.CostEstimate(flops=30_000_000, transcendentals=30_000,
                                      bytes_accessed=1_300_000),
    )(x, task_flat, act, rew,
      kp['wc1'], kp['bc1'], kp['wc2'], kp['bc2'],
      kp['gw'], kp['gb'], kp['bw'], kp['bb'],
      kp['fcb'],
      kp['wact'], kp['wrew'], kp['bih'], kp['wt'], kp['bt'],
      kp['fcw'], kp['wm'], kp['whh'])

    lstm_out = out_flat.reshape(T, B, Hh)
    return lstm_out, (hn[None], cn[None])                     # (1,B,H) like nn.LSTM


# ----------------------------- pure-JAX reference -----------------------------

def ref_forward(params, obs_emb, task_emb, prev_action, prev_reward, mirror_bf16=False):
    # mirror_bf16=True rounds the same matmul operands the kernel ships in bf16 (weights
    # + activations, f32 accumulation) so the comparison isolates kernel bugs from the
    # intentional bf16 precision loss.
    if mirror_bf16:
        def q(a):
            return a.astype(jnp.bfloat16).astype(jnp.float32)
    else:
        def q(a):
            return a

    T, B, C, Hi, Wi = obs_emb.shape
    N = T * B
    x = obs_emb.reshape(N, C, Hi, Wi).transpose(2, 3, 0, 1).astype(jnp.float32)  # (H,W,N,C)
    task = task_emb.reshape(N, -1).astype(jnp.float32)

    def conv3x3(x, w, b):
        xp = jnp.pad(q(x), ((1, 1), (1, 1), (0, 0), (0, 0)))
        acc = jnp.zeros((Hi, Wi, N, w.shape[-1]), jnp.float32)
        for kh in range(3):
            for kw in range(3):
                acc = acc + jnp.einsum('hwnc,cd->hwnd',
                                       xp[kh:kh + Hi, kw:kw + Wi], q(w[kh, kw]),
                                       preferred_element_type=jnp.float32)
        return acc + b

    for i in range(2):
        blk = params[f'film{i}']
        h1 = jnp.maximum(conv3x3(x, blk['w1'], blk['b1']), 0.0)
        h2 = conv3x3(h1, blk['w2'], blk['b2'])
        gamma = task @ blk['gw'] + blk['gb']
        beta = task @ blk['bw'] + blk['bb']
        y = jnp.maximum(h2 * gamma[None, None, :, :] + beta[None, None, :, :], 0.0)
        x = y + x
    x = jnp.maximum(x, 0.0)
    flat = x.transpose(2, 3, 0, 1).reshape(N, -1)
    modulated = jnp.maximum(q(flat) @ q(params['fc_w']) + params['fc_b'], 0.0)

    p = params['lstm']
    Hh = p['whh'].shape[0]
    A = prev_action.shape[-1]
    act = prev_action.reshape(N, A).astype(jnp.float32)
    rew = prev_reward.reshape(N, 1).astype(jnp.float32)
    # Input-side gates hoisted out of the recurrence (identical math to concat @ wih).
    gates_in = (act @ p['wih'][:A] + rew * p['wih'][A:A + 1]
                + q(modulated) @ q(p['wih'][A + 1:]) + p['b']).reshape(T, B, 4 * Hh)
    tg_all = jax.nn.sigmoid(q(task) @ q(p['wt']) + p['bt']).reshape(T, B, 4 * Hh)

    h0 = jnp.zeros((B, Hh), jnp.float32)
    c0 = jnp.zeros((B, Hh), jnp.float32)

    def step(carry, inp):
        h, c = carry
        g_in, tg = inp
        g = g_in + q(h) @ q(p['whh'])
        i = jax.nn.sigmoid(g[:, 0 * Hh:1 * Hh]) * tg[:, 0 * Hh:1 * Hh]
        f = jax.nn.sigmoid(g[:, 1 * Hh:2 * Hh]) * tg[:, 1 * Hh:2 * Hh]
        gg = jnp.tanh(g[:, 2 * Hh:3 * Hh])
        o = jax.nn.sigmoid(g[:, 3 * Hh:4 * Hh]) * tg[:, 3 * Hh:4 * Hh]
        c = f * c + i * gg
        h = o * jnp.tanh(c)
        return (h, c), h

    (hn, cn), outs = jax.lax.scan(step, (h0, c0), (gates_in, tg_all))
    return outs, (hn[None], cn[None])


# ----------------------------- main -----------------------------

if __name__ == "__main__":
    T, B, C, Hi, Wi = 4, 2, 16, 8, 8            # W*C = 128 -> lane-dense layout
    Dtask, action_dim, fc_size, lstm_size = 32, 4, 128, 128

    key = jax.random.PRNGKey(0)
    k_obs, k_task, k_act, k_rew, k_par = jax.random.split(key, 5)
    obs_emb = jax.random.normal(k_obs, (T, B, C, Hi, Wi), jnp.float32)
    task_emb = jax.random.normal(k_task, (T, B, Dtask), jnp.float32)
    prev_action = jax.nn.one_hot(
        jax.random.randint(k_act, (T, B), 0, action_dim), action_dim, dtype=jnp.float32)
    prev_reward = jax.random.normal(k_rew, (T, B, 1), jnp.float32)

    params = init_params(k_par, C, Dtask, Hi, Wi, action_dim, fc_size, lstm_size)
    kparams = prepare_kernel_params(params, C, Hi, Wi, action_dim)

    fwd = jax.jit(functools.partial(modulated_memory_forward, kparams))
    lstm_out, (hn, cn) = fwd(obs_emb, task_emb, prev_action, prev_reward)
    jax.block_until_ready((lstm_out, hn, cn))

    assert lstm_out.shape == (T, B, lstm_size)
    assert hn.shape == (1, B, lstm_size) and cn.shape == (1, B, lstm_size)
    assert bool(jnp.isfinite(lstm_out).all()), "non-finite output"

    # Tight check vs a reference that mirrors the kernel's bf16 operand rounding.
    m_out, (m_hn, m_cn) = ref_forward(params, obs_emb, task_emb, prev_action,
                                      prev_reward, mirror_bf16=True)
    diff_bf16 = max(float(jnp.max(jnp.abs(lstm_out - m_out))),
                    float(jnp.max(jnp.abs(hn - m_hn))),
                    float(jnp.max(jnp.abs(cn - m_cn))))
    assert diff_bf16 < 2e-2, f"mismatch vs bf16-mirrored reference: {diff_bf16}"

    # Loose check vs the exact f32 reference (bounds the intentional bf16 impact).
    r_out, (r_hn, r_cn) = ref_forward(params, obs_emb, task_emb, prev_action,
                                      prev_reward, mirror_bf16=False)
    diff_f32 = max(float(jnp.max(jnp.abs(lstm_out - r_out))),
                   float(jnp.max(jnp.abs(hn - r_hn))),
                   float(jnp.max(jnp.abs(cn - r_cn))))
    assert diff_f32 < 1e-1, f"mismatch vs f32 reference: {diff_f32}"

    print("KERNEL_OK")
</pallas_src>

<mosaic_0001>
module attributes {stable_mosaic.version = 11 : i64} {
  func.func @_modmem_fused_kernel(%arg0: memref<8x8x128xf32, #tpu.memory_space<vmem>>, %arg1: memref<8x32xf32, #tpu.memory_space<vmem>>, %arg2: memref<8x4xf32, #tpu.memory_space<vmem>>, %arg3: memref<8x1xf32, #tpu.memory_space<vmem>>, %arg4: memref<2x384x128xbf16, #tpu.memory_space<vmem>>, %arg5: memref<2x1x128xf32, #tpu.memory_space<vmem>>, %arg6: memref<2x384x128xbf16, #tpu.memory_space<vmem>>, %arg7: memref<2x1x128xf32, #tpu.memory_space<vmem>>, %arg8: memref<2x32x128xf32, #tpu.memory_space<vmem>>, %arg9: memref<2x1x128xf32, #tpu.memory_space<vmem>>, %arg10: memref<2x32x128xf32, #tpu.memory_space<vmem>>, %arg11: memref<2x1x128xf32, #tpu.memory_space<vmem>>, %arg12: memref<1x128xf32, #tpu.memory_space<vmem>>, %arg13: memref<4x512xf32, #tpu.memory_space<vmem>>, %arg14: memref<1x512xf32, #tpu.memory_space<vmem>>, %arg15: memref<1x512xf32, #tpu.memory_space<vmem>>, %arg16: memref<32x512xbf16, #tpu.memory_space<vmem>>, %arg17: memref<1x512xf32, #tpu.memory_space<vmem>>, %arg18: memref<8x128x128xbf16, #tpu.memory_space<any>>, %arg19: memref<128x512xbf16, #tpu.memory_space<any>>, %arg20: memref<128x512xbf16, #tpu.memory_space<any>>, %arg21: memref<8x128xf32, #tpu.memory_space<vmem>>, %arg22: memref<2x128xf32, #tpu.memory_space<vmem>>, %arg23: memref<2x128xf32, #tpu.memory_space<vmem>>, %arg24: memref<8x128x128xbf16, #tpu.memory_space<vmem>>, %arg25: memref<128x512xbf16, #tpu.memory_space<vmem>>, %arg26: memref<128x512xbf16, #tpu.memory_space<vmem>>, %arg27: memref<3x!tpu.dma_semaphore, #tpu.memory_space<semaphore_mem>>) attributes {dimension_semantics = [], scalar_prefetch = 0 : i64, scratch_operands = 4 : i64, tpu.core_type = #tpu.core_type<tc>} {
    %c0_i32 = arith.constant 0 : i32
    %0 = tpu.memref_slice %arg27[%c0_i32] : memref<3x!tpu.dma_semaphore, #tpu.memory_space<semaphore_mem>> -> memref<1x!tpu.dma_semaphore, #tpu.memory_space<semaphore_mem>>
    %1 = tpu.memref_squeeze %0 : memref<1x!tpu.dma_semaphore, #tpu.memory_space<semaphore_mem>> -> memref<!tpu.dma_semaphore, #tpu.memory_space<semaphore_mem>>
    tpu.enqueue_dma source(%arg18 : memref<8x128x128xbf16, #tpu.memory_space<any>>) target(%arg24 : memref<8x128x128xbf16, #tpu.memory_space<vmem>>) target_semaphore(%1 : memref<!tpu.dma_semaphore, #tpu.memory_space<semaphore_mem>>)
    %c1_i32 = arith.constant 1 : i32
    %2 = tpu.memref_slice %arg27[%c1_i32] : memref<3x!tpu.dma_semaphore, #tpu.memory_space<semaphore_mem>> -> memref<1x!tpu.dma_semaphore, #tpu.memory_space<semaphore_mem>>
    %3 = tpu.memref_squeeze %2 : memref<1x!tpu.dma_semaphore, #tpu.memory_space<semaphore_mem>> -> memref<!tpu.dma_semaphore, #tpu.memory_space<semaphore_mem>>
    tpu.enqueue_dma source(%arg19 : memref<128x512xbf16, #tpu.memory_space<any>>) target(%arg25 : memref<128x512xbf16, #tpu.memory_space<vmem>>) target_semaphore(%3 : memref<!tpu.dma_semaphore, #tpu.memory_space<semaphore_mem>>)
    %c2_i32 = arith.constant 2 : i32
    %4 = tpu.memref_slice %arg27[%c2_i32] : memref<3x!tpu.dma_semaphore, #tpu.memory_space<semaphore_mem>> -> memref<1x!tpu.dma_semaphore, #tpu.memory_space<semaphore_mem>>
    %5 = tpu.memref_squeeze %4 : memref<1x!tpu.dma_semaphore, #tpu.memory_space<semaphore_mem>> -> memref<!tpu.dma_semaphore, #tpu.memory_space<semaphore_mem>>
    tpu.enqueue_dma source(%arg20 : memref<128x512xbf16, #tpu.memory_space<any>>) target(%arg26 : memref<128x512xbf16, #tpu.memory_space<vmem>>) target_semaphore(%5 : memref<!tpu.dma_semaphore, #tpu.memory_space<semaphore_mem>>)
    %c0 = arith.constant 0 : index
    %c0_0 = arith.constant 0 : index
    %6 = vector.load %arg1[%c0, %c0_0] : memref<8x32xf32, #tpu.memory_space<vmem>>, vector<8x32xf32>
    %cst = arith.constant 0.000000e+00 : f32
    %7 = vector.broadcast %cst : f32 to vector<1x8x128xf32>
    %c0_1 = arith.constant 0 : index
    %c0_2 = arith.constant 0 : index
    %c0_3 = arith.constant 0 : index
    %8 = vector.load %arg0[%c0_1, %c0_2, %c0_3] : memref<8x8x128xf32, #tpu.memory_space<vmem>>, vector<8x8x128xf32>
    %9 = tpu.concatenate %7, %8, %7 in 0 : vector<1x8x128xf32>, vector<8x8x128xf32>, vector<1x8x128xf32> -> vector<10x8x128xf32>
    %10 = vector.extract_strided_slice %9 {offsets = [0, 0, 0], sizes = [8, 8, 128], strides = [1, 1, 1]} : vector<10x8x128xf32> to vector<8x8x128xf32>
    %11 = vector.extract_strided_slice %9 {offsets = [1, 0, 0], sizes = [8, 8, 128], strides = [1, 1, 1]} : vector<10x8x128xf32> to vector<8x8x128xf32>
    %12 = vector.extract_strided_slice %9 {offsets = [2, 0, 0], sizes = [8, 8, 128], strides = [1, 1, 1]} : vector<10x8x128xf32> to vector<8x8x128xf32>
    %13 = tpu.concatenate %10, %11, %12 in 2 : vector<8x8x128xf32>, vector<8x8x128xf32>, vector<8x8x128xf32> -> vector<8x8x384xf32>
    %14 = vector.shape_cast %13 : vector<8x8x384xf32> to vector<64x384xf32>
    %15 = arith.truncf %14 : vector<64x384xf32> to vector<64x384xbf16>
    %c0_4 = arith.constant 0 : index
    %c0_5 = arith.constant 0 : index
    %c0_6 = arith.constant 0 : index
    %16 = vector.load %arg4[%c0_4, %c0_5, %c0_6] : memref<2x384x128xbf16, #tpu.memory_space<vmem>>, vector<1x384x128xbf16>
    %17 = vector.shape_cast %16 : vector<1x384x128xbf16> to vector<384x128xbf16>
    %cst_7 = arith.constant dense<0.000000e+00> : vector<64x128xf32>
    %18 = tpu.matmul %15, %17, %cst_7 {dimension_numbers = #tpu.dot_dimension_numbers<[1], [0], [0], [1], [0, 0, 1, 1], [], []>} : vector<64x384xbf16>, vector<384x128xbf16>, vector<64x128xf32> -> vector<64x128xf32>
    %c0_8 = arith.constant 0 : index
    %c0_9 = arith.constant 0 : index
    %c0_10 = arith.constant 0 : index
    %19 = vector.load %arg5[%c0_8, %c0_9, %c0_10] : memref<2x1x128xf32, #tpu.memory_space<vmem>>, vector<1x1x128xf32>
    %20 = vector.shape_cast %19 : vector<1x1x128xf32> to vector<1x128xf32>
    %21 = vector.broadcast %20 : vector<1x128xf32> to vector<64x128xf32>
    %22 = arith.addf %18, %21 : vector<64x128xf32>
    %cst_11 = arith.constant 0.000000e+00 : f32
    %23 = vector.broadcast %cst_11 : f32 to vector<64x128xf32>
    %24 = arith.maximumf %22, %23 : vector<64x128xf32>
    %25 = vector.shape_cast %24 : vector<64x128xf32> to vector<8x8x128xf32>
    %26 = tpu.concatenate %7, %25, %7 in 0 : vector<1x8x128xf32>, vector<8x8x128xf32>, vector<1x8x128xf32> -> vector<10x8x128xf32>
    %27 = vector.extract_strided_slice %26 {offsets = [0, 0, 0], sizes = [8, 8, 128], strides = [1, 1, 1]} : vector<10x8x128xf32> to vector<8x8x128xf32>
    %28 = vector.extract_strided_slice %26 {offsets = [1, 0, 0], sizes = [8, 8, 128], strides = [1, 1, 1]} : vector<10x8x128xf32> to vector<8x8x128xf32>
    %29 = vector.extract_strided_slice %26 {offsets = [2, 0, 0], sizes = [8, 8, 128], strides = [1, 1, 1]} : vector<10x8x128xf32> to vector<8x8x128xf32>
    %30 = tpu.concatenate %27, %28, %29 in 2 : vector<8x8x128xf32>, vector<8x8x128xf32>, vector<8x8x128xf32> -> vector<8x8x384xf32>
    %31 = vector.shape_cast %30 : vector<8x8x384xf32> to vector<64x384xf32>
    %32 = arith.truncf %31 : vector<64x384xf32> to vector<64x384xbf16>
    %c0_12 = arith.constant 0 : index
    %c0_13 = arith.constant 0 : index
    %c0_14 = arith.constant 0 : index
    %33 = vector.load %arg6[%c0_12, %c0_13, %c0_14] : memref<2x384x128xbf16, #tpu.memory_space<vmem>>, vector<1x384x128xbf16>
    %34 = vector.shape_cast %33 : vector<1x384x128xbf16> to vector<384x128xbf16>
    %cst_15 = arith.constant dense<0.000000e+00> : vector<64x128xf32>
    %35 = tpu.matmul %32, %34, %cst_15 {dimension_numbers = #tpu.dot_dimension_numbers<[1], [0], [0], [1], [0, 0, 1, 1], [], []>} : vector<64x384xbf16>, vector<384x128xbf16>, vector<64x128xf32> -> vector<64x128xf32>
    %c0_16 = arith.constant 0 : index
    %c0_17 = arith.constant 0 : index
    %c0_18 = arith.constant 0 : index
    %36 = vector.load %arg7[%c0_16, %c0_17, %c0_18] : memref<2x1x128xf32, #tpu.memory_space<vmem>>, vector<1x1x128xf32>
    %37 = vector.shape_cast %36 : vector<1x1x128xf32> to vector<1x128xf32>
    %38 = vector.broadcast %37 : vector<1x128xf32> to vector<64x128xf32>
    %39 = arith.addf %35, %38 : vector<64x128xf32>
    %40 = vector.shape_cast %39 : vector<64x128xf32> to vector<8x8x128xf32>
    %c0_19 = arith.constant 0 : index
    %c0_20 = arith.constant 0 : index
    %c0_21 = arith.constant 0 : index
    %41 = vector.load %arg8[%c0_19, %c0_20, %c0_21] : memref<2x32x128xf32, #tpu.memory_space<vmem>>, vector<1x32x128xf32>
    %42 = vector.shape_cast %41 : vector<1x32x128xf32> to vector<32x128xf32>
    %cst_22 = arith.constant dense<0.000000e+00> : vector<8x128xf32>
    %43 = tpu.matmul %6, %42, %cst_22 {dimension_numbers = #tpu.dot_dimension_numbers<[1], [0], [0], [1], [0, 0, 1, 1], [], []>} : vector<8x32xf32>, vector<32x128xf32>, vector<8x128xf32> -> vector<8x128xf32>
    %c0_23 = arith.constant 0 : index
    %c0_24 = arith.constant 0 : index
    %c0_25 = arith.constant 0 : index
    %44 = vector.load %arg9[%c0_23, %c0_24, %c0_25] : memref<2x1x128xf32, #tpu.memory_space<vmem>>, vector<1x1x128xf32>
    %45 = vector.shape_cast %44 : vector<1x1x128xf32> to vector<1x128xf32>
    %46 = vector.broadcast %45 : vector<1x128xf32> to vector<8x128xf32>
    %47 = arith.addf %43, %46 : vector<8x128xf32>
    %c0_26 = arith.constant 0 : index
    %c0_27 = arith.constant 0 : index
    %c0_28 = arith.constant 0 : index
    %48 = vector.load %arg10[%c0_26, %c0_27, %c0_28] : memref<2x32x128xf32, #tpu.memory_space<vmem>>, vector<1x32x128xf32>
    %49 = vector.shape_cast %48 : vector<1x32x128xf32> to vector<32x128xf32>
    %cst_29 = arith.constant dense<0.000000e+00> : vector<8x128xf32>
    %50 = tpu.matmul %6, %49, %cst_29 {dimension_numbers = #tpu.dot_dimension_numbers<[1], [0], [0], [1], [0, 0, 1, 1], [], []>} : vector<8x32xf32>, vector<32x128xf32>, vector<8x128xf32> -> vector<8x128xf32>
    %c0_30 = arith.constant 0 : index
    %c0_31 = arith.constant 0 : index
    %c0_32 = arith.constant 0 : index
    %51 = vector.load %arg11[%c0_30, %c0_31, %c0_32] : memref<2x1x128xf32, #tpu.memory_space<vmem>>, vector<1x1x128xf32>
    %52 = vector.shape_cast %51 : vector<1x1x128xf32> to vector<1x128xf32>
    %53 = vector.broadcast %52 : vector<1x128xf32> to vector<8x128xf32>
    %54 = arith.addf %50, %53 : vector<8x128xf32>
    %55 = vector.shape_cast %47 : vector<8x128xf32> to vector<1x8x128xf32>
    %56 = vector.broadcast %55 : vector<1x8x128xf32> to vector<8x8x128xf32>
    %57 = arith.mulf %40, %56 : vector<8x8x128xf32>
    %58 = vector.shape_cast %54 : vector<8x128xf32> to vector<1x8x128xf32>
    %59 = vector.broadcast %58 : vector<1x8x128xf32> to vector<8x8x128xf32>
    %60 = arith.addf %57, %59 : vector<8x8x128xf32>
    %cst_33 = arith.constant 0.000000e+00 : f32
    %61 = vector.broadcast %cst_33 : f32 to vector<8x8x128xf32>
    %62 = arith.maximumf %60, %61 : vector<8x8x128xf32>
    %63 = arith.addf %62, %8 : vector<8x8x128xf32>
    %64 = tpu.concatenate %7, %63, %7 in 0 : vector<1x8x128xf32>, vector<8x8x128xf32>, vector<1x8x128xf32> -> vector<10x8x128xf32>
    %65 = vector.extract_strided_slice %64 {offsets = [0, 0, 0], sizes = [8, 8, 128], strides = [1, 1, 1]} : vector<10x8x128xf32> to vector<8x8x128xf32>
    %66 = vector.extract_strided_slice %64 {offsets = [1, 0, 0], sizes = [8, 8, 128], strides = [1, 1, 1]} : vector<10x8x128xf32> to vector<8x8x128xf32>
    %67 = vector.extract_strided_slice %64 {offsets = [2, 0, 0], sizes = [8, 8, 128], strides = [1, 1, 1]} : vector<10x8x128xf32> to vector<8x8x128xf32>
    %68 = tpu.concatenate %65, %66, %67 in 2 : vector<8x8x128xf32>, vector<8x8x128xf32>, vector<8x8x128xf32> -> vector<8x8x384xf32>
    %69 = vector.shape_cast %68 : vector<8x8x384xf32> to vector<64x384xf32>
    %70 = arith.truncf %69 : vector<64x384xf32> to vector<64x384xbf16>
    %c1 = arith.constant 1 : index
    %c0_34 = arith.constant 0 : index
    %c0_35 = arith.constant 0 : index
    %71 = vector.load %arg4[%c1, %c0_34, %c0_35] : memref<2x384x128xbf16, #tpu.memory_space<vmem>>, vector<1x384x128xbf16>
    %72 = vector.shape_cast %71 : vector<1x384x128xbf16> to vector<384x128xbf16>
    %cst_36 = arith.constant dense<0.000000e+00> : vector<64x128xf32>
    %73 = tpu.matmul %70, %72, %cst_36 {dimension_numbers = #tpu.dot_dimension_numbers<[1], [0], [0], [1], [0, 0, 1, 1], [], []>} : vector<64x384xbf16>, vector<384x128xbf16>, vector<64x128xf32> -> vector<64x128xf32>
    %c1_37 = arith.constant 1 : index
    %c0_38 = arith.constant 0 : index
    %c0_39 = arith.constant 0 : index
    %74 = vector.load %arg5[%c1_37, %c0_38, %c0_39] : memref<2x1x128xf32, #tpu.memory_space<vmem>>, vector<1x1x128xf32>
    %75 = vector.shape_cast %74 : vector<1x1x128xf32> to vector<1x128xf32>
    %76 = vector.broadcast %75 : vector<1x128xf32> to vector<64x128xf32>
    %77 = arith.addf %73, %76 : vector<64x128xf32>
    %cst_40 = arith.constant 0.000000e+00 : f32
    %78 = vector.broadcast %cst_40 : f32 to vector<64x128xf32>
    %79 = arith.maximumf %77, %78 : vector<64x128xf32>
    %80 = vector.shape_cast %79 : vector<64x128xf32> to vector<8x8x128xf32>
    %81 = tpu.concatenate %7, %80, %7 in 0 : vector<1x8x128xf32>, vector<8x8x128xf32>, vector<1x8x128xf32> -> vector<10x8x128xf32>
    %82 = vector.extract_strided_slice %81 {offsets = [0, 0, 0], sizes = [8, 8, 128], strides = [1, 1, 1]} : vector<10x8x128xf32> to vector<8x8x128xf32>
    %83 = vector.extract_strided_slice %81 {offsets = [1, 0, 0], sizes = [8, 8, 128], strides = [1, 1, 1]} : vector<10x8x128xf32> to vector<8x8x128xf32>
    %84 = vector.extract_strided_slice %81 {offsets = [2, 0, 0], sizes = [8, 8, 128], strides = [1, 1, 1]} : vector<10x8x128xf32> to vector<8x8x128xf32>
    %85 = tpu.concatenate %82, %83, %84 in 2 : vector<8x8x128xf32>, vector<8x8x128xf32>, vector<8x8x128xf32> -> vector<8x8x384xf32>
    %86 = vector.shape_cast %85 : vector<8x8x384xf32> to vector<64x384xf32>
    %87 = arith.truncf %86 : vector<64x384xf32> to vector<64x384xbf16>
    %c1_41 = arith.constant 1 : index
    %c0_42 = arith.constant 0 : index
    %c0_43 = arith.constant 0 : index
    %88 = vector.load %arg6[%c1_41, %c0_42, %c0_43] : memref<2x384x128xbf16, #tpu.memory_space<vmem>>, vector<1x384x128xbf16>
    %89 = vector.shape_cast %88 : vector<1x384x128xbf16> to vector<384x128xbf16>
    %cst_44 = arith.constant dense<0.000000e+00> : vector<64x128xf32>
    %90 = tpu.matmul %87, %89, %cst_44 {dimension_numbers = #tpu.dot_dimension_numbers<[1], [0], [0], [1], [0, 0, 1, 1], [], []>} : vector<64x384xbf16>, vector<384x128xbf16>, vector<64x128xf32> -> vector<64x128xf32>
    %c1_45 = arith.constant 1 : index
    %c0_46 = arith.constant 0 : index
    %c0_47 = arith.constant 0 : index
    %91 = vector.load %arg7[%c1_45, %c0_46, %c0_47] : memref<2x1x128xf32, #tpu.memory_space<vmem>>, vector<1x1x128xf32>
    %92 = vector.shape_cast %91 : vector<1x1x128xf32> to vector<1x128xf32>
    %93 = vector.broadcast %92 : vector<1x128xf32> to vector<64x128xf32>
    %94 = arith.addf %90, %93 : vector<64x128xf32>
    %95 = vector.shape_cast %94 : vector<64x128xf32> to vector<8x8x128xf32>
    %c1_48 = arith.constant 1 : index
    %c0_49 = arith.constant 0 : index
    %c0_50 = arith.constant 0 : index
    %96 = vector.load %arg8[%c1_48, %c0_49, %c0_50] : memref<2x32x128xf32, #tpu.memory_space<vmem>>, vector<1x32x128xf32>
    %97 = vector.shape_cast %96 : vector<1x32x128xf32> to vector<32x128xf32>
    %cst_51 = arith.constant dense<0.000000e+00> : vector<8x128xf32>
    %98 = tpu.matmul %6, %97, %cst_51 {dimension_numbers = #tpu.dot_dimension_numbers<[1], [0], [0], [1], [0, 0, 1, 1], [], []>} : vector<8x32xf32>, vector<32x128xf32>, vector<8x128xf32> -> vector<8x128xf32>
    %c1_52 = arith.constant 1 : index
    %c0_53 = arith.constant 0 : index
    %c0_54 = arith.constant 0 : index
    %99 = vector.load %arg9[%c1_52, %c0_53, %c0_54] : memref<2x1x128xf32, #tpu.memory_space<vmem>>, vector<1x1x128xf32>
    %100 = vector.shape_cast %99 : vector<1x1x128xf32> to vector<1x128xf32>
    %101 = vector.broadcast %100 : vector<1x128xf32> to vector<8x128xf32>
    %102 = arith.addf %98, %101 : vector<8x128xf32>
    %c1_55 = arith.constant 1 : index
    %c0_56 = arith.constant 0 : index
    %c0_57 = arith.constant 0 : index
    %103 = vector.load %arg10[%c1_55, %c0_56, %c0_57] : memref<2x32x128xf32, #tpu.memory_space<vmem>>, vector<1x32x128xf32>
    %104 = vector.shape_cast %103 : vector<1x32x128xf32> to vector<32x128xf32>
    %cst_58 = arith.constant dense<0.000000e+00> : vector<8x128xf32>
    %105 = tpu.matmul %6, %104, %cst_58 {dimension_numbers = #tpu.dot_dimension_numbers<[1], [0], [0], [1], [0, 0, 1, 1], [], []>} : vector<8x32xf32>, vector<32x128xf32>, vector<8x128xf32> -> vector<8x128xf32>
    %c1_59 = arith.constant 1 : index
    %c0_60 = arith.constant 0 : index
    %c0_61 = arith.constant 0 : index
    %106 = vector.load %arg11[%c1_59, %c0_60, %c0_61] : memref<2x1x128xf32, #tpu.memory_space<vmem>>, vector<1x1x128xf32>
    %107 = vector.shape_cast %106 : vector<1x1x128xf32> to vector<1x128xf32>
    %108 = vector.broadcast %107 : vector<1x128xf32> to vector<8x128xf32>
    %109 = arith.addf %105, %108 : vector<8x128xf32>
    %110 = vector.shape_cast %102 : vector<8x128xf32> to vector<1x8x128xf32>
    %111 = vector.broadcast %110 : vector<1x8x128xf32> to vector<8x8x128xf32>
    %112 = arith.mulf %95, %111 : vector<8x8x128xf32>
    %113 = vector.shape_cast %109 : vector<8x128xf32> to vector<1x8x128xf32>
    %114 = vector.broadcast %113 : vector<1x8x128xf32> to vector<8x8x128xf32>
    %115 = arith.addf %112, %114 : vector<8x8x128xf32>
    %cst_62 = arith.constant 0.000000e+00 : f32
    %116 = vector.broadcast %cst_62 : f32 to vector<8x8x128xf32>
    %117 = arith.maximumf %115, %116 : vector<8x8x128xf32>
    %118 = arith.addf %117, %63 : vector<8x8x128xf32>
    %cst_63 = arith.constant 0.000000e+00 : f32
    %119 = vector.broadcast %cst_63 : f32 to vector<8x8x128xf32>
    %120 = arith.maximumf %118, %119 : vector<8x8x128xf32>
    %121 = arith.truncf %120 : vector<8x8x128xf32> to vector<8x8x128xbf16>
    %c0_i32_64 = arith.constant 0 : i32
    %122 = tpu.memref_slice %arg27[%c0_i32_64] : memref<3x!tpu.dma_semaphore, #tpu.memory_space<semaphore_mem>> -> memref<1x!tpu.dma_semaphore, #tpu.memory_space<semaphore_mem>>
    %123 = tpu.memref_squeeze %122 : memref<1x!tpu.dma_semaphore, #tpu.memory_space<semaphore_mem>> -> memref<!tpu.dma_semaphore, #tpu.memory_space<semaphore_mem>>
    tpu.wait_dma2 semaphore(%123 : memref<!tpu.dma_semaphore, #tpu.memory_space<semaphore_mem>>) src(%arg18 : memref<8x128x128xbf16, #tpu.memory_space<any>>) dst(%arg24 : memref<8x128x128xbf16, #tpu.memory_space<vmem>>)
    %cst_65 = arith.constant 0.000000e+00 : f32
    %124 = vector.broadcast %cst_65 : f32 to vector<8x128xf32>
    %125 = vector.extract_strided_slice %121 {offsets = [0, 0, 0], sizes = [1, 8, 128], strides = [1, 1, 1]} : vector<8x8x128xbf16> to vector<1x8x128xbf16>
    %126 = vector.shape_cast %125 : vector<1x8x128xbf16> to vector<8x128xbf16>
    %c0_66 = arith.constant 0 : index
    %c0_67 = arith.constant 0 : index
    %c0_68 = arith.constant 0 : index
    %127 = vector.load %arg24[%c0_66, %c0_67, %c0_68] : memref<8x128x128xbf16, #tpu.memory_space<vmem>>, vector<1x128x128xbf16>
    %128 = vector.shape_cast %127 : vector<1x128x128xbf16> to vector<128x128xbf16>
    %cst_69 = arith.constant dense<0.000000e+00> : vector<8x128xf32>
    %129 = tpu.matmul %126, %128, %cst_69 {dimension_numbers = #tpu.dot_dimension_numbers<[1], [0], [0], [1], [0, 0, 1, 1], [], []>} : vector<8x128xbf16>, vector<128x128xbf16>, vector<8x128xf32> -> vector<8x128xf32>
    %130 = arith.addf %124, %129 : vector<8x128xf32>
    %131 = vector.extract_strided_slice %121 {offsets = [1, 0, 0], sizes = [1, 8, 128], strides = [1, 1, 1]} : vector<8x8x128xbf16> to vector<1x8x128xbf16>
    %132 = vector.shape_cast %131 : vector<1x8x128xbf16> to vector<8x128xbf16>
    %c1_70 = arith.constant 1 : index
    %c0_71 = arith.constant 0 : index
    %c0_72 = arith.constant 0 : index
    %133 = vector.load %arg24[%c1_70, %c0_71, %c0_72] : memref<8x128x128xbf16, #tpu.memory_space<vmem>>, vector<1x128x128xbf16>
    %134 = vector.shape_cast %133 : vector<1x128x128xbf16> to vector<128x128xbf16>
    %cst_73 = arith.constant dense<0.000000e+00> : vector<8x128xf32>
    %135 = tpu.matmul %132, %134, %cst_73 {dimension_numbers = #tpu.dot_dimension_numbers<[1], [0], [0], [1], [0, 0, 1, 1], [], []>} : vector<8x128xbf16>, vector<128x128xbf16>, vector<8x128xf32> -> vector<8x128xf32>
    %136 = arith.addf %130, %135 : vector<8x128xf32>
    %137 = vector.extract_strided_slice %121 {offsets = [2, 0, 0], sizes = [1, 8, 128], strides = [1, 1, 1]} : vector<8x8x128xbf16> to vector<1x8x128xbf16>
    %138 = vector.shape_cast %137 : vector<1x8x128xbf16> to vector<8x128xbf16>
    %c2 = arith.constant 2 : index
    %c0_74 = arith.constant 0 : index
    %c0_75 = arith.constant 0 : index
    %139 = vector.load %arg24[%c2, %c0_74, %c0_75] : memref<8x128x128xbf16, #tpu.memory_space<vmem>>, vector<1x128x128xbf16>
    %140 = vector.shape_cast %139 : vector<1x128x128xbf16> to vector<128x128xbf16>
    %cst_76 = arith.constant dense<0.000000e+00> : vector<8x128xf32>
    %141 = tpu.matmul %138, %140, %cst_76 {dimension_numbers = #tpu.dot_dimension_numbers<[1], [0], [0], [1], [0, 0, 1, 1], [], []>} : vector<8x128xbf16>, vector<128x128xbf16>, vector<8x128xf32> -> vector<8x128xf32>
    %142 = arith.addf %136, %141 : vector<8x128xf32>
    %143 = vector.extract_strided_slice %121 {offsets = [3, 0, 0], sizes = [1, 8, 128], strides = [1, 1, 1]} : vector<8x8x128xbf16> to vector<1x8x128xbf16>
    %144 = vector.shape_cast %143 : vector<1x8x128xbf16> to vector<8x128xbf16>
    %c3 = arith.constant 3 : index
    %c0_77 = arith.constant 0 : index
    %c0_78 = arith.constant 0 : index
    %145 = vector.load %arg24[%c3, %c0_77, %c0_78] : memref<8x128x128xbf16, #tpu.memory_space<vmem>>, vector<1x128x128xbf16>
    %146 = vector.shape_cast %145 : vector<1x128x128xbf16> to vector<128x128xbf16>
    %cst_79 = arith.constant dense<0.000000e+00> : vector<8x128xf32>
    %147 = tpu.matmul %144, %146, %cst_79 {dimension_numbers = #tpu.dot_dimension_numbers<[1], [0], [0], [1], [0, 0, 1, 1], [], []>} : vector<8x128xbf16>, vector<128x128xbf16>, vector<8x128xf32> -> vector<8x128xf32>
    %148 = arith.addf %142, %147 : vector<8x128xf32>
    %149 = vector.extract_strided_slice %121 {offsets = [4, 0, 0], sizes = [1, 8, 128], strides = [1, 1, 1]} : vector<8x8x128xbf16> to vector<1x8x128xbf16>
    %150 = vector.shape_cast %149 : vector<1x8x128xbf16> to vector<8x128xbf16>
    %c4 = arith.constant 4 : index
    %c0_80 = arith.constant 0 : index
    %c0_81 = arith.constant 0 : index
    %151 = vector.load %arg24[%c4, %c0_80, %c0_81] : memref<8x128x128xbf16, #tpu.memory_space<vmem>>, vector<1x128x128xbf16>
    %152 = vector.shape_cast %151 : vector<1x128x128xbf16> to vector<128x128xbf16>
    %cst_82 = arith.constant dense<0.000000e+00> : vector<8x128xf32>
    %153 = tpu.matmul %150, %152, %cst_82 {dimension_numbers = #tpu.dot_dimension_numbers<[1], [0], [0], [1], [0, 0, 1, 1], [], []>} : vector<8x128xbf16>, vector<128x128xbf16>, vector<8x128xf32> -> vector<8x128xf32>
    %154 = arith.addf %148, %153 : vector<8x128xf32>
    %155 = vector.extract_strided_slice %121 {offsets = [5, 0, 0], sizes = [1, 8, 128], strides = [1, 1, 1]} : vector<8x8x128xbf16> to vector<1x8x128xbf16>
    %156 = vector.shape_cast %155 : vector<1x8x128xbf16> to vector<8x128xbf16>
    %c5 = arith.constant 5 : index
    %c0_83 = arith.constant 0 : index
    %c0_84 = arith.constant 0 : index
    %157 = vector.load %arg24[%c5, %c0_83, %c0_84] : memref<8x128x128xbf16, #tpu.memory_space<vmem>>, vector<1x128x128xbf16>
    %158 = vector.shape_cast %157 : vector<1x128x128xbf16> to vector<128x128xbf16>
    %cst_85 = arith.constant dense<0.000000e+00> : vector<8x128xf32>
    %159 = tpu.matmul %156, %158, %cst_85 {dimension_numbers = #tpu.dot_dimension_numbers<[1], [0], [0], [1], [0, 0, 1, 1], [], []>} : vector<8x128xbf16>, vector<128x128xbf16>, vector<8x128xf32> -> vector<8x128xf32>
    %160 = arith.addf %154, %159 : vector<8x128xf32>
    %161 = vector.extract_strided_slice %121 {offsets = [6, 0, 0], sizes = [1, 8, 128], strides = [1, 1, 1]} : vector<8x8x128xbf16> to vector<1x8x128xbf16>
    %162 = vector.shape_cast %161 : vector<1x8x128xbf16> to vector<8x128xbf16>
    %c6 = arith.constant 6 : index
    %c0_86 = arith.constant 0 : index
    %c0_87 = arith.constant 0 : index
    %163 = vector.load %arg24[%c6, %c0_86, %c0_87] : memref<8x128x128xbf16, #tpu.memory_space<vmem>>, vector<1x128x128xbf16>
    %164 = vector.shape_cast %163 : vector<1x128x128xbf16> to vector<128x128xbf16>
    %cst_88 = arith.constant dense<0.000000e+00> : vector<8x128xf32>
    %165 = tpu.matmul %162, %164, %cst_88 {dimension_numbers = #tpu.dot_dimension_numbers<[1], [0], [0], [1], [0, 0, 1, 1], [], []>} : vector<8x128xbf16>, vector<128x128xbf16>, vector<8x128xf32> -> vector<8x128xf32>
    %166 = arith.addf %160, %165 : vector<8x128xf32>
    %167 = vector.extract_strided_slice %121 {offsets = [7, 0, 0], sizes = [1, 8, 128], strides = [1, 1, 1]} : vector<8x8x128xbf16> to vector<1x8x128xbf16>
    %168 = vector.shape_cast %167 : vector<1x8x128xbf16> to vector<8x128xbf16>
    %c7 = arith.constant 7 : index
    %c0_89 = arith.constant 0 : index
    %c0_90 = arith.constant 0 : index
    %169 = vector.load %arg24[%c7, %c0_89, %c0_90] : memref<8x128x128xbf16, #tpu.memory_space<vmem>>, vector<1x128x128xbf16>
    %170 = vector.shape_cast %169 : vector<1x128x128xbf16> to vector<128x128xbf16>
    %cst_91 = arith.constant dense<0.000000e+00> : vector<8x128xf32>
    %171 = tpu.matmul %168, %170, %cst_91 {dimension_numbers = #tpu.dot_dimension_numbers<[1], [0], [0], [1], [0, 0, 1, 1], [], []>} : vector<8x128xbf16>, vector<128x128xbf16>, vector<8x128xf32> -> vector<8x128xf32>
    %172 = arith.addf %166, %171 : vector<8x128xf32>
    %c0_92 = arith.constant 0 : index
    %c0_93 = arith.constant 0 : index
    %173 = vector.load %arg12[%c0_92, %c0_93] : memref<1x128xf32, #tpu.memory_space<vmem>>, vector<1x128xf32>
    %174 = vector.broadcast %173 : vector<1x128xf32> to vector<8x128xf32>
    %175 = arith.addf %172, %174 : vector<8x128xf32>
    %cst_94 = arith.constant 0.000000e+00 : f32
    %176 = vector.broadcast %cst_94 : f32 to vector<8x128xf32>
    %177 = arith.maximumf %175, %176 : vector<8x128xf32>
    %c1_i32_95 = arith.constant 1 : i32
    %178 = tpu.memref_slice %arg27[%c1_i32_95] : memref<3x!tpu.dma_semaphore, #tpu.memory_space<semaphore_mem>> -> memref<1x!tpu.dma_semaphore, #tpu.memory_space<semaphore_mem>>
    %179 = tpu.memref_squeeze %178 : memref<1x!tpu.dma_semaphore, #tpu.memory_space<semaphore_mem>> -> memref<!tpu.dma_semaphore, #tpu.memory_space<semaphore_mem>>
    tpu.wait_dma2 semaphore(%179 : memref<!tpu.dma_semaphore, #tpu.memory_space<semaphore_mem>>) src(%arg19 : memref<128x512xbf16, #tpu.memory_space<any>>) dst(%arg25 : memref<128x512xbf16, #tpu.memory_space<vmem>>)
    %c2_i32_96 = arith.constant 2 : i32
    %180 = tpu.memref_slice %arg27[%c2_i32_96] : memref<3x!tpu.dma_semaphore, #tpu.memory_space<semaphore_mem>> -> memref<1x!tpu.dma_semaphore, #tpu.memory_space<semaphore_mem>>
    %181 = tpu.memref_squeeze %180 : memref<1x!tpu.dma_semaphore, #tpu.memory_space<semaphore_mem>> -> memref<!tpu.dma_semaphore, #tpu.memory_space<semaphore_mem>>
    tpu.wait_dma2 semaphore(%181 : memref<!tpu.dma_semaphore, #tpu.memory_space<semaphore_mem>>) src(%arg20 : memref<128x512xbf16, #tpu.memory_space<any>>) dst(%arg26 : memref<128x512xbf16, #tpu.memory_space<vmem>>)
    %c0_97 = arith.constant 0 : index
    %c0_98 = arith.constant 0 : index
    %182 = vector.load %arg2[%c0_97, %c0_98] : memref<8x4xf32, #tpu.memory_space<vmem>>, vector<8x4xf32>
    %c0_99 = arith.constant 0 : index
    %c0_100 = arith.constant 0 : index
    %183 = vector.load %arg13[%c0_99, %c0_100] : memref<4x512xf32, #tpu.memory_space<vmem>>, vector<4x512xf32>
    %cst_101 = arith.constant dense<0.000000e+00> : vector<8x512xf32>
    %184 = tpu.matmul %182, %183, %cst_101 {dimension_numbers = #tpu.dot_dimension_numbers<[1], [0], [0], [1], [0, 0, 1, 1], [], []>} : vector<8x4xf32>, vector<4x512xf32>, vector<8x512xf32> -> vector<8x512xf32>
    %c0_102 = arith.constant 0 : index
    %c0_103 = arith.constant 0 : index
    %185 = vector.load %arg3[%c0_102, %c0_103] : memref<8x1xf32, #tpu.memory_space<vmem>>, vector<8x1xf32>
    %c0_104 = arith.constant 0 : index
    %c0_105 = arith.constant 0 : index
    %186 = vector.load %arg14[%c0_104, %c0_105] : memref<1x512xf32, #tpu.memory_space<vmem>>, vector<1x512xf32>
    %187 = vector.broadcast %185 : vector<8x1xf32> to vector<8x512xf32>
    %188 = vector.broadcast %186 : vector<1x512xf32> to vector<8x512xf32>
    %189 = arith.mulf %187, %188 : vector<8x512xf32>
    %190 = arith.addf %184, %189 : vector<8x512xf32>
    %191 = arith.truncf %177 : vector<8x128xf32> to vector<8x128xbf16>
    %c0_106 = arith.constant 0 : index
    %c0_107 = arith.constant 0 : index
    %192 = vector.load %arg25[%c0_106, %c0_107] : memref<128x512xbf16, #tpu.memory_space<vmem>>, vector<128x512xbf16>
    %cst_108 = arith.constant dense<0.000000e+00> : vector<8x512xf32>
    %193 = tpu.matmul %191, %192, %cst_108 {dimension_numbers = #tpu.dot_dimension_numbers<[1], [0], [0], [1], [0, 0, 1, 1], [], []>} : vector<8x128xbf16>, vector<128x512xbf16>, vector<8x512xf32> -> vector<8x512xf32>
    %194 = arith.addf %190, %193 : vector<8x512xf32>
    %c0_109 = arith.constant 0 : index
    %c0_110 = arith.constant 0 : index
    %195 = vector.load %arg15[%c0_109, %c0_110] : memref<1x512xf32, #tpu.memory_space<vmem>>, vector<1x512xf32>
    %196 = vector.broadcast %195 : vector<1x512xf32> to vector<8x512xf32>
    %197 = arith.addf %194, %196 : vector<8x512xf32>
    %198 = arith.truncf %6 : vector<8x32xf32> to vector<8x32xbf16>
    %c0_111 = arith.constant 0 : index
    %c0_112 = arith.constant 0 : index
    %199 = vector.load %arg16[%c0_111, %c0_112] : memref<32x512xbf16, #tpu.memory_space<vmem>>, vector<32x512xbf16>
    %cst_113 = arith.constant dense<0.000000e+00> : vector<8x512xf32>
    %200 = tpu.matmul %198, %199, %cst_113 {dimension_numbers = #tpu.dot_dimension_numbers<[1], [0], [0], [1], [0, 0, 1, 1], [], []>} : vector<8x32xbf16>, vector<32x512xbf16>, vector<8x512xf32> -> vector<8x512xf32>
    %c0_114 = arith.constant 0 : index
    %c0_115 = arith.constant 0 : index
    %201 = vector.load %arg17[%c0_114, %c0_115] : memref<1x512xf32, #tpu.memory_space<vmem>>, vector<1x512xf32>
    %202 = vector.broadcast %201 : vector<1x512xf32> to vector<8x512xf32>
    %203 = arith.addf %200, %202 : vector<8x512xf32>
    %204 = arith.negf %203 : vector<8x512xf32>
    %205 = math.exp %204 : vector<8x512xf32>
    %cst_116 = arith.constant 1.000000e+00 : f32
    %206 = vector.broadcast %cst_116 : f32 to vector<8x512xf32>
    %207 = arith.addf %206, %205 : vector<8x512xf32>
    %208 = arith.divf %206, %207 : vector<8x512xf32>
    %c0_117 = arith.constant 0 : index
    %c0_118 = arith.constant 0 : index
    %209 = vector.load %arg26[%c0_117, %c0_118] : memref<128x512xbf16, #tpu.memory_space<vmem>>, vector<128x512xbf16>
    %cst_119 = arith.constant 0.000000e+00 : f32
    %210 = vector.broadcast %cst_119 : f32 to vector<2x128xf32>
    %cst_120 = arith.constant 0.000000e+00 : f32
    %211 = vector.broadcast %cst_120 : f32 to vector<2x128xf32>
    %212 = vector.extract_strided_slice %197 {offsets = [0, 0], sizes = [2, 512], strides = [1, 1]} : vector<8x512xf32> to vector<2x512xf32>
    %213 = arith.truncf %210 : vector<2x128xf32> to vector<2x128xbf16>
    %cst_121 = arith.constant dense<0.000000e+00> : vector<2x512xf32>
    %214 = tpu.matmul %213, %209, %cst_121 {dimension_numbers = #tpu.dot_dimension_numbers<[1], [0], [0], [1], [0, 0, 1, 1], [], []>} : vector<2x128xbf16>, vector<128x512xbf16>, vector<2x512xf32> -> vector<2x512xf32>
    %215 = arith.addf %212, %214 : vector<2x512xf32>
    %216 = vector.extract_strided_slice %208 {offsets = [0, 0], sizes = [2, 512], strides = [1, 1]} : vector<8x512xf32> to vector<2x512xf32>
    %217 = vector.extract_strided_slice %215 {offsets = [0, 0], sizes = [2, 128], strides = [1, 1]} : vector<2x512xf32> to vector<2x128xf32>
    %218 = arith.negf %217 : vector<2x128xf32>
    %219 = math.exp %218 : vector<2x128xf32>
    %cst_122 = arith.constant 1.000000e+00 : f32
    %220 = vector.broadcast %cst_122 : f32 to vector<2x128xf32>
    %221 = arith.addf %220, %219 : vector<2x128xf32>
    %222 = arith.divf %220, %221 : vector<2x128xf32>
    %223 = vector.extract_strided_slice %216 {offsets = [0, 0], sizes = [2, 128], strides = [1, 1]} : vector<2x512xf32> to vector<2x128xf32>
    %224 = arith.mulf %222, %223 : vector<2x128xf32>
    %225 = vector.extract_strided_slice %215 {offsets = [0, 128], sizes = [2, 128], strides = [1, 1]} : vector<2x512xf32> to vector<2x128xf32>
    %226 = arith.negf %225 : vector<2x128xf32>
    %227 = math.exp %226 : vector<2x128xf32>
    %cst_123 = arith.constant 1.000000e+00 : f32
    %228 = vector.broadcast %cst_123 : f32 to vector<2x128xf32>
    %229 = arith.addf %228, %227 : vector<2x128xf32>
    %230 = arith.divf %228, %229 : vector<2x128xf32>
    %231 = vector.extract_strided_slice %216 {offsets = [0, 128], sizes = [2, 128], strides = [1, 1]} : vector<2x512xf32> to vector<2x128xf32>
    %232 = arith.mulf %230, %231 : vector<2x128xf32>
    %233 = vector.extract_strided_slice %215 {offsets = [0, 256], sizes = [2, 128], strides = [1, 1]} : vector<2x512xf32> to vector<2x128xf32>
    %234 = math.tanh %233 : vector<2x128xf32>
    %235 = vector.extract_strided_slice %215 {offsets = [0, 384], sizes = [2, 128], strides = [1, 1]} : vector<2x512xf32> to vector<2x128xf32>
    %236 = arith.negf %235 : vector<2x128xf32>
    %237 = math.exp %236 : vector<2x128xf32>
    %cst_124 = arith.constant 1.000000e+00 : f32
    %238 = vector.broadcast %cst_124 : f32 to vector<2x128xf32>
    %239 = arith.addf %238, %237 : vector<2x128xf32>
    %240 = arith.divf %238, %239 : vector<2x128xf32>
    %241 = vector.extract_strided_slice %216 {offsets = [0, 384], sizes = [2, 128], strides = [1, 1]} : vector<2x512xf32> to vector<2x128xf32>
    %242 = arith.mulf %240, %241 : vector<2x128xf32>
    %243 = arith.mulf %232, %211 : vector<2x128xf32>
    %244 = arith.mulf %224, %234 : vector<2x128xf32>
    %245 = arith.addf %243, %244 : vector<2x128xf32>
    %246 = math.tanh %245 : vector<2x128xf32>
    %247 = arith.mulf %242, %246 : vector<2x128xf32>
    %248 = vector.extract_strided_slice %197 {offsets = [2, 0], sizes = [2, 512], strides = [1, 1]} : vector<8x512xf32> to vector<2x512xf32>
    %249 = arith.truncf %247 : vector<2x128xf32> to vector<2x128xbf16>
    %cst_125 = arith.constant dense<0.000000e+00> : vector<2x512xf32>
    %250 = tpu.matmul %249, %209, %cst_125 {dimension_numbers = #tpu.dot_dimension_numbers<[1], [0], [0], [1], [0, 0, 1, 1], [], []>} : vector<2x128xbf16>, vector<128x512xbf16>, vector<2x512xf32> -> vector<2x512xf32>
    %251 = arith.addf %248, %250 : vector<2x512xf32>
    %252 = vector.extract_strided_slice %208 {offsets = [2, 0], sizes = [2, 512], strides = [1, 1]} : vector<8x512xf32> to vector<2x512xf32>
    %253 = vector.extract_strided_slice %251 {offsets = [0, 0], sizes = [2, 128], strides = [1, 1]} : vector<2x512xf32> to vector<2x128xf32>
    %254 = arith.negf %253 : vector<2x128xf32>
    %255 = math.exp %254 : vector<2x128xf32>
    %cst_126 = arith.constant 1.000000e+00 : f32
    %256 = vector.broadcast %cst_126 : f32 to vector<2x128xf32>
    %257 = arith.addf %256, %255 : vector<2x128xf32>
    %258 = arith.divf %256, %257 : vector<2x128xf32>
    %259 = vector.extract_strided_slice %252 {offsets = [0, 0], sizes = [2, 128], strides = [1, 1]} : vector<2x512xf32> to vector<2x128xf32>
    %260 = arith.mulf %258, %259 : vector<2x128xf32>
    %261 = vector.extract_strided_slice %251 {offsets = [0, 128], sizes = [2, 128], strides = [1, 1]} : vector<2x512xf32> to vector<2x128xf32>
    %262 = arith.negf %261 : vector<2x128xf32>
    %263 = math.exp %262 : vector<2x128xf32>
    %cst_127 = arith.constant 1.000000e+00 : f32
    %264 = vector.broadcast %cst_127 : f32 to vector<2x128xf32>
    %265 = arith.addf %264, %263 : vector<2x128xf32>
    %266 = arith.divf %264, %265 : vector<2x128xf32>
    %267 = vector.extract_strided_slice %252 {offsets = [0, 128], sizes = [2, 128], strides = [1, 1]} : vector<2x512xf32> to vector<2x128xf32>
    %268 = arith.mulf %266, %267 : vector<2x128xf32>
    %269 = vector.extract_strided_slice %251 {offsets = [0, 256], sizes = [2, 128], strides = [1, 1]} : vector<2x512xf32> to vector<2x128xf32>
    %270 = math.tanh %269 : vector<2x128xf32>
    %271 = vector.extract_strided_slice %251 {offsets = [0, 384], sizes = [2, 128], strides = [1, 1]} : vector<2x512xf32> to vector<2x128xf32>
    %272 = arith.negf %271 : vector<2x128xf32>
    %273 = math.exp %272 : vector<2x128xf32>
    %cst_128 = arith.constant 1.000000e+00 : f32
    %274 = vector.broadcast %cst_128 : f32 to vector<2x128xf32>
    %275 = arith.addf %274, %273 : vector<2x128xf32>
    %276 = arith.divf %274, %275 : vector<2x128xf32>
    %277 = vector.extract_strided_slice %252 {offsets = [0, 384], sizes = [2, 128], strides = [1, 1]} : vector<2x512xf32> to vector<2x128xf32>
    %278 = arith.mulf %276, %277 : vector<2x128xf32>
    %279 = arith.mulf %268, %245 : vector<2x128xf32>
    %280 = arith.mulf %260, %270 : vector<2x128xf32>
    %281 = arith.addf %279, %280 : vector<2x128xf32>
    %282 = math.tanh %281 : vector<2x128xf32>
    %283 = arith.mulf %278, %282 : vector<2x128xf32>
    %284 = vector.extract_strided_slice %197 {offsets = [4, 0], sizes = [2, 512], strides = [1, 1]} : vector<8x512xf32> to vector<2x512xf32>
    %285 = arith.truncf %283 : vector<2x128xf32> to vector<2x128xbf16>
    %cst_129 = arith.constant dense<0.000000e+00> : vector<2x512xf32>
    %286 = tpu.matmul %285, %209, %cst_129 {dimension_numbers = #tpu.dot_dimension_numbers<[1], [0], [0], [1], [0, 0, 1, 1], [], []>} : vector<2x128xbf16>, vector<128x512xbf16>, vector<2x512xf32> -> vector<2x512xf32>
    %287 = arith.addf %284, %286 : vector<2x512xf32>
    %288 = vector.extract_strided_slice %208 {offsets = [4, 0], sizes = [2, 512], strides = [1, 1]} : vector<8x512xf32> to vector<2x512xf32>
    %289 = vector.extract_strided_slice %287 {offsets = [0, 0], sizes = [2, 128], strides = [1, 1]} : vector<2x512xf32> to vector<2x128xf32>
    %290 = arith.negf %289 : vector<2x128xf32>
    %291 = math.exp %290 : vector<2x128xf32>
    %cst_130 = arith.constant 1.000000e+00 : f32
    %292 = vector.broadcast %cst_130 : f32 to vector<2x128xf32>
    %293 = arith.addf %292, %291 : vector<2x128xf32>
    %294 = arith.divf %292, %293 : vector<2x128xf32>
    %295 = vector.extract_strided_slice %288 {offsets = [0, 0], sizes = [2, 128], strides = [1, 1]} : vector<2x512xf32> to vector<2x128xf32>
    %296 = arith.mulf %294, %295 : vector<2x128xf32>
    %297 = vector.extract_strided_slice %287 {offsets = [0, 128], sizes = [2, 128], strides = [1, 1]} : vector<2x512xf32> to vector<2x128xf32>
    %298 = arith.negf %297 : vector<2x128xf32>
    %299 = math.exp %298 : vector<2x128xf32>
    %cst_131 = arith.constant 1.000000e+00 : f32
    %300 = vector.broadcast %cst_131 : f32 to vector<2x128xf32>
    %301 = arith.addf %300, %299 : vector<2x128xf32>
    %302 = arith.divf %300, %301 : vector<2x128xf32>
    %303 = vector.extract_strided_slice %288 {offsets = [0, 128], sizes = [2, 128], strides = [1, 1]} : vector<2x512xf32> to vector<2x128xf32>
    %304 = arith.mulf %302, %303 : vector<2x128xf32>
    %305 = vector.extract_strided_slice %287 {offsets = [0, 256], sizes = [2, 128], strides = [1, 1]} : vector<2x512xf32> to vector<2x128xf32>
    %306 = math.tanh %305 : vector<2x128xf32>
    %307 = vector.extract_strided_slice %287 {offsets = [0, 384], sizes = [2, 128], strides = [1, 1]} : vector<2x512xf32> to vector<2x128xf32>
    %308 = arith.negf %307 : vector<2x128xf32>
    %309 = math.exp %308 : vector<2x128xf32>
    %cst_132 = arith.constant 1.000000e+00 : f32
    %310 = vector.broadcast %cst_132 : f32 to vector<2x128xf32>
    %311 = arith.addf %310, %309 : vector<2x128xf32>
    %312 = arith.divf %310, %311 : vector<2x128xf32>
    %313 = vector.extract_strided_slice %288 {offsets = [0, 384], sizes = [2, 128], strides = [1, 1]} : vector<2x512xf32> to vector<2x128xf32>
    %314 = arith.mulf %312, %313 : vector<2x128xf32>
    %315 = arith.mulf %304, %281 : vector<2x128xf32>
    %316 = arith.mulf %296, %306 : vector<2x128xf32>
    %317 = arith.addf %315, %316 : vector<2x128xf32>
    %318 = math.tanh %317 : vector<2x128xf32>
    %319 = arith.mulf %314, %318 : vector<2x128xf32>
    %320 = vector.extract_strided_slice %197 {offsets = [6, 0], sizes = [2, 512], strides = [1, 1]} : vector<8x512xf32> to vector<2x512xf32>
    %321 = arith.truncf %319 : vector<2x128xf32> to vector<2x128xbf16>
    %cst_133 = arith.constant dense<0.000000e+00> : vector<2x512xf32>
    %322 = tpu.matmul %321, %209, %cst_133 {dimension_numbers = #tpu.dot_dimension_numbers<[1], [0], [0], [1], [0, 0, 1, 1], [], []>} : vector<2x128xbf16>, vector<128x512xbf16>, vector<2x512xf32> -> vector<2x512xf32>
    %323 = arith.addf %320, %322 : vector<2x512xf32>
    %324 = vector.extract_strided_slice %208 {offsets = [6, 0], sizes = [2, 512], strides = [1, 1]} : vector<8x512xf32> to vector<2x512xf32>
    %325 = vector.extract_strided_slice %323 {offsets = [0, 0], sizes = [2, 128], strides = [1, 1]} : vector<2x512xf32> to vector<2x128xf32>
    %326 = arith.negf %325 : vector<2x128xf32>
    %327 = math.exp %326 : vector<2x128xf32>
    %cst_134 = arith.constant 1.000000e+00 : f32
    %328 = vector.broadcast %cst_134 : f32 to vector<2x128xf32>
    %329 = arith.addf %328, %327 : vector<2x128xf32>
    %330 = arith.divf %328, %329 : vector<2x128xf32>
    %331 = vector.extract_strided_slice %324 {offsets = [0, 0], sizes = [2, 128], strides = [1, 1]} : vector<2x512xf32> to vector<2x128xf32>
    %332 = arith.mulf %330, %331 : vector<2x128xf32>
    %333 = vector.extract_strided_slice %323 {offsets = [0, 128], sizes = [2, 128], strides = [1, 1]} : vector<2x512xf32> to vector<2x128xf32>
    %334 = arith.negf %333 : vector<2x128xf32>
    %335 = math.exp %334 : vector<2x128xf32>
    %cst_135 = arith.constant 1.000000e+00 : f32
    %336 = vector.broadcast %cst_135 : f32 to vector<2x128xf32>
    %337 = arith.addf %336, %335 : vector<2x128xf32>
    %338 = arith.divf %336, %337 : vector<2x128xf32>
    %339 = vector.extract_strided_slice %324 {offsets = [0, 128], sizes = [2, 128], strides = [1, 1]} : vector<2x512xf32> to vector<2x128xf32>
    %340 = arith.mulf %338, %339 : vector<2x128xf32>
    %341 = vector.extract_strided_slice %323 {offsets = [0, 256], sizes = [2, 128], strides = [1, 1]} : vector<2x512xf32> to vector<2x128xf32>
    %342 = math.tanh %341 : vector<2x128xf32>
    %343 = vector.extract_strided_slice %323 {offsets = [0, 384], sizes = [2, 128], strides = [1, 1]} : vector<2x512xf32> to vector<2x128xf32>
    %344 = arith.negf %343 : vector<2x128xf32>
    %345 = math.exp %344 : vector<2x128xf32>
    %cst_136 = arith.constant 1.000000e+00 : f32
    %346 = vector.broadcast %cst_136 : f32 to vector<2x128xf32>
    %347 = arith.addf %346, %345 : vector<2x128xf32>
    %348 = arith.divf %346, %347 : vector<2x128xf32>
    %349 = vector.extract_strided_slice %324 {offsets = [0, 384], sizes = [2, 128], strides = [1, 1]} : vector<2x512xf32> to vector<2x128xf32>
    %350 = arith.mulf %348, %349 : vector<2x128xf32>
    %351 = arith.mulf %340, %317 : vector<2x128xf32>
    %352 = arith.mulf %332, %342 : vector<2x128xf32>
    %353 = arith.addf %351, %352 : vector<2x128xf32>
    %354 = math.tanh %353 : vector<2x128xf32>
    %355 = arith.mulf %350, %354 : vector<2x128xf32>
    %356 = tpu.concatenate %247, %283, %319, %355 in 0 : vector<2x128xf32>, vector<2x128xf32>, vector<2x128xf32>, vector<2x128xf32> -> vector<8x128xf32>
    %c0_137 = arith.constant 0 : index
    %c0_138 = arith.constant 0 : index
    %357 = vector.load %arg21[%c0_137, %c0_138] : memref<8x128xf32, #tpu.memory_space<vmem>>, vector<8x128xf32>
    tpu.vector_store %arg21[%c0_137, %c0_138], %356 {strides = array<i32>} : memref<8x128xf32, #tpu.memory_space<vmem>>, vector<8x128xf32>,
    %c0_139 = arith.constant 0 : index
    %c0_140 = arith.constant 0 : index
    %358 = vector.load %arg22[%c0_139, %c0_140] : memref<2x128xf32, #tpu.memory_space<vmem>>, vector<2x128xf32>
    tpu.vector_store %arg22[%c0_139, %c0_140], %355 {strides = array<i32>} : memref<2x128xf32, #tpu.memory_space<vmem>>, vector<2x128xf32>,
    %c0_141 = arith.constant 0 : index
    %c0_142 = arith.constant 0 : index
    %359 = vector.load %arg23[%c0_141, %c0_142] : memref<2x128xf32, #tpu.memory_space<vmem>>, vector<2x128xf32>
    tpu.vector_store %arg23[%c0_141, %c0_142], %353 {strides = array<i32>} : memref<2x128xf32, #tpu.memory_space<vmem>>, vector<2x128xf32>,
    return
  }
}

</mosaic_0001>

<bundles_post_ra>
// kernel: modulated_memory_forward.1
= control target key start
LH: loop header
LB: loop body
LE: loop exit
PB: predicated region body
PF: predicated region fallthrough
CT: control target
= control target key end

     0   :  { %s7229_s0 = inlined_call_operand.vmem [shape: f32[8,8,128], index: 0, kind: input, shape index: {}]   ;;  %s7230_s1 = inlined_call_operand.vmem [shape: f32[8,32], index: 1, kind: input, shape index: {}]   ;;  %s7231_s2 = inlined_call_operand.vmem [shape: f32[8,4], index: 2, kind: input, shape index: {}]   ;;  %s7232_s3 = inlined_call_operand.vmem [shape: f32[8,1], index: 3, kind: input, shape index: {}]   ;;  %s7233_s4 = inlined_call_operand.vmem [shape: bf16[2,384,128], index: 4, kind: input, shape index: {}]   ;;  %s7234_s5 = inlined_call_operand.vmem [shape: f32[2,1,128], index: 5, kind: input, shape index: {}]   ;;  %s7235_s6 = inlined_call_operand.vmem [shape: bf16[2,384,128], index: 6, kind: input, shape index: {}]   ;;  %s7236_s7 = inlined_call_operand.vmem [shape: f32[2,1,128], index: 7, kind: input, shape index: {}]   ;;  %s7237_s8 = inlined_call_operand.vmem [shape: f32[2,32,128], index: 8, kind: input, shape index: {}]   ;;  %s7238_s9 = inlined_call_operand.vmem [shape: f32[2,1,128], index: 9, kind: input, shape index: {}]   ;;  %s7239_s10 = inlined_call_operand.vmem [shape: f32[2,32,128], index: 10, kind: input, shape index: {}]   ;;  %s7240_s11 = inlined_call_operand.vmem [shape: f32[2,1,128], index: 11, kind: input, shape index: {}]   ;;  %s7241_s12 = inlined_call_operand.vmem [shape: f32[1,128], index: 12, kind: input, shape index: {}]   ;;  %s7242_s13 = inlined_call_operand.vmem [shape: f32[4,512], index: 13, kind: input, shape index: {}]   ;;  %s7243_s14 = inlined_call_operand.vmem [shape: f32[1,512], index: 14, kind: input, shape index: {}]   ;;  %s7244_s15 = inlined_call_operand.vmem [shape: f32[1,512], index: 15, kind: input, shape index: {}]   ;;  %s7245_s16 = inlined_call_operand.vmem [shape: bf16[32,512], index: 16, kind: input, shape index: {}]   ;;  %s7246_s17 = inlined_call_operand.vmem [shape: f32[1,512], index: 17, kind: input, shape index: {}]   ;;  %s7247_s18 = inlined_call_operand.vmem [shape: bf16[8,128,128], index: 18, kind: input, shape index: {}]   ;;  %s7248_s19 = inlined_call_operand.vmem [shape: bf16[128,512], index: 19, kind: input, shape index: {}]   ;;  %s7249_s20 = inlined_call_operand.vmem [shape: bf16[128,512], index: 20, kind: input, shape index: {}]   ;;  %s7250_s21 = inlined_call_operand.hbm [shape: f32[8,128], index: 21, kind: output, shape index: {0}]   ;;  %s7251_s22 = inlined_call_operand.hbm [shape: f32[2,128], index: 22, kind: output, shape index: {1}]   ;;  %s7252_s23 = inlined_call_operand.hbm [shape: f32[2,128], index: 23, kind: output, shape index: {2}]  }
   0x1   :  { %7265 = sst [smem:[#allocation60_spill]] %s7229_s0 }
   0x2   :  { %7266 = sst [smem:[#allocation61_spill]] %s7230_s1 }
   0x3   :  { %7267 = sst [smem:[#allocation62_spill]] %s7231_s2 }
   0x4   :  { %7268 = sst [smem:[#allocation63_spill]] %s7232_s3 }
   0x5   :  { %7269 = sst [smem:[#allocation64_spill]] %s7233_s4 }
   0x6   :  { %7270 = sst [smem:[#allocation65_spill]] %s7234_s5 }
   0x7   :  { %7271 = sst [smem:[#allocation66_spill]] %s7235_s6 }
   0x8   :  { %7272 = sst [smem:[#allocation67_spill]] %s7236_s7 }
   0x9   :  { %29 = vsyncpa [#allocation7], 0 }
   0xa   :  { %30 = vsyncpa [#allocation9], 0  ;;  %v5481_v0 = vld [vmem:[%s7247_s18] sm:$0xff]  ;;  %v5486_v1 = vld [vmem:[%s7247_s18 + $0x8] sm:$0xff] }
   0xb   :  { %v5491_v2 = vld [vmem:[%s7247_s18 + $0x10] sm:$0xff]  ;;  %v5496_v3 = vld [vmem:[%s7247_s18 + $0x18] sm:$0xff]  ;;  %v5501_v4 = vld [vmem:[%s7247_s18 + $0x20] sm:$0xff] }
   0xc   :  { %v5506_v5 = vld [vmem:[%s7247_s18 + $0x28] sm:$0xff]  ;;  %v5511_v6 = vld [vmem:[%s7247_s18 + $0x30] sm:$0xff]  ;;  %v5516_v7 = vld [vmem:[%s7247_s18 + $0x38] sm:$0xff] }
   0xd   :  { %v5521_v8 = vld [vmem:[%s7247_s18 + $0x40] sm:$0xff]  ;;  %v5526_v9 = vld [vmem:[%s7247_s18 + $0x48] sm:$0xff]  ;;  %v5531_v10 = vld [vmem:[%s7247_s18 + $0x50] sm:$0xff] }
   0xe   :  { %v5536_v11 = vld [vmem:[%s7247_s18 + $0x58] sm:$0xff]  ;;  %v5541_v12 = vld [vmem:[%s7247_s18 + $0x60] sm:$0xff]  ;;  %v5546_v13 = vld [vmem:[%s7247_s18 + $0x68] sm:$0xff] }
   0xf   :  { %v5551_v14 = vld [vmem:[%s7247_s18 + $0x70] sm:$0xff]  ;;  %v5556_v15 = vld [vmem:[%s7247_s18 + $0x78] sm:$0xff]  ;;  %v5561_v16 = vld [vmem:[%s7247_s18 + $0x80] sm:$0xff] }
  0x10   :  { %v5566_v17 = vld [vmem:[%s7247_s18 + $0x88] sm:$0xff]  ;;  %v5571_v18 = vld [vmem:[%s7247_s18 + $0x90] sm:$0xff]  ;;  %v5576_v19 = vld [vmem:[%s7247_s18 + $0x98] sm:$0xff] }
  0x11   :  { %v5581_v20 = vld [vmem:[%s7247_s18 + $0xa0] sm:$0xff]  ;;  %v5586_v21 = vld [vmem:[%s7247_s18 + $0xa8] sm:$0xff]  ;;  %v5591_v22 = vld [vmem:[%s7247_s18 + $0xb0] sm:$0xff] }
  0x12   :  { %7273 = vst [vmem:[#allocation19_spill] sm:$0xff] %v5581_v20  ;;  %7274 = vst [vmem:[#allocation20_spill] sm:$0xff] %v5586_v21  ;;  %v5596_v23 = vld [vmem:[%s7247_s18 + $0xb8] sm:$0xff]  ;;  %v5601_v24 = vld [vmem:[%s7247_s18 + $0xc0] sm:$0xff] }
  0x13   :  { %7275 = vst [vmem:[#allocation21_spill] sm:$0xff] %v5591_v22  ;;  %7276 = vst [vmem:[#allocation22_spill] sm:$0xff] %v5596_v23  ;;  %v5606_v25 = vld [vmem:[%s7247_s18 + $0xc8] sm:$0xff]  ;;  %v5611_v26 = vld [vmem:[%s7247_s18 + $0xd0] sm:$0xff] }
  0x14   :  { %v5616_v27 = vld [vmem:[%s7247_s18 + $0xd8] sm:$0xff]  ;;  %v5621_v28 = vld [vmem:[%s7247_s18 + $0xe0] sm:$0xff]  ;;  %v5626_v29 = vld [vmem:[%s7247_s18 + $0xe8] sm:$0xff] }
  0x15   :  { %7277 = vst [vmem:[#allocation23_spill] sm:$0xff] %v5616_v27  ;;  %7278 = vst [vmem:[#allocation24_spill] sm:$0xff] %v5621_v28  ;;  %v5631_v30 = vld [vmem:[%s7247_s18 + $0xf0] sm:$0xff]  ;;  %v5636_v31 = vld [vmem:[%s7247_s18 + $0xf8] sm:$0xff] }
  0x16   :  { %7279 = vst [vmem:[#allocation25_spill] sm:$0xff] %v5626_v29  ;;  %7280 = vst [vmem:[#allocation26_spill] sm:$0xff] %v5631_v30  ;;  %v5641_v32 = vld [vmem:[%s7247_s18 + $0x100] sm:$0xff]  ;;  %v5646_v33 = vld [vmem:[%s7247_s18 + $0x108] sm:$0xff] }
  0x17   :  { %7281 = vst [vmem:[#allocation27_spill] sm:$0xff] %v5636_v31  ;;  %7282 = vst [vmem:[#allocation28_spill] sm:$0xff] %v5641_v32  ;;  %v5651_v34 = vld [vmem:[%s7247_s18 + $0x110] sm:$0xff]  ;;  %v5656_v35 = vld [vmem:[%s7247_s18 + $0x118] sm:$0xff] }
  0x18   :  { %7283 = vst [vmem:[#allocation29_spill] sm:$0xff] %v5646_v33  ;;  %7284 = vst [vmem:[#allocation30_spill] sm:$0xff] %v5651_v34  ;;  %v5661_v36 = vld [vmem:[%s7247_s18 + $0x120] sm:$0xff]  ;;  %v5666_v37 = vld [vmem:[%s7247_s18 + $0x128] sm:$0xff] }
  0x19   :  { %7285 = vst [vmem:[#allocation31_spill] sm:$0xff] %v5656_v35  ;;  %7286 = vst [vmem:[#allocation32_spill] sm:$0xff] %v5661_v36  ;;  %v5671_v38 = vld [vmem:[%s7247_s18 + $0x130] sm:$0xff]  ;;  %v5676_v39 = vld [vmem:[%s7247_s18 + $0x138] sm:$0xff] }
  0x1a   :  { %7287 = vst [vmem:[#allocation33_spill] sm:$0xff] %v5666_v37  ;;  %7288 = vst [vmem:[#allocation34_spill] sm:$0xff] %v5671_v38  ;;  %v5681_v40 = vld [vmem:[%s7247_s18 + $0x140] sm:$0xff]  ;;  %v5686_v41 = vld [vmem:[%s7247_s18 + $0x148] sm:$0xff] }
  0x1b   :  { %7289 = vst [vmem:[#allocation35_spill] sm:$0xff] %v5676_v39  ;;  %7290 = vst [vmem:[#allocation36_spill] sm:$0xff] %v5681_v40  ;;  %v5691_v42 = vld [vmem:[%s7247_s18 + $0x150] sm:$0xff]  ;;  %v5696_v43 = vld [vmem:[%s7247_s18 + $0x158] sm:$0xff] }
  0x1c   :  { %7291 = vst [vmem:[#allocation37_spill] sm:$0xff] %v5686_v41  ;;  %7292 = vst [vmem:[#allocation38_spill] sm:$0xff] %v5691_v42  ;;  %v5701_v44 = vld [vmem:[%s7247_s18 + $0x160] sm:$0xff]  ;;  %v5706_v45 = vld [vmem:[%s7247_s18 + $0x168] sm:$0xff] }
  0x1d   :  { %7293 = vst [vmem:[#allocation39_spill] sm:$0xff] %v5696_v43  ;;  %7294 = vst [vmem:[#allocation40_spill] sm:$0xff] %v5701_v44  ;;  %v5711_v46 = vld [vmem:[%s7247_s18 + $0x170] sm:$0xff]  ;;  %v5716_v47 = vld [vmem:[%s7247_s18 + $0x178] sm:$0xff] }
  0x1e   :  { %7295 = vst [vmem:[#allocation41_spill] sm:$0xff] %v5706_v45  ;;  %7296 = vst [vmem:[#allocation42_spill] sm:$0xff] %v5711_v46  ;;  %v5721_v48 = vld [vmem:[%s7247_s18 + $0x180] sm:$0xff]  ;;  %v5726_v49 = vld [vmem:[%s7247_s18 + $0x188] sm:$0xff] }
  0x1f   :  { %7297 = vst [vmem:[#allocation43_spill] sm:$0xff] %v5716_v47  ;;  %7298 = vst [vmem:[#allocation44_spill] sm:$0xff] %v5721_v48  ;;  %v5731_v50 = vld [vmem:[%s7247_s18 + $0x190] sm:$0xff]  ;;  %v5736_v51 = vld [vmem:[%s7247_s18 + $0x198] sm:$0xff] }
  0x20   :  { %7299 = vst [vmem:[#allocation45_spill] sm:$0xff] %v5726_v49  ;;  %7300 = vst [vmem:[#allocation46_spill] sm:$0xff] %v5731_v50  ;;  %v5741_v52 = vld [vmem:[%s7247_s18 + $0x1a0] sm:$0xff]  ;;  %v5746_v53 = vld [vmem:[%s7247_s18 + $0x1a8] sm:$0xff] }
  0x21   :  { %7301 = vst [vmem:[#allocation47_spill] sm:$0xff] %v5736_v51  ;;  %7302 = vst [vmem:[#allocation48_spill] sm:$0xff] %v5741_v52  ;;  %v5751_v54 = vld [vmem:[%s7247_s18 + $0x1b0] sm:$0xff]  ;;  %v5756_v55 = vld [vmem:[%s7247_s18 + $0x1b8] sm:$0xff] }
  0x22   :  { %7303 = vst [vmem:[#allocation49_spill] sm:$0xff] %v5746_v53  ;;  %7304 = vst [vmem:[#allocation50_spill] sm:$0xff] %v5751_v54  ;;  %v5761_v56 = vld [vmem:[%s7247_s18 + $0x1c0] sm:$0xff]  ;;  %v5766_v57 = vld [vmem:[%s7247_s18 + $0x1c8] sm:$0xff] }
  0x23   :  { %7305 = vst [vmem:[#allocation51_spill] sm:$0xff] %v5756_v55  ;;  %7306 = vst [vmem:[#allocation52_spill] sm:$0xff] %v5761_v56  ;;  %v5771_v58 = vld [vmem:[%s7247_s18 + $0x1d0] sm:$0xff]  ;;  %v5776_v59 = vld [vmem:[%s7247_s18 + $0x1d8] sm:$0xff] }
  0x24   :  { %7307 = vst [vmem:[#allocation53_spill] sm:$0xff] %v5766_v57  ;;  %7308 = vst [vmem:[#allocation54_spill] sm:$0xff] %v5771_v58  ;;  %v5781_v60 = vld [vmem:[%s7247_s18 + $0x1e0] sm:$0xff]  ;;  %v5786_v61 = vld [vmem:[%s7247_s18 + $0x1e8] sm:$0xff] }
  0x25   :  { %7309 = vst [vmem:[#allocation55_spill] sm:$0xff] %v5776_v59  ;;  %7310 = vst [vmem:[#allocation56_spill] sm:$0xff] %v5781_v60  ;;  %v5791_v62 = vld [vmem:[%s7247_s18 + $0x1f0] sm:$0xff]  ;;  %v5796_v63 = vld [vmem:[%s7247_s18 + $0x1f8] sm:$0xff] }
  0x26   :  { %7311 = vst [vmem:[#allocation57_spill] sm:$0xff] %v5786_v61  ;;  %7312 = vst [vmem:[#allocation58_spill] sm:$0xff] %v5791_v62 }
  0x27   :  { %7313 = vst [vmem:[#allocation59_spill] sm:$0xff] %v5796_v63 }
  0x28   :  { %235 = vsyncadd [#allocation5], 8192  ;;  %v254_v55 = vld [vmem:[%s7248_s19] sm:$0xf]  ;;  %v256_v54 = vld [vmem:[%s7248_s19 + $0x10] sm:$0xf] }
  0x29   :  { %255 = vst [vmem:[#allocation3] sm:$0xf] %v254_v55  ;;  %257 = vst [vmem:[#allocation3 + $0x4] sm:$0xf] %v256_v54  ;;  %v258_v62 = vld [vmem:[%s7248_s19 + $0x4] sm:$0xf] }
  0x2a   :  { %v260_v61 = vld [vmem:[%s7248_s19 + $0x14] sm:$0xf]  ;;  %v262_v63 = vld [vmem:[%s7248_s19 + $0x8] sm:$0xf]  ;;  %259 = vst [vmem:[#allocation3 + $0x8] sm:$0xf] %v258_v62 }
  0x2b   :  { %261 = vst [vmem:[#allocation3 + $0xc] sm:$0xf] %v260_v61  ;;  %263 = vst [vmem:[#allocation3 + $0x10] sm:$0xf] %v262_v63  ;;  %v264_v55 = vld [vmem:[%s7248_s19 + $0x18] sm:$0xf] }
  0x2c   :  { %v266_v54 = vld [vmem:[%s7248_s19 + $0xc] sm:$0xf]  ;;  %v268_v53 = vld [vmem:[%s7248_s19 + $0x1c] sm:$0xff]   ;;  %265 = vst [vmem:[#allocation3 + $0x14] sm:$0xf] %v264_v55 }
  0x2d   :  { %267 = vst [vmem:[#allocation3 + $0x18] sm:$0xf] %v266_v54  ;;  %269 = vst [vmem:[#allocation3 + $0x1c] sm:$0xff] %v268_v53   ;;  %v272_v61 = vld [vmem:[%s7248_s19 + $0x30] sm:$0xf] }
  0x2e   :  { %v274_v62 = vld [vmem:[%s7248_s19 + $0x24] sm:$0xf]  ;;  %v276_v63 = vld [vmem:[%s7248_s19 + $0x34] sm:$0xf]  ;;  %273 = vst [vmem:[#allocation3 + $0x24] sm:$0xf] %v272_v61 }
  0x2f   :  { %275 = vst [vmem:[#allocation3 + $0x28] sm:$0xf] %v274_v62  ;;  %277 = vst [vmem:[#allocation3 + $0x2c] sm:$0xf] %v276_v63  ;;  %v278_v55 = vld [vmem:[%s7248_s19 + $0x28] sm:$0xf] }
  0x30   :  { %v280_v53 = vld [vmem:[%s7248_s19 + $0x38] sm:$0xf]  ;;  %v282_v54 = vld [vmem:[%s7248_s19 + $0x2c] sm:$0xf]  ;;  %279 = vst [vmem:[#allocation3 + $0x30] sm:$0xf] %v278_v55 }
  0x31   :  { %281 = vst [vmem:[#allocation3 + $0x34] sm:$0xf] %v280_v53  ;;  %283 = vst [vmem:[#allocation3 + $0x38] sm:$0xf] %v282_v54  ;;  %v284_v61 = vld [vmem:[%s7248_s19 + $0x3c] sm:$0xff]  }
  0x32   :  { %v288_v62 = vld [vmem:[%s7248_s19 + $0x50] sm:$0xf]  ;;  %v290_v63 = vld [vmem:[%s7248_s19 + $0x44] sm:$0xf]  ;;  %285 = vst [vmem:[#allocation3 + $0x3c] sm:$0xff] %v284_v61  }
  0x33   :  { %289 = vst [vmem:[#allocation3 + $0x44] sm:$0xf] %v288_v62  ;;  %291 = vst [vmem:[#allocation3 + $0x48] sm:$0xf] %v290_v63  ;;  %v292_v55 = vld [vmem:[%s7248_s19 + $0x54] sm:$0xf] }
  0x34   :  { %v294_v53 = vld [vmem:[%s7248_s19 + $0x48] sm:$0xf]  ;;  %v296_v54 = vld [vmem:[%s7248_s19 + $0x58] sm:$0xf]  ;;  %293 = vst [vmem:[#allocation3 + $0x4c] sm:$0xf] %v292_v55 }
  0x35   :  { %295 = vst [vmem:[#allocation3 + $0x50] sm:$0xf] %v294_v53  ;;  %297 = vst [vmem:[#allocation3 + $0x54] sm:$0xf] %v296_v54  ;;  %v298_v61 = vld [vmem:[%s7248_s19 + $0x4c] sm:$0xf] }
  0x36   :  { %v300_v62 = vld [vmem:[%s7248_s19 + $0x5c] sm:$0xff]   ;;  %v304_v63 = vld [vmem:[%s7248_s19 + $0x70] sm:$0xf]  ;;  %299 = vst [vmem:[#allocation3 + $0x58] sm:$0xf] %v298_v61 }
  0x37   :  { %301 = vst [vmem:[#allocation3 + $0x5c] sm:$0xff] %v300_v62   ;;  %305 = vst [vmem:[#allocation3 + $0x64] sm:$0xf] %v304_v63  ;;  %v306_v55 = vld [vmem:[%s7248_s19 + $0x64] sm:$0xf]  ;;  %v316_v63 = vld [vmem:[%s7248_s19 + $0x7c] sm:$0xff]  }
  0x38   :  { %v308_v53 = vld [vmem:[%s7248_s19 + $0x74] sm:$0xf]  ;;  %v310_v54 = vld [vmem:[%s7248_s19 + $0x68] sm:$0xf]  ;;  %307 = vst [vmem:[#allocation3 + $0x68] sm:$0xf] %v306_v55 }
  0x39   :  { %309 = vst [vmem:[#allocation3 + $0x6c] sm:$0xf] %v308_v53  ;;  %311 = vst [vmem:[#allocation3 + $0x70] sm:$0xf] %v310_v54  ;;  %v312_v61 = vld [vmem:[%s7248_s19 + $0x78] sm:$0xf] }
  0x3a   :  { %v314_v62 = vld [vmem:[%s7248_s19 + $0x6c] sm:$0xf]  ;;  %313 = vst [vmem:[#allocation3 + $0x74] sm:$0xf] %v312_v61  ;;  %317 = vst [vmem:[#allocation3 + $0x7c] sm:$0xff] %v316_v63  }
  0x3b   :  { %315 = vst [vmem:[#allocation3 + $0x78] sm:$0xf] %v314_v62  ;;  %v320_v55 = vld [vmem:[%s7248_s19 + $0x90] sm:$0xf]  ;;  %v322_v53 = vld [vmem:[%s7248_s19 + $0x84] sm:$0xf] }
  0x3c   :  { %v324_v54 = vld [vmem:[%s7248_s19 + $0x94] sm:$0xf]  ;;  %321 = vst [vmem:[#allocation3 + $0x84] sm:$0xf] %v320_v55  ;;  %323 = vst [vmem:[#allocation3 + $0x88] sm:$0xf] %v322_v53 }
  0x3d   :  { %325 = vst [vmem:[#allocation3 + $0x8c] sm:$0xf] %v324_v54  ;;  %v326_v61 = vld [vmem:[%s7248_s19 + $0x88] sm:$0xf]  ;;  %v328_v62 = vld [vmem:[%s7248_s19 + $0x98] sm:$0xf] }
  0x3e   :  { %v330_v63 = vld [vmem:[%s7248_s19 + $0x8c] sm:$0xf]  ;;  %327 = vst [vmem:[#allocation3 + $0x90] sm:$0xf] %v326_v61  ;;  %329 = vst [vmem:[#allocation3 + $0x94] sm:$0xf] %v328_v62 }
  0x3f   :  { %331 = vst [vmem:[#allocation3 + $0x98] sm:$0xf] %v330_v63  ;;  %v332_v55 = vld [vmem:[%s7248_s19 + $0x9c] sm:$0xff]   ;;  %v336_v53 = vld [vmem:[%s7248_s19 + $0xb0] sm:$0xf] }
  0x40   :  { %v338_v54 = vld [vmem:[%s7248_s19 + $0xa4] sm:$0xf]  ;;  %333 = vst [vmem:[#allocation3 + $0x9c] sm:$0xff] %v332_v55   ;;  %337 = vst [vmem:[#allocation3 + $0xa4] sm:$0xf] %v336_v53  ;;  %v348_v53 = vld [vmem:[%s7248_s19 + $0xbc] sm:$0xff]  }
  0x41   :  { %339 = vst [vmem:[#allocation3 + $0xa8] sm:$0xf] %v338_v54  ;;  %v340_v61 = vld [vmem:[%s7248_s19 + $0xb4] sm:$0xf]  ;;  %v342_v62 = vld [vmem:[%s7248_s19 + $0xa8] sm:$0xf] }
  0x42   :  { %v344_v63 = vld [vmem:[%s7248_s19 + $0xb8] sm:$0xf]  ;;  %341 = vst [vmem:[#allocation3 + $0xac] sm:$0xf] %v340_v61  ;;  %343 = vst [vmem:[#allocation3 + $0xb0] sm:$0xf] %v342_v62 }
  0x43   :  { %345 = vst [vmem:[#allocation3 + $0xb4] sm:$0xf] %v344_v63  ;;  %v346_v55 = vld [vmem:[%s7248_s19 + $0xac] sm:$0xf]  ;;  %v352_v54 = vld [vmem:[%s7248_s19 + $0xd0] sm:$0xf] }
  0x44   :  { %347 = vst [vmem:[#allocation3 + $0xb8] sm:$0xf] %v346_v55  ;;  %349 = vst [vmem:[#allocation3 + $0xbc] sm:$0xff] %v348_v53   ;;  %v354_v61 = vld [vmem:[%s7248_s19 + $0xc4] sm:$0xf] }
  0x45   :  { %353 = vst [vmem:[#allocation3 + $0xc4] sm:$0xf] %v352_v54  ;;  %v356_v62 = vld [vmem:[%s7248_s19 + $0xd4] sm:$0xf]  ;;  %v358_v63 = vld [vmem:[%s7248_s19 + $0xc8] sm:$0xf] }
  0x46   :  { %355 = vst [vmem:[#allocation3 + $0xc8] sm:$0xf] %v354_v61  ;;  %357 = vst [vmem:[#allocation3 + $0xcc] sm:$0xf] %v356_v62  ;;  %v360_v55 = vld [vmem:[%s7248_s19 + $0xd8] sm:$0xf] }
  0x47   :  { %359 = vst [vmem:[#allocation3 + $0xd0] sm:$0xf] %v358_v63  ;;  %v362_v53 = vld [vmem:[%s7248_s19 + $0xcc] sm:$0xf]  ;;  %v364_v54 = vld [vmem:[%s7248_s19 + $0xdc] sm:$0xff]  }
  0x48   :  { %361 = vst [vmem:[#allocation3 + $0xd4] sm:$0xf] %v360_v55  ;;  %363 = vst [vmem:[#allocation3 + $0xd8] sm:$0xf] %v362_v53  ;;  %v368_v61 = vld [vmem:[%s7248_s19 + $0xf0] sm:$0xf] }
  0x49   :  { %365 = vst [vmem:[#allocation3 + $0xdc] sm:$0xff] %v364_v54   ;;  %v370_v62 = vld [vmem:[%s7248_s19 + $0xe4] sm:$0xf]  ;;  %v372_v63 = vld [vmem:[%s7248_s19 + $0xf4] sm:$0xf] }
  0x4a   :  { %369 = vst [vmem:[#allocation3 + $0xe4] sm:$0xf] %v368_v61  ;;  %371 = vst [vmem:[#allocation3 + $0xe8] sm:$0xf] %v370_v62  ;;  %v374_v55 = vld [vmem:[%s7248_s19 + $0xe8] sm:$0xf] }
  0x4b   :  { %373 = vst [vmem:[#allocation3 + $0xec] sm:$0xf] %v372_v63  ;;  %v376_v53 = vld [vmem:[%s7248_s19 + $0xf8] sm:$0xf]  ;;  %v378_v54 = vld [vmem:[%s7248_s19 + $0xec] sm:$0xf] }
  0x4c   :  { %375 = vst [vmem:[#allocation3 + $0xf0] sm:$0xf] %v374_v55  ;;  %377 = vst [vmem:[#allocation3 + $0xf4] sm:$0xf] %v376_v53  ;;  %v380_v61 = vld [vmem:[%s7248_s19 + $0xfc] sm:$0xf] }
  0x4d   :  { %379 = vst [vmem:[#allocation3 + $0xf8] sm:$0xf] %v378_v54  ;;  %381 = vst [vmem:[#allocation3 + $0xfc] sm:$0xf] %v380_v61 }
  0x4e   :  { %540 = vsyncadd [#allocation5 + $0x1], 4096  ;;  %v559_v62 = vld [vmem:[%s7249_s20] sm:$0xf]  ;;  %v561_v63 = vld [vmem:[%s7249_s20 + $0x10] sm:$0xf] }
  0x4f   :  { %560 = vst [vmem:[#allocation4] sm:$0xf] %v559_v62  ;;  %562 = vst [vmem:[#allocation4 + $0x4] sm:$0xf] %v561_v63  ;;  %v563_v55 = vld [vmem:[%s7249_s20 + $0x4] sm:$0xf] }
  0x50   :  { %v565_v53 = vld [vmem:[%s7249_s20 + $0x14] sm:$0xf]  ;;  %v567_v54 = vld [vmem:[%s7249_s20 + $0x8] sm:$0xf]  ;;  %564 = vst [vmem:[#allocation4 + $0x8] sm:$0xf] %v563_v55 }
  0x51   :  { %566 = vst [vmem:[#allocation4 + $0xc] sm:$0xf] %v565_v53  ;;  %568 = vst [vmem:[#allocation4 + $0x10] sm:$0xf] %v567_v54  ;;  %v569_v61 = vld [vmem:[%s7249_s20 + $0x18] sm:$0xf] }
  0x52   :  { %v571_v62 = vld [vmem:[%s7249_s20 + $0xc] sm:$0xf]  ;;  %v573_v63 = vld [vmem:[%s7249_s20 + $0x1c] sm:$0xff]   ;;  %570 = vst [vmem:[#allocation4 + $0x14] sm:$0xf] %v569_v61 }
  0x53   :  { %572 = vst [vmem:[#allocation4 + $0x18] sm:$0xf] %v571_v62  ;;  %574 = vst [vmem:[#allocation4 + $0x1c] sm:$0xff] %v573_v63   ;;  %v577_v55 = vld [vmem:[%s7249_s20 + $0x30] sm:$0xf] }
  0x54   :  { %v579_v53 = vld [vmem:[%s7249_s20 + $0x24] sm:$0xf]  ;;  %v581_v54 = vld [vmem:[%s7249_s20 + $0x34] sm:$0xf]  ;;  %578 = vst [vmem:[#allocation4 + $0x24] sm:$0xf] %v577_v55 }
  0x55   :  { %580 = vst [vmem:[#allocation4 + $0x28] sm:$0xf] %v579_v53  ;;  %582 = vst [vmem:[#allocation4 + $0x2c] sm:$0xf] %v581_v54  ;;  %v583_v61 = vld [vmem:[%s7249_s20 + $0x28] sm:$0xf] }
  0x56   :  { %v585_v62 = vld [vmem:[%s7249_s20 + $0x38] sm:$0xf]  ;;  %v587_v63 = vld [vmem:[%s7249_s20 + $0x2c] sm:$0xf]  ;;  %584 = vst [vmem:[#allocation4 + $0x30] sm:$0xf] %v583_v61 }
  0x57   :  { %586 = vst [vmem:[#allocation4 + $0x34] sm:$0xf] %v585_v62  ;;  %588 = vst [vmem:[#allocation4 + $0x38] sm:$0xf] %v587_v63  ;;  %v589_v55 = vld [vmem:[%s7249_s20 + $0x3c] sm:$0xff]  }
  0x58   :  { %v593_v53 = vld [vmem:[%s7249_s20 + $0x50] sm:$0xf]  ;;  %v595_v54 = vld [vmem:[%s7249_s20 + $0x44] sm:$0xf]  ;;  %590 = vst [vmem:[#allocation4 + $0x3c] sm:$0xff] %v589_v55  }
  0x59   :  { %594 = vst [vmem:[#allocation4 + $0x44] sm:$0xf] %v593_v53  ;;  %596 = vst [vmem:[#allocation4 + $0x48] sm:$0xf] %v595_v54  ;;  %v597_v61 = vld [vmem:[%s7249_s20 + $0x54] sm:$0xf] }
  0x5a   :  { %v599_v62 = vld [vmem:[%s7249_s20 + $0x48] sm:$0xf]  ;;  %v601_v63 = vld [vmem:[%s7249_s20 + $0x58] sm:$0xf]  ;;  %598 = vst [vmem:[#allocation4 + $0x4c] sm:$0xf] %v597_v61 }
  0x5b   :  { %600 = vst [vmem:[#allocation4 + $0x50] sm:$0xf] %v599_v62  ;;  %602 = vst [vmem:[#allocation4 + $0x54] sm:$0xf] %v601_v63  ;;  %v603_v55 = vld [vmem:[%s7249_s20 + $0x4c] sm:$0xf] }
  0x5c   :  { %v605_v53 = vld [vmem:[%s7249_s20 + $0x5c] sm:$0xff]   ;;  %v609_v54 = vld [vmem:[%s7249_s20 + $0x70] sm:$0xf]  ;;  %604 = vst [vmem:[#allocation4 + $0x58] sm:$0xf] %v603_v55 }
  0x5d   :  { %606 = vst [vmem:[#allocation4 + $0x5c] sm:$0xff] %v605_v53   ;;  %610 = vst [vmem:[#allocation4 + $0x64] sm:$0xf] %v609_v54  ;;  %v611_v61 = vld [vmem:[%s7249_s20 + $0x64] sm:$0xf]  ;;  %v621_v54 = vld [vmem:[%s7249_s20 + $0x7c] sm:$0xff]  }
  0x5e   :  { %v613_v62 = vld [vmem:[%s7249_s20 + $0x74] sm:$0xf]  ;;  %v615_v63 = vld [vmem:[%s7249_s20 + $0x68] sm:$0xf]  ;;  %612 = vst [vmem:[#allocation4 + $0x68] sm:$0xf] %v611_v61 }
  0x5f   :  { %614 = vst [vmem:[#allocation4 + $0x6c] sm:$0xf] %v613_v62  ;;  %616 = vst [vmem:[#allocation4 + $0x70] sm:$0xf] %v615_v63  ;;  %v617_v55 = vld [vmem:[%s7249_s20 + $0x78] sm:$0xf] }
  0x60   :  { %v619_v53 = vld [vmem:[%s7249_s20 + $0x6c] sm:$0xf]  ;;  %618 = vst [vmem:[#allocation4 + $0x74] sm:$0xf] %v617_v55  ;;  %622 = vst [vmem:[#allocation4 + $0x7c] sm:$0xff] %v621_v54  }
  0x61   :  { %620 = vst [vmem:[#allocation4 + $0x78] sm:$0xf] %v619_v53  ;;  %v625_v61 = vld [vmem:[%s7249_s20 + $0x90] sm:$0xf]  ;;  %v627_v62 = vld [vmem:[%s7249_s20 + $0x84] sm:$0xf] }
  0x62   :  { %v629_v63 = vld [vmem:[%s7249_s20 + $0x94] sm:$0xf]  ;;  %626 = vst [vmem:[#allocation4 + $0x84] sm:$0xf] %v625_v61  ;;  %628 = vst [vmem:[#allocation4 + $0x88] sm:$0xf] %v627_v62 }
  0x63   :  { %630 = vst [vmem:[#allocation4 + $0x8c] sm:$0xf] %v629_v63  ;;  %v631_v55 = vld [vmem:[%s7249_s20 + $0x88] sm:$0xf]  ;;  %v633_v53 = vld [vmem:[%s7249_s20 + $0x98] sm:$0xf] }
  0x64   :  { %v635_v54 = vld [vmem:[%s7249_s20 + $0x8c] sm:$0xf]  ;;  %632 = vst [vmem:[#allocation4 + $0x90] sm:$0xf] %v631_v55  ;;  %634 = vst [vmem:[#allocation4 + $0x94] sm:$0xf] %v633_v53 }
  0x65   :  { %636 = vst [vmem:[#allocation4 + $0x98] sm:$0xf] %v635_v54  ;;  %v637_v61 = vld [vmem:[%s7249_s20 + $0x9c] sm:$0xff]   ;;  %v641_v62 = vld [vmem:[%s7249_s20 + $0xb0] sm:$0xf] }
  0x66   :  { %v643_v63 = vld [vmem:[%s7249_s20 + $0xa4] sm:$0xf]  ;;  %638 = vst [vmem:[#allocation4 + $0x9c] sm:$0xff] %v637_v61   ;;  %642 = vst [vmem:[#allocation4 + $0xa4] sm:$0xf] %v641_v62  ;;  %v653_v62 = vld [vmem:[%s7249_s20 + $0xbc] sm:$0xff]  }
  0x67   :  { %644 = vst [vmem:[#allocation4 + $0xa8] sm:$0xf] %v643_v63  ;;  %v645_v55 = vld [vmem:[%s7249_s20 + $0xb4] sm:$0xf]  ;;  %v647_v53 = vld [vmem:[%s7249_s20 + $0xa8] sm:$0xf] }
  0x68   :  { %v649_v54 = vld [vmem:[%s7249_s20 + $0xb8] sm:$0xf]  ;;  %646 = vst [vmem:[#allocation4 + $0xac] sm:$0xf] %v645_v55  ;;  %648 = vst [vmem:[#allocation4 + $0xb0] sm:$0xf] %v647_v53 }
  0x69   :  { %650 = vst [vmem:[#allocation4 + $0xb4] sm:$0xf] %v649_v54  ;;  %v651_v61 = vld [vmem:[%s7249_s20 + $0xac] sm:$0xf]  ;;  %v657_v63 = vld [vmem:[%s7249_s20 + $0xd0] sm:$0xf] }
  0x6a   :  { %652 = vst [vmem:[#allocation4 + $0xb8] sm:$0xf] %v651_v61  ;;  %654 = vst [vmem:[#allocation4 + $0xbc] sm:$0xff] %v653_v62   ;;  %v659_v55 = vld [vmem:[%s7249_s20 + $0xc4] sm:$0xf] }
  0x6b   :  { %658 = vst [vmem:[#allocation4 + $0xc4] sm:$0xf] %v657_v63  ;;  %v661_v53 = vld [vmem:[%s7249_s20 + $0xd4] sm:$0xf]  ;;  %v663_v54 = vld [vmem:[%s7249_s20 + $0xc8] sm:$0xf] }
  0x6c   :  { %660 = vst [vmem:[#allocation4 + $0xc8] sm:$0xf] %v659_v55  ;;  %662 = vst [vmem:[#allocation4 + $0xcc] sm:$0xf] %v661_v53  ;;  %v665_v61 = vld [vmem:[%s7249_s20 + $0xd8] sm:$0xf] }
  0x6d   :  { %664 = vst [vmem:[#allocation4 + $0xd0] sm:$0xf] %v663_v54  ;;  %v667_v62 = vld [vmem:[%s7249_s20 + $0xcc] sm:$0xf]  ;;  %v669_v63 = vld [vmem:[%s7249_s20 + $0xdc] sm:$0xff]  }
  0x6e   :  { %666 = vst [vmem:[#allocation4 + $0xd4] sm:$0xf] %v665_v61  ;;  %668 = vst [vmem:[#allocation4 + $0xd8] sm:$0xf] %v667_v62  ;;  %v673_v55 = vld [vmem:[%s7249_s20 + $0xf0] sm:$0xf] }
  0x6f   :  { %670 = vst [vmem:[#allocation4 + $0xdc] sm:$0xff] %v669_v63   ;;  %v675_v53 = vld [vmem:[%s7249_s20 + $0xe4] sm:$0xf]  ;;  %v677_v54 = vld [vmem:[%s7249_s20 + $0xf4] sm:$0xf] }
  0x70   :  { %674 = vst [vmem:[#allocation4 + $0xe4] sm:$0xf] %v673_v55  ;;  %676 = vst [vmem:[#allocation4 + $0xe8] sm:$0xf] %v675_v53  ;;  %v679_v61 = vld [vmem:[%s7249_s20 + $0xe8] sm:$0xf] }
  0x71   :  { %678 = vst [vmem:[#allocation4 + $0xec] sm:$0xf] %v677_v54  ;;  %v681_v62 = vld [vmem:[%s7249_s20 + $0xf8] sm:$0xf]  ;;  %v683_v63 = vld [vmem:[%s7249_s20 + $0xec] sm:$0xf] }
  0x72   :  { %680 = vst [vmem:[#allocation4 + $0xf0] sm:$0xf] %v679_v61  ;;  %682 = vst [vmem:[#allocation4 + $0xf4] sm:$0xf] %v681_v62  ;;  %v685_v55 = vld [vmem:[%s7249_s20 + $0xfc] sm:$0xf] }
  0x73   :  { %684 = vst [vmem:[#allocation4 + $0xf8] sm:$0xf] %v683_v63  ;;  %686 = vst [vmem:[#allocation4 + $0xfc] sm:$0xf] %v685_v55 }
  0x74   :  { %845 = vsyncadd [#allocation5 + $0x2], 4096  ;;  %s7314_s2 = sld [smem:[#allocation64_spill]]  ;;  %s7315_s20 = sld [smem:[#allocation60_spill]]  ;;  %v7258_v50 = vmov 0.0   ;;  %vm5353_vm0 = vmmov 0  }
  0x75   :  { %s7316_s0 = sld [smem:[#allocation66_spill]]  ;;  %s7318_s26 = sld [smem:[#allocation65_spill]]  ;;  %vm1550_vm1 = vcmask 261120  }
  0x76   :  { %s7320_s1 = sld [smem:[#allocation61_spill]]  ;;  %s7321_s5 = sld [smem:[#allocation67_spill]] }
  0x7a   :  { %v5088_v53 = vld [vmem:[%s7314_s2 + $0x40] sm:$0xff]   ;;  %v5090_v61 = vld [vmem:[%s7314_s2 + $0x48] sm:$0xff]   ;;  %v5093_v55 = vld [vmem:[%s7314_s2 + $0x50] sm:$0xff]  }
  0x7b   :  { %v5089_v54 = vld [vmem:[%s7314_s2] sm:$0xff]   ;;  %4457 = vmatprep.subr.bf16.mxu0 %v5088_v53  ;;  %v5092_v63 = vld [vmem:[%s7314_s2 + $0x8] sm:$0xff]   ;;  %v5097_v60 = vld [vmem:[%s7314_s2 + $0x90] sm:$0xff]  }
  0x7c   :  { %4458 = vmatpush3.bf16.msra.mxu0 %v5089_v54  ;;  %v5091_v62 = vld [vmem:[%s7314_s2 + $0x80] sm:$0xff]   ;;  %v5094_v53 = vld [vmem:[%s7314_s2 + $0x88] sm:$0xff]   ;;  %v5095_v54 = vld [vmem:[%s7314_s2 + $0x10] sm:$0xff]  }
  0x7d   :  { %4459 = vmatprep.subr.bf16.mxu0 %v5090_v61  ;;  %4757 = vmatprep.subr.bf16.mxu1 %v5091_v62  ;;  %v5096_v61 = vld [vmem:[%s7314_s2 + $0x58] sm:$0xff]   ;;  %v6203_v52 = vld [vmem:[%s7315_s20] sm:$0xff]  ;;  %v6221_v51 = vld [vmem:[%s7315_s20 + $0x10] sm:$0xff] }
  0x7e   :  { %4758 = vmatpush3.bf16.msra.mxu1 %v5091_v62  ;;  %v5098_v62 = vld [vmem:[%s7314_s2 + $0x18] sm:$0xff]   ;;  %v6249_v57 = vld [vmem:[%s7315_s20 + $0x30] sm:$0xff]  ;;  %v6256_v56 = vld [vmem:[%s7315_s20 + $0x28] sm:$0xff] }
  0x7f   :  { %4759 = vmatprep.subr.bf16.mxu1 %v5094_v53  ;;  %v5108_v59 = vld [vmem:[%s7314_s2 + $0x78] sm:$0xff]   ;;  %v5115_v48 = vld [vmem:[%s7316_s0 + $0x8] sm:$0xff]   ;;  %v861_v47 = vpack.c.bf16 %v6249_v57, %v6256_v56  ;;  %v5116_v39 = vld [vmem:[%s7316_s0 + $0x50] sm:$0xff]  }
  0x80   :  { %4460 = vmatpush3.bf16.msra.mxu0 %v5092_v63  ;;  %v5099_v63 = vld [vmem:[%s7314_s2 + $0x60] sm:$0xff]   ;;  %v5110_v58 = vld [vmem:[%s7314_s2 + $0x38] sm:$0xff]  }
  0x81   :  { %4461 = vmatprep.subr.bf16.mxu0 %v5093_v55  ;;  %v5100_v55 = vld [vmem:[%s7314_s2 + $0x98] sm:$0xff]   ;;  %v5121_v45 = vld [vmem:[%s7316_s0 + $0x60] sm:$0xff]  }
  0x82   :  { %4760 = vmatpush3.bf16.msra.mxu1 %v5094_v53  ;;  %v5101_v53 = vld [vmem:[%s7314_s2 + $0x20] sm:$0xff]   ;;  %v6280_v46 = vld [vmem:[%s7315_s20 + $0x38] sm:$0xff] }
  0x83   :  { %4761 = vmatprep.subr.bf16.mxu1 %v5097_v60  ;;  %v5119_v38 = vld [vmem:[%s7316_s0 + $0x18] sm:$0xff]  }
  0x84   :  { %4462 = vmatpush3.bf16.msra.mxu0 %v5095_v54  ;;  %v5103_v54 = vld [vmem:[%s7314_s2 + $0xa0] sm:$0xff]  }
  0x85   :  { %4463 = vmatprep.subr.bf16.mxu0 %v5096_v61  ;;  %v5102_v61 = vld [vmem:[%s7314_s2 + $0x68] sm:$0xff]  }
  0x86   :  { %4762 = vmatpush3.bf16.msra.mxu1 %v5097_v60  ;;  %v5104_v60 = vld [vmem:[%s7314_s2 + $0x28] sm:$0xff]  }
  0x87   :  { %4763 = vmatprep.subr.bf16.mxu1 %v5100_v55 }
  0x88   :  { %4464 = vmatpush3.bf16.msra.mxu0 %v5098_v62  ;;  %v5106_v62 = vld [vmem:[%s7314_s2 + $0xa8] sm:$0xff]  }
  0x89   :  { %4465 = vmatprep.subr.bf16.mxu0 %v5099_v63  ;;  %v5105_v63 = vld [vmem:[%s7314_s2 + $0x70] sm:$0xff]  }
  0x8a   :  { %4764 = vmatpush3.bf16.msra.mxu1 %v5100_v55  ;;  %v5107_v55 = vld [vmem:[%s7314_s2 + $0x30] sm:$0xff]  }
  0x8b   :  { %4765 = vmatprep.subr.bf16.mxu1 %v5103_v54 }
  0x8c   :  { %4466 = vmatpush3.bf16.msra.mxu0 %v5101_v53  ;;  %v6208_v53 = vld [vmem:[%s7315_s20 + $0x8] sm:$0xff] }
  0x8d   :  { %4467 = vmatprep.subr.bf16.mxu0 %v5102_v61  ;;  %v856_v61 = vpack.c.bf16 %v6208_v53, %v6203_v52 }
  0x8e   :  { %4766 = vmatpush3.bf16.msra.mxu1 %v5103_v54  ;;  %v5109_v54 = vld [vmem:[%s7314_s2 + $0xb0] sm:$0xff]  }
  0x8f   :  { %4767 = vmatprep.subr.bf16.mxu1 %v5106_v62  ;;  %1095 = vmatprep.mubr.bf16.mxu0 %v856_v61  ;;  %v6234_v61 = vld [vmem:[%s7315_s20 + $0x18] sm:$0xff] }
  0x90   :  { %4468 = vmatpush3.bf16.msra.mxu0 %v5104_v60  ;;  %v857_v60 = vpack.c.bf16 %v6221_v51, %v6208_v53  ;;  %v858_v49 = vpack.c.bf16 %v6234_v61, %v6221_v51 }
  0x91   :  { %4469 = vmatprep.subr.bf16.mxu0 %v5105_v63  ;;  %v5111_v63 = vld [vmem:[%s7314_s2 + $0xb8] sm:$0xff]  }
  0x92   :  { %4768 = vmatpush3.bf16.msra.mxu1 %v5106_v62  ;;  %4773 = vmatprep.mubr.bf16.mxu1 %v857_v60  ;;  %v5112_v62 = vld [vmem:[%s7316_s0 + $0x40] sm:$0xff]  }
  0x93   :  { %4769 = vmatprep.subr.bf16.mxu1 %v5109_v54 }
  0x94   :  { %4470 = vmatpush3.bf16.msra.mxu0 %v5107_v55  ;;  %v6242_v55 = vld [vmem:[%s7315_s20 + $0x20] sm:$0xff] }
  0x95   :  { %4471 = vmatprep.subr.bf16.mxu0 %v5108_v59  ;;  %v855_v59 = vpack.c.bf16 %v6203_v52, %v7258_v50  ;;  %v5114_v50 = vld [vmem:[%s7316_s0 + $0x48] sm:$0xff]  }
  0x96   :  { %4770 = vmatpush3.bf16.msra.mxu1 %v5109_v54  ;;  %v5113_v54 = vld [vmem:[%s7316_s0] sm:$0xff]  }
  0x97   :  { %4771 = vmatprep.subr.bf16.mxu1 %v5111_v63 }
  0x98   :  { %4472 = vmatpush3.bf16.msra.mxu0 %v5110_v58  ;;  %v859_v58 = vpack.c.bf16 %v6242_v55, %v6234_v61 }
  0x99   :  { %4509 = vmatprep.subr.bf16.mxu0 %v5112_v62  ;;  %v5120_v62 = vld [vmem:[%s7316_s0 + $0x80] sm:$0xff]  }
  0x9a   :  { %4772 = vmatpush3.bf16.msra.mxu1 %v5111_v63  ;;  %v5117_v63 = vld [vmem:[%s7316_s0 + $0x10] sm:$0xff]  }
  0x9b   :  { %1096 = vmatmul.mubr.bf16.vlgmr.msra.gmra.mrb[0].mxu0 %v855_v59  ;;  %4781 = vmatprep.subr.bf16.mxu1 %v5120_v62  ;;  %v860_v59 = vpack.c.bf16 %v6256_v56, %v6242_v55 }
  0x9c   :  { %1103 = vmatprep.mubr.bf16.mxu0 %v858_v49  ;;  %4510 = vmatpush3.bf16.msra.mxu0 %v5113_v54  ;;  %v5118_v49 = vld [vmem:[%s7316_s0 + $0x58] sm:$0xff]   ;;  %v7317_v54 = vmov 0.0  }
  0x9d   :  { %4511 = vmatprep.subr.bf16.mxu0 %v5114_v50  ;;  %4774 = vmatmul.mubr.bf16.vlgmr.msra.gmra.mrb[0].mxu1 %v859_v58  ;;  %v863_v50 = vpack.c.bf16 %v7317_v54, %v6280_v46 }
  0x9e   :  { %4777 = vmatprep.mubr.bf16.mxu1 %v861_v47  ;;  %4782 = vmatpush3.bf16.msra.mxu1 %v5120_v62  ;;  %v5124_v62 = vld [vmem:[%s7316_s0 + $0x68] sm:$0xff]  }
  0xa0   :  { %4512 = vmatpush3.bf16.msra.mxu0 %v5115_v48  ;;  %v862_v48 = vpack.c.bf16 %v6280_v46, %v6249_v57 }
  0xa1   :  { %4513 = vmatprep.subr.bf16.mxu0 %v5116_v39  ;;  %v5122_v39 = vld [vmem:[%s7316_s0 + $0x20] sm:$0xff]  }
  0xa3   :  { %1104 = vmatmul.mubr.bf16.gmra.mrb[4].mxu0 %v857_v60  ;;  %v5123_v60 = vld [vmem:[%s7316_s0 + $0x88] sm:$0xff]  }
  0xa4   :  { %1111 = vmatprep.mubr.bf16.mxu0 %v860_v59  ;;  %4514 = vmatpush3.bf16.msra.mxu0 %v5117_v63  ;;  %v5129_v63 = vld [vmem:[%s7316_s0 + $0x98] sm:$0xff]  }
  0xa5   :  { %4515 = vmatprep.subr.bf16.mxu0 %v5118_v49  ;;  %4778 = vmatmul.mubr.bf16.gmra.mrb[4].mxu1 %v863_v50  ;;  %v5130_v49 = vld [vmem:[%s7316_s0 + $0x78] sm:$0xff]   ;;  %v5132_v50 = vld [vmem:[%s7316_s0 + $0xa0] sm:$0xff]  }
  0xa6   :  { %4783 = vmatprep.subr.bf16.mxu1 %v5123_v60  ;;  %v5131_v59 = vld [vmem:[%s7316_s0 + $0x38] sm:$0xff]  }
  0xa7   :  { %4784 = vmatpush3.bf16.msra.mxu1 %v5123_v60  ;;  %v5135_v60 = vld [vmem:[%s7316_s0 + $0xb8] sm:$0xff]  }
  0xa8   :  { %4516 = vmatpush3.bf16.msra.mxu0 %v5119_v38  ;;  %v5125_v38 = vld [vmem:[%s7316_s0 + $0x28] sm:$0xff]  }
  0xa9   :  { %4517 = vmatprep.subr.bf16.mxu0 %v5121_v45  ;;  %v5126_v45 = vld [vmem:[%s7316_s0 + $0x90] sm:$0xff]  }
  0xaa   :  { %4785 = vmatprep.subr.bf16.mxu1 %v5126_v45 }
  0xab   :  { %1112 = vmatmul.mubr.bf16.gmra.mrb[8].mxu0 %v859_v58  ;;  %4786 = vmatpush3.bf16.msra.mxu1 %v5126_v45  ;;  %v5128_v58 = vld [vmem:[%s7316_s0 + $0x30] sm:$0xff]  }
  0xac   :  { %1119 = vmatprep.mubr.bf16.mxu0 %v862_v48  ;;  %4518 = vmatpush3.bf16.msra.mxu0 %v5122_v39  ;;  %v5133_v48 = vld [vmem:[%s7316_s0 + $0xa8] sm:$0xff]   ;;  %v5134_v39 = vld [vmem:[%s7316_s0 + $0xb0] sm:$0xff]  }
  0xad   :  { %4519 = vmatprep.subr.bf16.mxu0 %v5124_v62  ;;  %4787 = vmatprep.subr.bf16.mxu1 %v5129_v63  ;;  %v7260_v62 = vmov 0.0|0.0  }
  0xaf   :  { %4788 = vmatpush3.bf16.msra.mxu1 %v5129_v63 }
  0xb0   :  { %4520 = vmatpush3.bf16.msra.mxu0 %v5125_v38  ;;  %4789 = vmatprep.subr.bf16.mxu1 %v5132_v50 }
  0xb3   :  { %1120 = vmatmul.mubr.bf16.gmra.mrb[12].mxu0 %v861_v47  ;;  %v5127_v47 = vld [vmem:[%s7316_s0 + $0x70] sm:$0xff]   ;;  %4790 = vmatpush3.bf16.msra.mxu1 %v5132_v50 }
  0xb4   :  { %4521 = vmatprep.subr.bf16.mxu0 %v5127_v47  ;;  %4791 = vmatprep.subr.bf16.mxu1 %v5133_v48  ;;  %v6346_v47 = vld [vmem:[%s7318_s26] ss:$0 sm:$0xff] }
  0xb5   :  { %4522 = vmatpush3.bf16.msra.mxu0 %v5128_v58 }
  0xb6   :  { %4523 = vmatprep.subr.bf16.mxu0 %v5130_v49 }
  0xb7   :  { %4792 = vmatpush3.bf16.msra.mxu1 %v5133_v48 }
  0xb8   :  { %4793 = vmatprep.subr.bf16.mxu1 %v5134_v39 }
  0xb9   :  { %4524 = vmatpush3.bf16.msra.mxu0 %v5131_v59 }
  0xbb   :  { %4794 = vmatpush3.bf16.msra.mxu1 %v5134_v39 }
  0xbc   :  { %4795 = vmatprep.subr.bf16.mxu1 %v5135_v60 }
  0xbf   :  { %4796 = vmatpush3.bf16.msra.mxu1 %v5135_v60 }
  0xc0   :  { %5057 = vmatprep.subr.bf16.mxu1 %v7260_v62 }
 0x16e   :  { %v4473_v38 = vpop.f32.mrb[0].mxu0 }
 0x16f   :  { %v4474_v45 = vpop.f32.mrb[1].mxu0 }
 0x170   :  { %v4475_v58 = vadd.f32 %v4474_v45, %v4473_v38  ;;  %v4476_v63 = vpop.f32.mrb[2].mxu0  ;;  %v4775_v59 = vpop.f32.mrb[0].mxu1 }
 0x171   :  { %v4477_v49 = vpop.f32.mrb[3].mxu0  ;;  %v1162_v39 = vpop.f32.mrb[1].mxu1 }
 0x172   :  { %v4478_v50 = vadd.f32 %v4477_v49, %v4476_v63  ;;  %v1098_v48 = vadd.f32 %v4475_v58, %v6346_v47  ;;  %v4776_v37 = vpop.f32.mrb[2].mxu1 }
 0x173   :  { %v1165_v62 = vpop.f32.mrb[3].mxu1 }
 0x174   :  { %v1163_v60 = vadd.f32 %v1162_v39, %v1098_v48  ;;  %v1101_v44 = vadd.f32 %v4478_v50, %v6346_v47 }
 0x176   :  { %v1166_v36 = vadd.f32 %v1165_v62, %v1101_v44  ;;  %v4479_v43 = vpop.f32.mrb[4].mxu0  ;;  %v1193_v35 = vmax.f32 %v1163_v60, 0.0 }
 0x177   :  { %v4480_v42 = vpop.f32.mrb[5].mxu0 }
 0x178   :  { %v1194_v34 = vmax.f32 %v1166_v36, 0.0  ;;  %v4481_v41 = vadd.f32 %v4480_v42, %v4479_v43  ;;  %v4482_v33 = vpop.f32.mrb[6].mxu0  ;;  %v4779_v45 = vpop.f32.mrb[4].mxu1  ;;  %v1201_v32 = vpack.c.bf16 %v1193_v35, %v7317_v54 }
 0x179   :  { %v4483_v38 = vpop.f32.mrb[7].mxu0  ;;  %v1178_v58 = vpop.f32.mrb[5].mxu1 }
 0x17a   :  { %v1202_v40 = vpack.c.bf16 %v1194_v34, %v1193_v35  ;;  %v1106_v63 = vadd.f32 %v4481_v41, %v6346_v47  ;;  %v4484_v49 = vadd.f32 %v4483_v38, %v4482_v33  ;;  %v4780_v48 = vpop.f32.mrb[6].mxu1 }
 0x17b   :  { %v1181_v44 = vpop.f32.mrb[7].mxu1 }
 0x17c   :  { %v1171_v39 = vadd.f32 %v4775_v59, %v1106_v63  ;;  %v1109_v50 = vadd.f32 %v4484_v49, %v6346_v47  ;;  %1441 = vmatprep.mubr.bf16.mxu0 %v1202_v40 }
 0x17d   :  { %1442 = vmatmul.mubr.bf16.vlgmr.msra.gmra.mrb[16].mxu0 %v1201_v32  ;;  %v1539_v32 = vld [vmem:[%s7237_s8] sm:$0xff] }
 0x17e   :  { %v1195_v62 = vmax.f32 %v1171_v39, 0.0  ;;  %v1174_v36 = vadd.f32 %v4776_v37, %v1109_v50  ;;  %v4485_v42 = vpop.f32.mrb[8].mxu0  ;;  %v1540_v37 = vld [vmem:[%s7237_s8 + $0x8] sm:$0xff] }
 0x17f   :  { %v4486_v43 = vpop.f32.mrb[9].mxu0  ;;  %v5058_v39 = vpack.c.bf16 %v1540_v37, %v1539_v32 }
 0x180   :  { %v4487_v60 = vadd.f32 %v4486_v43, %v4485_v42  ;;  %v4488_v31 = vpop.f32.mrb[10].mxu0  ;;  %v1196_v23 = vmax.f32 %v1174_v36, 0.0  ;;  %v1203_v30 = vpack.c.bf16 %v1195_v62, %v1194_v34  ;;  %v1541_v42 = vld [vmem:[%s7237_s8 + $0x10] sm:$0xff]  ;;  %v1542_v43 = vld [vmem:[%s7237_s8 + $0x18] sm:$0xff] }
 0x181   :  { %v4489_v41 = vpop.f32.mrb[11].mxu0 }
 0x182   :  { %v4490_v33 = vadd.f32 %v4489_v41, %v4488_v31  ;;  %v1114_v38 = vadd.f32 %v4487_v60, %v6346_v47  ;;  %4797 = vmatprep.mubr.bf16.mxu1 %v1203_v30  ;;  %v1204_v35 = vpack.c.bf16 %v1196_v23, %v1195_v62 }
 0x184   :  { %v1179_v59 = vadd.f32 %v1178_v58, %v1114_v38  ;;  %v1117_v63 = vadd.f32 %v4490_v33, %v6346_v47  ;;  %1449 = vmatprep.mubr.bf16.mxu0 %v1204_v35  ;;  %v5061_v33 = vpack.c.bf16 %v1542_v43, %v1541_v42  ;;  %v7319_v35 = vmov 0.0|0.0   ;;  %v5139_v42 = vld [vmem:[%s7314_s2 + $0x108] sm:$0xff]  }
 0x185   :  { %1450 = vmatmul.mubr.bf16.gmra.mrb[20].mxu0 %v1203_v30  ;;  %v5140_v43 = vld [vmem:[%s7314_s2 + $0xc8] sm:$0xff]  }
 0x186   :  { %v1197_v34 = vmax.f32 %v1179_v59, 0.0  ;;  %v1182_v40 = vadd.f32 %v1181_v44, %v1117_v63  ;;  %v4491_v31 = vpop.f32.mrb[12].mxu0 }
 0x187   :  { %v4492_v49 = vpop.f32.mrb[13].mxu0 }
 0x188   :  { %v1205_v50 = vpack.c.bf16 %v1197_v34, %v1196_v23  ;;  %v1198_v62 = vmax.f32 %v1182_v40, 0.0  ;;  %v4493_v58 = vadd.f32 %v4492_v49, %v4491_v31  ;;  %v4494_v36 = vpop.f32.mrb[14].mxu0  ;;  %v1626_v49 = vld [vmem:[%s7239_s10 + $0x10] sm:$0xff] }
 0x189   :  { %v4495_v60 = vpop.f32.mrb[15].mxu0 }
 0x18a   :  { %v1206_v41 = vpack.c.bf16 %v1198_v62, %v1197_v34  ;;  %v1122_v30 = vadd.f32 %v4493_v58, %v6346_v47  ;;  %v4496_v44 = vadd.f32 %v4495_v60, %v4494_v36  ;;  %4798 = vmatmul.mubr.bf16.vlgmr.msra.gmra.mrb[8].mxu1 %v1205_v50  ;;  %v5138_v58 = vld [vmem:[%s7314_s2 + $0x140] sm:$0xff]   ;;  %v5141_v60 = vld [vmem:[%s7314_s2 + $0x148] sm:$0xff]  }
 0x18b   :  { %5059 = vmatpush3.bf16.msra.mxu1 %v5058_v39  ;;  %v1627_v39 = vld [vmem:[%s7239_s10 + $0x18] sm:$0xff]  ;;  %v5137_v36 = vld [vmem:[%s7314_s2 + $0xc0] sm:$0xff]  }
 0x18c   :  { %v1187_v23 = vadd.f32 %v4779_v45, %v1122_v30  ;;  %v1125_v38 = vadd.f32 %v4496_v44, %v6346_v47  ;;  %1457 = vmatprep.mubr.bf16.mxu0 %v1206_v41  ;;  %5060 = vmatprep.subr.bf16.mxu1 %v7319_v35  ;;  %v1624_v47 = vld [vmem:[%s7239_s10] sm:$0xff]  ;;  %v1625_v45 = vld [vmem:[%s7239_s10 + $0x8] sm:$0xff]  ;;  %v5142_v41 = vld [vmem:[%s7314_s2 + $0x110] sm:$0xff]  }
 0x18d   :  { %1458 = vmatmul.mubr.bf16.gmra.mrb[24].mxu0 %v1205_v50  ;;  %v5064_v31 = vpack.c.bf16 %v1625_v45, %v1624_v47  ;;  %v5067_v50 = vpack.c.bf16 %v1627_v39, %v1626_v49  ;;  %v5144_v30 = vld [vmem:[%s7314_s2 + $0x150] sm:$0xff]   ;;  %v5157_v49 = vld [vmem:[%s7314_s2 + $0x138] sm:$0xff]  }
 0x18e   :  { %v1199_v59 = vmax.f32 %v1187_v23, 0.0  ;;  %v1190_v63 = vadd.f32 %v4780_v48, %v1125_v38  ;;  %v6383_v48 = vld [vmem:[%s7320_s1] sm:$0xff]  ;;  %v5143_v44 = vld [vmem:[%s7314_s2 + $0xd0] sm:$0xff]   ;;  %v5147_v23 = vld [vmem:[%s7314_s2 + $0x158] sm:$0xff]  }
 0x18f   :  { %5062 = vmatpush3.bf16.msra.mxu1 %v5061_v33  ;;  %v5145_v33 = vld [vmem:[%s7314_s2 + $0x118] sm:$0xff]   ;;  %v5154_v47 = vld [vmem:[%s7314_s2 + $0x130] sm:$0xff]  }
 0x190   :  { %v1200_v32 = vmax.f32 %v1190_v63, 0.0  ;;  %v1207_v37 = vpack.c.bf16 %v1199_v59, %v1198_v62  ;;  %5063 = vmatprep.subr.bf16.mxu1 %v7319_v35  ;;  %v5136_v62 = vld [vmem:[%s7314_s2 + $0x100] sm:$0xff]   ;;  %v5146_v38 = vld [vmem:[%s7314_s2 + $0xd8] sm:$0xff]   ;;  %v5155_v45 = vld [vmem:[%s7314_s2 + $0xf0] sm:$0xff]  }
 0x191   :  { %4571 = vmatprep.subr.bf16.mxu0 %v5136_v62  ;;  %v5149_v63 = vld [vmem:[%s7314_s2 + $0xe0] sm:$0xff]   ;;  %v5159_v39 = vld [vmem:[%s7314_s2 + $0x178] sm:$0xff]  }
 0x192   :  { %4801 = vmatprep.mubr.bf16.mxu1 %v1207_v37  ;;  %v1208_v34 = vpack.c.bf16 %v1200_v32, %v1199_v59  ;;  %v1209_v40 = vpack.c.bf16 %v7317_v54, %v1200_v32  ;;  %4572 = vmatpush3.bf16.msra.mxu0 %v5137_v36  ;;  %v5148_v59 = vld [vmem:[%s7314_s2 + $0x120] sm:$0xff]  }
 0x193   :  { %4573 = vmatprep.subr.bf16.mxu0 %v5139_v42  ;;  %v5150_v32 = vld [vmem:[%s7314_s2 + $0x160] sm:$0xff]  }
 0x194   :  { %1465 = vmatprep.mubr.bf16.mxu0 %v1208_v34  ;;  %4802 = vmatmul.mubr.bf16.gmra.mrb[12].mxu1 %v1209_v40  ;;  %v5153_v34 = vld [vmem:[%s7314_s2 + $0x168] sm:$0xff]   ;;  %v5160_v62 = vld [vmem:[%s7316_s0 + $0x100] sm:$0xff]  }
 0x195   :  { %1466 = vmatmul.mubr.bf16.gmra.mrb[28].mxu0 %v1207_v37  ;;  %4813 = vmatprep.mubr.msk.f32.mxu1 %vm5353_vm0, %v7317_v54  ;;  %v5151_v37 = vld [vmem:[%s7314_s2 + $0x128] sm:$0xff]  }
 0x196   :  { %4574 = vmatpush3.bf16.msra.mxu0 %v5140_v43  ;;  %v5152_v40 = vld [vmem:[%s7314_s2 + $0xe8] sm:$0xff]  }
 0x197   :  { %4575 = vmatprep.subr.bf16.mxu0 %v5142_v41 }
 0x19a   :  { %4576 = vmatpush3.bf16.msra.mxu0 %v5143_v44 }
 0x19b   :  { %4577 = vmatprep.subr.bf16.mxu0 %v5145_v33 }
 0x19c   :  { %4814 = vmatmul.mubr.msk.f32.vlgmr.msra.gmra.mrb[16].mxu1 %vm1550_vm1, %v6383_v48 }
 0x19d   :  { %5065 = vmatpush3.bf16.msra.mxu1 %v5064_v31  ;;  %4824 = vmatprep.mubr.msk.f32.mxu1 %vm5353_vm0, %v7317_v54  ;;  %v5156_v31 = vld [vmem:[%s7314_s2 + $0x170] sm:$0xff]  }
 0x19e   :  { %5066 = vmatprep.subr.bf16.mxu1 %v7319_v35  ;;  %4578 = vmatpush3.bf16.msra.mxu0 %v5146_v38 }
 0x19f   :  { %4579 = vmatprep.subr.bf16.mxu0 %v5148_v59  ;;  %v4231_v59 = vld [vmem:[%s7321_s5] ss:$0 sm:$0xff] }
 0x1a1   :  { %5068 = vmatpush3.bf16.msra.mxu1 %v5067_v50  ;;  %v5158_v50 = vld [vmem:[%s7314_s2 + $0xf8] sm:$0xff]  }
 0x1a2   :  { %4827 = vmatprep.subr.bf16.mxu1 %v5138_v58  ;;  %4580 = vmatpush3.bf16.msra.mxu0 %v5149_v63 }
 0x1a3   :  { %4581 = vmatprep.subr.bf16.mxu0 %v5151_v37 }
 0x1a4   :  { %4825 = vmatmul.mubr.msk.f32.vlgmr.msra.gmra.mrb[18].mxu1 %vm1550_vm1, %v6383_v48 }
 0x1a5   :  { %4828 = vmatpush3.bf16.msra.mxu1 %v5138_v58  ;;  %v6476_v58 = vld [vmem:[%s7316_s0 + $0x140] sm:$0xff]  }
 0x1a6   :  { %4829 = vmatprep.subr.bf16.mxu1 %v5141_v60  ;;  %4582 = vmatpush3.bf16.msra.mxu0 %v5152_v40 }
 0x1a7   :  { %4583 = vmatprep.subr.bf16.mxu0 %v5154_v47 }
 0x1a9   :  { %4830 = vmatpush3.bf16.msra.mxu1 %v5141_v60 }
 0x1aa   :  { %4831 = vmatprep.subr.bf16.mxu1 %v5144_v30  ;;  %4584 = vmatpush3.bf16.msra.mxu0 %v5155_v45 }
 0x1ab   :  { %4585 = vmatprep.subr.bf16.mxu0 %v5157_v49 }
 0x1ad   :  { %4832 = vmatpush3.bf16.msra.mxu1 %v5144_v30 }
 0x1ae   :  { %4833 = vmatprep.subr.bf16.mxu1 %v5147_v23  ;;  %4586 = vmatpush3.bf16.msra.mxu0 %v5158_v50 }
 0x1af   :  { %4623 = vmatprep.subr.bf16.mxu0 %v5160_v62 }
 0x1b1   :  { %4834 = vmatpush3.bf16.msra.mxu1 %v5147_v23 }
 0x1b2   :  { %4835 = vmatprep.subr.bf16.mxu1 %v5150_v32 }
 0x1b5   :  { %4836 = vmatpush3.bf16.msra.mxu1 %v5150_v32 }
 0x1b6   :  { %4837 = vmatprep.subr.bf16.mxu1 %v5153_v34 }
 0x1b9   :  { %4838 = vmatpush3.bf16.msra.mxu1 %v5153_v34 }
 0x1ba   :  { %4839 = vmatprep.subr.bf16.mxu1 %v5156_v31 }
 0x1bd   :  { %4840 = vmatpush3.bf16.msra.mxu1 %v5156_v31 }
 0x1be   :  { %4841 = vmatprep.subr.bf16.mxu1 %v5159_v39 }
 0x1c1   :  { %4842 = vmatpush3.bf16.msra.mxu1 %v5159_v39 }
 0x1c2   :  { %4851 = vmatprep.subr.bf16.mxu1 %v6476_v58 }
 0x250   :  { %v4525_v36 = vpop.f32.mrb[16].mxu0 }
 0x251   :  { %v4526_v42 = vpop.f32.mrb[17].mxu0 }
 0x252   :  { %v4527_v43 = vadd.f32 %v4526_v42, %v4525_v36  ;;  %v4528_v60 = vpop.f32.mrb[18].mxu0 }
 0x253   :  { %v4529_v41 = vpop.f32.mrb[19].mxu0 }
 0x254   :  { %v4530_v30 = vadd.f32 %v4529_v41, %v4528_v60  ;;  %v1444_v40 = vadd.f32 %v4527_v43, %v4231_v59 }
 0x256   :  { %v1447_v50 = vadd.f32 %v4530_v30, %v4231_v59 }
 0x258   :  { %v4531_v44 = vpop.f32.mrb[20].mxu0 }
 0x259   :  { %v4532_v33 = vpop.f32.mrb[21].mxu0 }
 0x25a   :  { %v4533_v23 = vadd.f32 %v4532_v33, %v4531_v44  ;;  %v4534_v38 = vpop.f32.mrb[22].mxu0 }
 0x25b   :  { %v4535_v63 = vpop.f32.mrb[23].mxu0 }
 0x25c   :  { %v4536_v32 = vadd.f32 %v4535_v63, %v4534_v38  ;;  %v1452_v37 = vadd.f32 %v4533_v23, %v4231_v59 }
 0x25d   :  { %v4799_v34 = vpop.f32.mrb[8].mxu1 }
 0x25e   :  { %v1517_v47 = vadd.f32 %v4799_v34, %v1452_v37  ;;  %v1508_v45 = vpop.f32.mrb[9].mxu1  ;;  %v1455_v31 = vadd.f32 %v4536_v32, %v4231_v59 }
 0x25f   :  { %v1509_v49 = vadd.f32 %v1508_v45, %v1444_v40  ;;  %v4800_v39 = vpop.f32.mrb[10].mxu1 }
 0x260   :  { %v1520_v62 = vadd.f32 %v4800_v39, %v1455_v31  ;;  %v4537_v36 = vpop.f32.mrb[24].mxu0  ;;  %v1511_v42 = vpop.f32.mrb[11].mxu1 }
 0x261   :  { %v1512_v60 = vadd.f32 %v1511_v42, %v1447_v50  ;;  %v4538_v41 = vpop.f32.mrb[25].mxu0 }
 0x262   :  { %v4539_v44 = vadd.f32 %v4538_v41, %v4537_v36  ;;  %v4540_v33 = vpop.f32.mrb[26].mxu0  ;;  %v4256_v36 = vld [vmem:[%s7238_s9] ss:$0 sm:$0xff] }
 0x263   :  { %v4541_v22 = vpop.f32.mrb[27].mxu0 }
 0x264   :  { %v4542_v29 = vadd.f32 %v4541_v22, %v4540_v33  ;;  %v1460_v38 = vadd.f32 %v4539_v44, %v4231_v59 }
 0x266   :  { %v1463_v32 = vadd.f32 %v4542_v29, %v4231_v59 }
 0x267   :  { %v4803_v21 = vpop.f32.mrb[12].mxu1 }
 0x268   :  { %v4543_v23 = vpop.f32.mrb[28].mxu0  ;;  %v1524_v63 = vpop.f32.mrb[13].mxu1 }
 0x269   :  { %v1525_v43 = vadd.f32 %v1524_v63, %v1460_v38  ;;  %v4544_v37 = vpop.f32.mrb[29].mxu0  ;;  %v4804_v34 = vpop.f32.mrb[14].mxu1 }
 0x26a   :  { %v4545_v40 = vadd.f32 %v4544_v37, %v4543_v23  ;;  %v4546_v45 = vpop.f32.mrb[30].mxu0  ;;  %v1527_v30 = vpop.f32.mrb[15].mxu1 }
 0x26b   :  { %v1528_v31 = vadd.f32 %v1527_v30, %v1463_v32  ;;  %v4547_v39 = vpop.f32.mrb[31].mxu0 }
 0x26c   :  { %v1468_v28 = vadd.f32 %v4545_v40, %v4231_v59  ;;  %v4548_v50 = vadd.f32 %v4547_v39, %v4546_v45  ;;  %v4258_v40 = vld [vmem:[%s7240_s11] ss:$0 sm:$0xff] }
 0x26e   :  { %v1533_v22 = vadd.f32 %v4803_v21, %v1468_v28  ;;  %v1471_v42 = vadd.f32 %v4548_v50, %v4231_v59 }
 0x26f   :  { %v1620_v41 = vpop.f32.mrb[16].mxu1 }
 0x270   :  { %v1536_v44 = vadd.f32 %v4804_v34, %v1471_v42  ;;  %v1621_v33 = vadd.f32 %v4256_v36, %v1620_v41  ;;  %v4815_v38 = vpop.f32.mrb[17].mxu1 }
 0x272   :  { %v1705_v63 = vmul.f32 %v1621_v33, %v1509_v49  ;;  %v1706_v20 = vmul.f32 %v1621_v33, %v1512_v60  ;;  %v1707_v29 = vmul.f32 %v1621_v33, %v1517_v47  ;;  %v1708_v23 = vmul.f32 %v1621_v33, %v1520_v62 }
 0x273   :  { %v1709_v37 = vmul.f32 %v1621_v33, %v1525_v43  ;;  %v1710_v27 = vmul.f32 %v1621_v33, %v1528_v31  ;;  %v1711_v32 = vmul.f32 %v1621_v33, %v1533_v22  ;;  %v1712_v30 = vmul.f32 %v1621_v33, %v1536_v44 }
 0x277   :  { %v1701_v45 = vpop.f32.mrb[18].mxu1 }
 0x278   :  { %v1702_v39 = vadd.f32 %v4258_v40, %v1701_v45  ;;  %v4826_v21 = vpop.f32.mrb[19].mxu1  ;;  %v5163_v40 = vld [vmem:[%s7316_s0 + $0xc8] sm:$0xff]   ;;  %v5164_v45 = vld [vmem:[%s7316_s0 + $0x110] sm:$0xff]  }
 0x27a   :  { %v1713_v28 = vadd.f32 %v1705_v63, %v1702_v39  ;;  %v1714_v59 = vadd.f32 %v1706_v20, %v1702_v39  ;;  %v1715_v34 = vadd.f32 %v1707_v29, %v1702_v39  ;;  %v1716_v50 = vadd.f32 %v1708_v23, %v1702_v39 }
 0x27b   :  { %v1717_v36 = vadd.f32 %v1709_v37, %v1702_v39  ;;  %v1718_v49 = vadd.f32 %v1710_v27, %v1702_v39  ;;  %v1719_v60 = vadd.f32 %v1711_v32, %v1702_v39  ;;  %v1720_v47 = vadd.f32 %v1712_v30, %v1702_v39  ;;  %v5162_v32 = vld [vmem:[%s7316_s0 + $0x108] sm:$0xff]  }
 0x27c   :  { %v1721_v62 = vmax.f32 %v1713_v28, 0.0  ;;  %v1722_v43 = vmax.f32 %v1714_v59, 0.0  ;;  %v1723_v31 = vmax.f32 %v1715_v34, 0.0  ;;  %v1724_v22 = vmax.f32 %v1716_v50, 0.0  ;;  %v5167_v28 = vld [vmem:[%s7316_s0 + $0xd8] sm:$0xff]   ;;  %v5169_v59 = vld [vmem:[%s7316_s0 + $0x120] sm:$0xff]  }
 0x27d   :  { %v1725_v42 = vmax.f32 %v1717_v36, 0.0  ;;  %v1726_v41 = vmax.f32 %v1718_v49, 0.0  ;;  %v1727_v44 = vmax.f32 %v1719_v60, 0.0  ;;  %v5170_v34 = vld [vmem:[%s7316_s0 + $0xe0] sm:$0xff]   ;;  %v5171_v36 = vld [vmem:[%s7316_s0 + $0x148] sm:$0xff]  }
 0x27e   :  { %v6489_v33 = vadd.f32 %v1721_v62, %v6203_v52  ;;  %v6492_v38 = vadd.f32 %v1722_v43, %v6208_v53  ;;  %v6495_v20 = vadd.f32 %v1723_v31, %v6221_v51  ;;  %v6498_v27 = vadd.f32 %v1724_v22, %v6234_v61  ;;  %v5172_v49 = vld [vmem:[%s7316_s0 + $0x128] sm:$0xff]   ;;  %v5175_v62 = vld [vmem:[%s7316_s0 + $0x130] sm:$0xff]   ;;  %v5177_v31 = vld [vmem:[%s7316_s0 + $0x158] sm:$0xff]  }
 0x27f   :  { %v6501_v63 = vadd.f32 %v1725_v42, %v6242_v55  ;;  %v6504_v29 = vadd.f32 %v1726_v41, %v6256_v56  ;;  %v6507_v23 = vadd.f32 %v1727_v44, %v6249_v57  ;;  %v1728_v55 = vmax.f32 %v1720_v47, 0.0  ;;  %v5161_v56 = vld [vmem:[%s7316_s0 + $0xc0] sm:$0xff]   ;;  %v5173_v60 = vld [vmem:[%s7316_s0 + $0xe8] sm:$0xff]   ;;  %v5174_v47 = vld [vmem:[%s7316_s0 + $0x150] sm:$0xff]  }
 0x280   :  { %v1738_v52 = vpack.c.bf16 %v6492_v38, %v6489_v33  ;;  %v1739_v53 = vpack.c.bf16 %v6495_v20, %v6492_v38  ;;  %v1737_v51 = vpack.c.bf16 %v6489_v33, %v7317_v54  ;;  %v1740_v57 = vpack.c.bf16 %v6498_v27, %v6495_v20  ;;  %v5176_v43 = vld [vmem:[%s7316_s0 + $0xf0] sm:$0xff]   ;;  %v5178_v22 = vld [vmem:[%s7316_s0 + $0x138] sm:$0xff]   ;;  %v5180_v41 = vld [vmem:[%s7316_s0 + $0x160] sm:$0xff]  }
 0x281   :  { %v1741_v61 = vpack.c.bf16 %v6501_v63, %v6498_v27  ;;  %v1743_v37 = vpack.c.bf16 %v6507_v23, %v6504_v29  ;;  %v6528_v30 = vadd.f32 %v1728_v55, %v6280_v46  ;;  %v5165_v46 = vld [vmem:[%s7316_s0 + $0xd0] sm:$0xff]   ;;  %v1742_v21 = vpack.c.bf16 %v6504_v29, %v6501_v63  ;;  %v5179_v42 = vld [vmem:[%s7316_s0 + $0xf8] sm:$0xff]   ;;  %v5181_v44 = vld [vmem:[%s7316_s0 + $0x168] sm:$0xff]  }
 0x282   :  { %1979 = vmatprep.mubr.bf16.mxu0 %v1738_v52  ;;  %4843 = vmatprep.mubr.bf16.mxu1 %v1739_v53  ;;  %v5182_v52 = vld [vmem:[%s7316_s0 + $0x170] sm:$0xff]  }
 0x283   :  { %1980 = vmatmul.mubr.bf16.vlgmr.msra.gmra.mrb[32].mxu0 %v1737_v51  ;;  %4844 = vmatmul.mubr.bf16.vlgmr.msra.gmra.mrb[20].mxu1 %v1741_v61  ;;  %v1745_v39 = vpack.c.bf16 %v7317_v54, %v6528_v30  ;;  %v1744_v50 = vpack.c.bf16 %v6528_v30, %v6507_v23 }
 0x284   :  { %1987 = vmatprep.mubr.bf16.mxu0 %v1740_v57  ;;  %4847 = vmatprep.mubr.bf16.mxu1 %v1743_v37 }
 0x285   :  { %4624 = vmatpush3.bf16.msra.mxu0 %v5161_v56  ;;  %4852 = vmatpush3.bf16.msra.mxu1 %v6476_v58  ;;  %v5166_v58 = vld [vmem:[%s7316_s0 + $0x118] sm:$0xff]   ;;  %v6601_v56 = vld [vmem:[%s7318_s26 + $0x1] ss:$0 sm:$0xff] }
 0x286   :  { %4625 = vmatprep.subr.bf16.mxu0 %v5162_v32  ;;  %4853 = vmatprep.subr.bf16.mxu1 %v5171_v36 }
 0x289   :  { %4626 = vmatpush3.bf16.msra.mxu0 %v5163_v40  ;;  %4854 = vmatpush3.bf16.msra.mxu1 %v5171_v36 }
 0x28a   :  { %4627 = vmatprep.subr.bf16.mxu0 %v5164_v45  ;;  %4855 = vmatprep.subr.bf16.mxu1 %v5174_v47 }
 0x28b   :  { %1988 = vmatmul.mubr.bf16.gmra.mrb[36].mxu0 %v1739_v53  ;;  %4848 = vmatmul.mubr.bf16.gmra.mrb[24].mxu1 %v1745_v39  ;;  %v5183_v53 = vld [vmem:[%s7316_s0 + $0x178] sm:$0xff]  }
 0x28c   :  { %1995 = vmatprep.mubr.bf16.mxu0 %v1742_v21 }
 0x28d   :  { %4628 = vmatpush3.bf16.msra.mxu0 %v5165_v46  ;;  %4856 = vmatpush3.bf16.msra.mxu1 %v5174_v47  ;;  %v4408_v47 = vld [vmem:[%s7237_s8 + $0x20] sm:$0xff] }
 0x28e   :  { %4629 = vmatprep.subr.bf16.mxu0 %v5166_v58  ;;  %4857 = vmatprep.subr.bf16.mxu1 %v5177_v31 }
 0x291   :  { %4630 = vmatpush3.bf16.msra.mxu0 %v5167_v28  ;;  %4858 = vmatpush3.bf16.msra.mxu1 %v5177_v31 }
 0x292   :  { %4631 = vmatprep.subr.bf16.mxu0 %v5169_v59  ;;  %4859 = vmatprep.subr.bf16.mxu1 %v5180_v41 }
 0x293   :  { %1996 = vmatmul.mubr.bf16.gmra.mrb[40].mxu0 %v1741_v61 }
 0x294   :  { %2003 = vmatprep.mubr.bf16.mxu0 %v1744_v50 }
 0x295   :  { %4632 = vmatpush3.bf16.msra.mxu0 %v5170_v34  ;;  %4860 = vmatpush3.bf16.msra.mxu1 %v5180_v41 }
 0x296   :  { %4633 = vmatprep.subr.bf16.mxu0 %v5172_v49  ;;  %4861 = vmatprep.subr.bf16.mxu1 %v5181_v44 }
 0x299   :  { %4634 = vmatpush3.bf16.msra.mxu0 %v5173_v60  ;;  %4862 = vmatpush3.bf16.msra.mxu1 %v5181_v44 }
 0x29a   :  { %4635 = vmatprep.subr.bf16.mxu0 %v5175_v62  ;;  %4863 = vmatprep.subr.bf16.mxu1 %v5182_v52  ;;  %v4409_v62 = vld [vmem:[%s7237_s8 + $0x28] sm:$0xff] }
 0x29b   :  { %2004 = vmatmul.mubr.bf16.gmra.mrb[44].mxu0 %v1743_v37 }
 0x29d   :  { %4636 = vmatpush3.bf16.msra.mxu0 %v5176_v43  ;;  %4864 = vmatpush3.bf16.msra.mxu1 %v5182_v52 }
 0x29e   :  { %4637 = vmatprep.subr.bf16.mxu0 %v5178_v22  ;;  %4865 = vmatprep.subr.bf16.mxu1 %v5183_v53 }
 0x2a1   :  { %4638 = vmatpush3.bf16.msra.mxu0 %v5179_v42  ;;  %4866 = vmatpush3.bf16.msra.mxu1 %v5183_v53 }
 0x2a2   :  { %5069 = vmatprep.subr.bf16.mxu0 %v7319_v35  ;;  %4897 = vmatprep.subr.bf16.mxu1 %v7317_v54 }
 0x356   :  { %v4587_v51 = vpop.f32.mrb[32].mxu0  ;;  %v4845_v61 = vpop.f32.mrb[20].mxu1 }
 0x357   :  { %v4588_v55 = vpop.f32.mrb[33].mxu0  ;;  %v2046_v57 = vpop.f32.mrb[21].mxu1 }
 0x358   :  { %v4589_v37 = vadd.f32 %v4588_v55, %v4587_v51  ;;  %v4590_v32 = vpop.f32.mrb[34].mxu0  ;;  %v4846_v40 = vpop.f32.mrb[22].mxu1  ;;  %v5070_v55 = vpack.c.bf16 %v4409_v62, %v4408_v47 }
 0x359   :  { %v4591_v45 = vpop.f32.mrb[35].mxu0  ;;  %v2049_v39 = vpop.f32.mrb[23].mxu1 }
 0x35a   :  { %v1982_v46 = vadd.f32 %v4589_v37, %v6601_v56  ;;  %v4592_v21 = vadd.f32 %v4591_v45, %v4590_v32  ;;  %v4410_v37 = vld [vmem:[%s7237_s8 + $0x30] sm:$0xff]  ;;  %v4411_v32 = vld [vmem:[%s7237_s8 + $0x38] sm:$0xff] }
 0x35c   :  { %v2047_v58 = vadd.f32 %v2046_v57, %v1982_v46  ;;  %v1985_v28 = vadd.f32 %v4592_v21, %v6601_v56 }
 0x35e   :  { %v2050_v59 = vadd.f32 %v2049_v39, %v1985_v28  ;;  %v4593_v34 = vpop.f32.mrb[36].mxu0  ;;  %v4849_v50 = vpop.f32.mrb[24].mxu1  ;;  %v2077_v36 = vmax.f32 %v2047_v58, 0.0  ;;  %v5073_v28 = vpack.c.bf16 %v4411_v32, %v4410_v37 }
 0x35f   :  { %v4594_v49 = vpop.f32.mrb[37].mxu0  ;;  %v2062_v60 = vpop.f32.mrb[25].mxu1 }
 0x360   :  { %v2078_v43 = vmax.f32 %v2050_v59, 0.0  ;;  %v4595_v31 = vadd.f32 %v4594_v49, %v4593_v34  ;;  %v4596_v22 = vpop.f32.mrb[38].mxu0  ;;  %v4850_v42 = vpop.f32.mrb[26].mxu1  ;;  %v2085_v57 = vpack.c.bf16 %v2077_v36, %v7317_v54 }
 0x361   :  { %v4597_v41 = vpop.f32.mrb[39].mxu0  ;;  %v2065_v44 = vpop.f32.mrb[27].mxu1 }
 0x362   :  { %v2086_v52 = vpack.c.bf16 %v2078_v43, %v2077_v36  ;;  %v1990_v53 = vadd.f32 %v4595_v31, %v6601_v56  ;;  %v4598_v51 = vadd.f32 %v4597_v41, %v4596_v22 }
 0x364   :  { %v2055_v45 = vadd.f32 %v4845_v61, %v1990_v53  ;;  %v1993_v39 = vadd.f32 %v4598_v51, %v6601_v56  ;;  %2327 = vmatprep.mubr.bf16.mxu0 %v2086_v52 }
 0x365   :  { %2328 = vmatmul.mubr.bf16.vlgmr.msra.gmra.mrb[48].mxu0 %v2085_v57 }
 0x366   :  { %v2079_v46 = vmax.f32 %v2055_v45, 0.0  ;;  %v2058_v21 = vadd.f32 %v4846_v40, %v1993_v39  ;;  %5071 = vmatpush3.bf16.msra.mxu0 %v5070_v55  ;;  %v4599_v58 = vpop.f32.mrb[40].mxu0 }
 0x367   :  { %v4600_v59 = vpop.f32.mrb[41].mxu0  ;;  %5072 = vmatprep.subr.bf16.mxu0 %v7319_v35 }
 0x368   :  { %v2080_v34 = vmax.f32 %v2058_v21, 0.0  ;;  %v4601_v36 = vadd.f32 %v4600_v59, %v4599_v58  ;;  %v4602_v49 = vpop.f32.mrb[42].mxu0  ;;  %v2087_v47 = vpack.c.bf16 %v2079_v46, %v2078_v43 }
 0x369   :  { %v4603_v62 = vpop.f32.mrb[43].mxu0 }
 0x36a   :  { %v1998_v31 = vadd.f32 %v4601_v36, %v6601_v56  ;;  %v4604_v61 = vadd.f32 %v4603_v62, %v4602_v49  ;;  %4867 = vmatprep.mubr.bf16.mxu1 %v2087_v47  ;;  %v2088_v22 = vpack.c.bf16 %v2080_v34, %v2079_v46  ;;  %5074 = vmatpush3.bf16.msra.mxu0 %v5073_v28  ;;  %v4418_v62 = vld [vmem:[%s7239_s10 + $0x38] sm:$0xff] }
 0x36b   :  { %5075 = vmatprep.subr.bf16.mxu0 %v7319_v35 }
 0x36c   :  { %v2063_v40 = vadd.f32 %v2062_v60, %v1998_v31  ;;  %v2001_v41 = vadd.f32 %v4604_v61, %v6601_v56  ;;  %2335 = vmatprep.mubr.bf16.mxu0 %v2088_v22 }
 0x36d   :  { %2336 = vmatmul.mubr.bf16.gmra.mrb[52].mxu0 %v2087_v47  ;;  %v4417_v47 = vld [vmem:[%s7239_s10 + $0x30] sm:$0xff] }
 0x36e   :  { %v2081_v52 = vmax.f32 %v2063_v40, 0.0  ;;  %v2066_v53 = vadd.f32 %v2065_v44, %v2001_v41  ;;  %v4605_v51 = vpop.f32.mrb[44].mxu0  ;;  %v5079_v31 = vpack.c.bf16 %v4418_v62, %v4417_v47 }
 0x36f   :  { %v4606_v55 = vpop.f32.mrb[45].mxu0 }
 0x370   :  { %v2089_v57 = vpack.c.bf16 %v2081_v52, %v2080_v34  ;;  %v2082_v43 = vmax.f32 %v2066_v53, 0.0  ;;  %v4607_v37 = vadd.f32 %v4606_v55, %v4605_v51  ;;  %v4608_v32 = vpop.f32.mrb[46].mxu0 }
 0x371   :  { %v4609_v45 = vpop.f32.mrb[47].mxu0 }
 0x372   :  { %v2006_v39 = vadd.f32 %v4607_v37, %v6601_v56  ;;  %v4610_v46 = vadd.f32 %v4609_v45, %v4608_v32  ;;  %4868 = vmatmul.mubr.bf16.vlgmr.msra.gmra.mrb[28].mxu1 %v2089_v57  ;;  %v2090_v21 = vpack.c.bf16 %v2082_v43, %v2081_v52  ;;  %v4383_v37 = vld [vmem:[%s7321_s5 + $0x1] ss:$0 sm:$0xff] }
 0x374   :  { %v2071_v58 = vadd.f32 %v4849_v50, %v2006_v39  ;;  %v2009_v60 = vadd.f32 %v4610_v46, %v6601_v56  ;;  %2343 = vmatprep.mubr.bf16.mxu0 %v2090_v21  ;;  %v4415_v56 = vld [vmem:[%s7239_s10 + $0x20] sm:$0xff]  ;;  %v4416_v50 = vld [vmem:[%s7239_s10 + $0x28] sm:$0xff] }
 0x375   :  { %2344 = vmatmul.mubr.bf16.gmra.mrb[56].mxu0 %v2089_v57 }
 0x376   :  { %v2083_v28 = vmax.f32 %v2071_v58, 0.0  ;;  %v2074_v59 = vadd.f32 %v4850_v42, %v2009_v60  ;;  %v5076_v42 = vpack.c.bf16 %v4416_v50, %v4415_v56 }
 0x378   :  { %v2084_v44 = vmax.f32 %v2074_v59, 0.0  ;;  %v2091_v36 = vpack.c.bf16 %v2083_v28, %v2082_v43 }
 0x37a   :  { %4871 = vmatprep.mubr.bf16.mxu1 %v2091_v36  ;;  %v2092_v34 = vpack.c.bf16 %v2084_v44, %v2083_v28  ;;  %v2093_v49 = vpack.c.bf16 %v7317_v54, %v2084_v44 }
 0x37c   :  { %2351 = vmatprep.mubr.bf16.mxu0 %v2092_v34  ;;  %4872 = vmatmul.mubr.bf16.gmra.mrb[32].mxu1 %v2093_v49 }
 0x37d   :  { %2352 = vmatmul.mubr.bf16.gmra.mrb[60].mxu0 %v2091_v36 }
 0x37e   :  { %4883 = vmatprep.mubr.msk.f32.mxu0 %vm5353_vm0, %v7317_v54 }
 0x385   :  { %4884 = vmatmul.mubr.msk.f32.vlgmr.msra.gmra.mrb[64].mxu0 %vm1550_vm1, %v6383_v48 }
 0x386   :  { %5077 = vmatpush3.bf16.msra.mxu0 %v5076_v42  ;;  %4894 = vmatprep.mubr.msk.f32.mxu0 %vm5353_vm0, %v7317_v54 }
 0x387   :  { %5078 = vmatprep.subr.bf16.mxu0 %v7319_v35 }
 0x38a   :  { %5080 = vmatpush3.bf16.msra.mxu0 %v5079_v31 }
 0x38b   :  { %4917 = vmatprep.subr.bf16.mxu0 %v7317_v54 }
 0x38d   :  { %4895 = vmatmul.mubr.msk.f32.vlgmr.msra.gmra.mrb[66].mxu0 %vm1550_vm1, %v6383_v48 }
 0x438   :  { %v4639_v61 = vpop.f32.mrb[48].mxu0 }
 0x439   :  { %v4640_v22 = vpop.f32.mrb[49].mxu0 }
 0x43a   :  { %v4641_v40 = vadd.f32 %v4640_v22, %v4639_v61  ;;  %v4642_v41 = vpop.f32.mrb[50].mxu0 }
 0x43b   :  { %v4643_v52 = vpop.f32.mrb[51].mxu0 }
 0x43c   :  { %v4644_v53 = vadd.f32 %v4643_v52, %v4642_v41  ;;  %v2330_v46 = vadd.f32 %v4641_v40, %v4383_v37 }
 0x43e   :  { %v2333_v44 = vadd.f32 %v4644_v53, %v4383_v37 }
 0x440   :  { %v4645_v51 = vpop.f32.mrb[52].mxu0 }
 0x441   :  { %v4646_v55 = vpop.f32.mrb[53].mxu0 }
 0x442   :  { %v4647_v57 = vadd.f32 %v4646_v55, %v4645_v51  ;;  %v4648_v43 = vpop.f32.mrb[54].mxu0 }
 0x443   :  { %v4649_v32 = vpop.f32.mrb[55].mxu0 }
 0x444   :  { %v4650_v35 = vadd.f32 %v4649_v32, %v4648_v43  ;;  %v2338_v45 = vadd.f32 %v4647_v57, %v4383_v37 }
 0x445   :  { %v4869_v39 = vpop.f32.mrb[28].mxu1 }
 0x446   :  { %v2403_v21 = vadd.f32 %v4869_v39, %v2338_v45  ;;  %v2394_v58 = vpop.f32.mrb[29].mxu1  ;;  %v2341_v60 = vadd.f32 %v4650_v35, %v4383_v37 }
 0x447   :  { %v2395_v28 = vadd.f32 %v2394_v58, %v2330_v46  ;;  %v4870_v59 = vpop.f32.mrb[30].mxu1 }
 0x448   :  { %v2406_v36 = vadd.f32 %v4870_v59, %v2341_v60  ;;  %v4651_v34 = vpop.f32.mrb[56].mxu0  ;;  %v2397_v49 = vpop.f32.mrb[31].mxu1  ;;  %v4413_v59 = vld [vmem:[%s7238_s9 + $0x1] ss:$0 sm:$0xff] }
 0x449   :  { %v2398_v56 = vadd.f32 %v2397_v49, %v2333_v44  ;;  %v4652_v50 = vpop.f32.mrb[57].mxu0 }
 0x44a   :  { %v4653_v42 = vadd.f32 %v4652_v50, %v4651_v34  ;;  %v4654_v47 = vpop.f32.mrb[58].mxu0 }
 0x44b   :  { %v4655_v62 = vpop.f32.mrb[59].mxu0 }
 0x44c   :  { %v4656_v31 = vadd.f32 %v4655_v62, %v4654_v47  ;;  %v2346_v22 = vadd.f32 %v4653_v42, %v4383_v37 }
 0x44e   :  { %v2349_v57 = vadd.f32 %v4656_v31, %v4383_v37 }
 0x44f   :  { %v4873_v61 = vpop.f32.mrb[32].mxu1 }
 0x450   :  { %v4657_v41 = vpop.f32.mrb[60].mxu0  ;;  %v2410_v52 = vpop.f32.mrb[33].mxu1 }
 0x451   :  { %v2411_v40 = vadd.f32 %v2410_v52, %v2346_v22  ;;  %v4658_v51 = vpop.f32.mrb[61].mxu0  ;;  %v4874_v55 = vpop.f32.mrb[34].mxu1 }
 0x452   :  { %v4659_v43 = vadd.f32 %v4658_v51, %v4657_v41  ;;  %v4660_v32 = vpop.f32.mrb[62].mxu0  ;;  %v2413_v53 = vpop.f32.mrb[35].mxu1 }
 0x453   :  { %v2414_v35 = vadd.f32 %v2413_v53, %v2349_v57  ;;  %v4661_v45 = vpop.f32.mrb[63].mxu0 }
 0x454   :  { %v2354_v39 = vadd.f32 %v4659_v43, %v4383_v37  ;;  %v4662_v46 = vadd.f32 %v4661_v45, %v4660_v32 }
 0x456   :  { %v2419_v58 = vadd.f32 %v4873_v61, %v2354_v39  ;;  %v2357_v60 = vadd.f32 %v4662_v46, %v4383_v37  ;;  %v4420_v37 = vld [vmem:[%s7240_s11 + $0x1] ss:$0 sm:$0xff] }
 0x458   :  { %v2422_v44 = vadd.f32 %v4874_v55, %v2357_v60  ;;  %v2504_v34 = vpop.f32.mrb[64].mxu0 }
 0x459   :  { %v2505_v49 = vadd.f32 %v4413_v59, %v2504_v34  ;;  %v4885_v50 = vpop.f32.mrb[65].mxu0 }
 0x45b   :  { %v2591_v42 = vmul.f32 %v2505_v49, %v2395_v28  ;;  %v2592_v47 = vmul.f32 %v2505_v49, %v2398_v56  ;;  %v2593_v62 = vmul.f32 %v2505_v49, %v2403_v21  ;;  %v2594_v31 = vmul.f32 %v2505_v49, %v2406_v36 }
 0x45c   :  { %v2595_v22 = vmul.f32 %v2505_v49, %v2411_v40  ;;  %v2596_v41 = vmul.f32 %v2505_v49, %v2414_v35  ;;  %v2597_v52 = vmul.f32 %v2505_v49, %v2419_v58  ;;  %v2598_v51 = vmul.f32 %v2505_v49, %v2422_v44 }
 0x460   :  { %v2587_v61 = vpop.f32.mrb[66].mxu0 }
 0x461   :  { %v2588_v57 = vadd.f32 %v4420_v37, %v2587_v61  ;;  %v4896_v43 = vpop.f32.mrb[67].mxu0 }
 0x463   :  { %v2599_v32 = vadd.f32 %v2591_v42, %v2588_v57  ;;  %v2600_v55 = vadd.f32 %v2592_v47, %v2588_v57  ;;  %v2601_v53 = vadd.f32 %v2593_v62, %v2588_v57  ;;  %v2602_v45 = vadd.f32 %v2594_v31, %v2588_v57 }
 0x464   :  { %v2603_v39 = vadd.f32 %v2595_v22, %v2588_v57  ;;  %v2604_v28 = vadd.f32 %v2596_v41, %v2588_v57  ;;  %v2605_v56 = vadd.f32 %v2597_v52, %v2588_v57  ;;  %v2606_v21 = vadd.f32 %v2598_v51, %v2588_v57 }
 0x465   :  { %v2607_v36 = vmax.f32 %v2599_v32, 0.0  ;;  %v2608_v40 = vmax.f32 %v2600_v55, 0.0  ;;  %v2609_v35 = vmax.f32 %v2601_v53, 0.0  ;;  %v2610_v46 = vmax.f32 %v2602_v45, 0.0 }
 0x466   :  { %v2611_v58 = vmax.f32 %v2603_v39, 0.0  ;;  %v2612_v60 = vmax.f32 %v2604_v28, 0.0  ;;  %v2613_v59 = vmax.f32 %v2605_v56, 0.0  ;;  %v2614_v44 = vmax.f32 %v2606_v21, 0.0 }
 0x467   :  { %v2615_v34 = vadd.f32 %v2607_v36, %v6489_v33  ;;  %v2616_v49 = vadd.f32 %v2608_v40, %v6492_v38  ;;  %v2617_v50 = vadd.f32 %v2609_v35, %v6495_v20  ;;  %v2618_v42 = vadd.f32 %v2610_v46, %v6498_v27 }
 0x468   :  { %v2619_v47 = vadd.f32 %v2611_v58, %v6501_v63  ;;  %v2620_v62 = vadd.f32 %v2612_v60, %v6504_v29  ;;  %v2621_v31 = vadd.f32 %v2613_v59, %v6507_v23  ;;  %v2622_v22 = vadd.f32 %v2614_v44, %v6528_v30 }
 0x469   :  { %v2623_v41 = vmax.f32 %v2615_v34, 0.0  ;;  %v2624_v52 = vmax.f32 %v2616_v49, 0.0  ;;  %v2625_v51 = vmax.f32 %v2617_v50, 0.0  ;;  %v2626_v37 = vmax.f32 %v2618_v42, 0.0 }
 0x46a   :  { %v2627_v61 = vmax.f32 %v2619_v47, 0.0  ;;  %v2628_v33 = vmax.f32 %v2620_v62, 0.0  ;;  %v2629_v57 = vmax.f32 %v2621_v31, 0.0  ;;  %v2630_v38 = vmax.f32 %v2622_v22, 0.0 }
 0x46b   :  { %v2631_v43 = vpack.c.bf16 %v2623_v41, %v2623_v41  ;;  %v2632_v20 = vpack.c.bf16 %v2624_v52, %v2624_v52  ;;  %v6665_v32 = vpack.c.bf16 %v2625_v51, %v2625_v51  ;;  %v6667_v27 = vpack.c.bf16 %v2626_v37, %v2626_v37 }
 0x46c   :  { %v6669_v63 = vpack.c.bf16 %v2627_v61, %v2627_v61  ;;  %v6671_v29 = vpack.c.bf16 %v2628_v33, %v2628_v33  ;;  %v6673_v23 = vpack.c.bf16 %v2629_v57, %v2629_v57  ;;  %v6675_v30 = vpack.c.bf16 %v2630_v38, %v2630_v38 }
 0x46d   :  { %5341 = dma.done.wait [#allocation5], 8192 }
 0x46e   :  { %5342 = vsyncadd [#allocation5], 4294959104  ;;  %4898 = vmatpush3.bf16.msra.mxu1 %v5521_v8  ;;  %4918 = vmatpush3.bf16.msra.mxu0 %v5481_v0  ;;  %v7322_v0 = vld [vmem:[#allocation23_spill] sm:$0xff]  ;;  %v7347_v45 = vld [vmem:[#allocation44_spill] sm:$0xff] }
 0x46f   :  { %4899 = vmatprep.subr.bf16.mxu1 %v7317_v54  ;;  %4919 = vmatprep.subr.bf16.mxu0 %v7317_v54  ;;  %v7330_v8 = vld [vmem:[#allocation27_spill] sm:$0xff]  ;;  %v7348_v39 = vld [vmem:[#allocation52_spill] sm:$0xff]  ;;  %v7349_v28 = vld [vmem:[#allocation45_spill] sm:$0xff] }
 0x470   :  { %4913 = vmatprep.mubr.msk.bf16.mxu1 %vm5353_vm0, %v7317_v54  ;;  %4933 = vmatprep.mubr.msk.bf16.mxu0 %vm5353_vm0, %v7317_v54  ;;  %v7345_v55 = vld [vmem:[#allocation35_spill] sm:$0xff]  ;;  %v7350_v56 = vld [vmem:[#allocation53_spill] sm:$0xff]  ;;  %v7351_v21 = vld [vmem:[#allocation46_spill] sm:$0xff] }
 0x471   :  { %v7346_v53 = vld [vmem:[#allocation43_spill] sm:$0xff]  ;;  %v7352_v36 = vld [vmem:[#allocation54_spill] sm:$0xff]  ;;  %v7355_v46 = vld [vmem:[#allocation48_spill] sm:$0xff] }
 0x472   :  { %4900 = vmatpush3.bf16.msra.mxu1 %v5526_v9  ;;  %4920 = vmatpush3.bf16.msra.mxu0 %v5486_v1  ;;  %v7323_v1 = vld [vmem:[#allocation19_spill] sm:$0xff]  ;;  %v7331_v9 = vld [vmem:[#allocation28_spill] sm:$0xff]  ;;  %v7357_v60 = vld [vmem:[#allocation49_spill] sm:$0xff] }
 0x473   :  { %4901 = vmatprep.subr.bf16.mxu1 %v7317_v54  ;;  %4921 = vmatprep.subr.bf16.mxu0 %v7317_v54  ;;  %v7353_v40 = vld [vmem:[#allocation47_spill] sm:$0xff]  ;;  %v7356_v58 = vld [vmem:[#allocation56_spill] sm:$0xff]  ;;  %v7358_v59 = vld [vmem:[#allocation57_spill] sm:$0xff] }
 0x474   :  { %v7354_v35 = vld [vmem:[#allocation55_spill] sm:$0xff]  ;;  %v7359_v44 = vld [vmem:[#allocation50_spill] sm:$0xff] }
 0x475   :  { %v7360_v34 = vld [vmem:[#allocation58_spill] sm:$0xff]  ;;  %v7361_v49 = vld [vmem:[#allocation51_spill] sm:$0xff] }
 0x476   :  { %4902 = vmatpush3.bf16.msra.mxu1 %v5531_v10  ;;  %4922 = vmatpush3.bf16.msra.mxu0 %v5491_v2  ;;  %v7324_v2 = vld [vmem:[#allocation24_spill] sm:$0xff]  ;;  %v7362_v50 = vld [vmem:[#allocation59_spill] sm:$0xff] }
 0x477   :  { %4903 = vmatprep.subr.bf16.mxu1 %v7317_v54  ;;  %4923 = vmatprep.subr.bf16.mxu0 %v7317_v54  ;;  %v7332_v10 = vld [vmem:[#allocation36_spill] sm:$0xff] }
 0x47a   :  { %4904 = vmatpush3.bf16.msra.mxu1 %v5536_v11  ;;  %4924 = vmatpush3.bf16.msra.mxu0 %v5496_v3  ;;  %v7325_v3 = vld [vmem:[#allocation20_spill] sm:$0xff]  ;;  %v7333_v11 = vld [vmem:[#allocation29_spill] sm:$0xff] }
 0x47b   :  { %4905 = vmatprep.subr.bf16.mxu1 %v7317_v54  ;;  %4925 = vmatprep.subr.bf16.mxu0 %v7317_v54 }
 0x47e   :  { %4906 = vmatpush3.bf16.msra.mxu1 %v5541_v12  ;;  %4926 = vmatpush3.bf16.msra.mxu0 %v5501_v4  ;;  %v7326_v4 = vld [vmem:[#allocation25_spill] sm:$0xff] }
 0x47f   :  { %4907 = vmatprep.subr.bf16.mxu1 %v7317_v54  ;;  %4927 = vmatprep.subr.bf16.mxu0 %v7317_v54  ;;  %v7334_v12 = vld [vmem:[#allocation37_spill] sm:$0xff] }
 0x482   :  { %4908 = vmatpush3.bf16.msra.mxu1 %v5546_v13  ;;  %4928 = vmatpush3.bf16.msra.mxu0 %v5506_v5  ;;  %v7327_v5 = vld [vmem:[#allocation21_spill] sm:$0xff]  ;;  %v7335_v13 = vld [vmem:[#allocation30_spill] sm:$0xff] }
 0x483   :  { %4909 = vmatprep.subr.bf16.mxu1 %v7317_v54  ;;  %4929 = vmatprep.subr.bf16.mxu0 %v7317_v54 }
 0x486   :  { %4910 = vmatpush3.bf16.msra.mxu1 %v5551_v14  ;;  %4930 = vmatpush3.bf16.msra.mxu0 %v5511_v6  ;;  %v7328_v6 = vld [vmem:[#allocation26_spill] sm:$0xff] }
 0x487   :  { %4911 = vmatprep.subr.bf16.mxu1 %v7317_v54  ;;  %4931 = vmatprep.subr.bf16.mxu0 %v7317_v54  ;;  %v7336_v14 = vld [vmem:[#allocation38_spill] sm:$0xff] }
 0x48a   :  { %4912 = vmatpush3.bf16.msra.mxu1 %v5556_v15  ;;  %4932 = vmatpush3.bf16.msra.mxu0 %v5516_v7  ;;  %v7329_v7 = vld [vmem:[#allocation22_spill] sm:$0xff]  ;;  %v7337_v15 = vld [vmem:[#allocation31_spill] sm:$0xff] }
 0x48b   :  { %4937 = vmatprep.subr.bf16.mxu1 %v7317_v54  ;;  %4957 = vmatprep.subr.bf16.mxu0 %v7317_v54 }
 0x48d   :  { %4914 = vmatmul.mubr.bf16.vlgmr.msra.gmra.mrb[36].mxu1 %v2632_v20  ;;  %4934 = vmatmul.mubr.bf16.vlgmr.msra.gmra.mrb[68].mxu0 %v2631_v43 }
 0x48e   :  { %4938 = vmatpush3.bf16.msra.mxu1 %v5561_v16  ;;  %4958 = vmatpush3.bf16.msra.mxu0 %v5601_v24  ;;  %v7338_v16 = vld [vmem:[#allocation39_spill] sm:$0xff]  ;;  %v7342_v24 = vld [vmem:[#allocation41_spill] sm:$0xff] }
 0x48f   :  { %4939 = vmatprep.subr.bf16.mxu1 %v7317_v54  ;;  %4959 = vmatprep.subr.bf16.mxu0 %v7317_v54 }
 0x490   :  { %4953 = vmatprep.mubr.msk.bf16.mxu1 %vm5353_vm0, %v7317_v54  ;;  %4973 = vmatprep.mubr.msk.bf16.mxu0 %vm5353_vm0, %v7317_v54 }
 0x492   :  { %4940 = vmatpush3.bf16.msra.mxu1 %v5566_v17  ;;  %4960 = vmatpush3.bf16.msra.mxu0 %v5606_v25  ;;  %v7339_v17 = vld [vmem:[#allocation32_spill] sm:$0xff]  ;;  %v7343_v25 = vld [vmem:[#allocation34_spill] sm:$0xff] }
 0x493   :  { %4941 = vmatprep.subr.bf16.mxu1 %v7317_v54  ;;  %4961 = vmatprep.subr.bf16.mxu0 %v7317_v54 }
 0x496   :  { %4942 = vmatpush3.bf16.msra.mxu1 %v5571_v18  ;;  %4962 = vmatpush3.bf16.msra.mxu0 %v5611_v26  ;;  %v7340_v18 = vld [vmem:[#allocation40_spill] sm:$0xff]  ;;  %v7344_v26 = vld [vmem:[#allocation42_spill] sm:$0xff] }
 0x497   :  { %4943 = vmatprep.subr.bf16.mxu1 %v7317_v54  ;;  %4963 = vmatprep.subr.bf16.mxu0 %v7317_v54 }
 0x49a   :  { %4944 = vmatpush3.bf16.msra.mxu1 %v5576_v19  ;;  %4964 = vmatpush3.bf16.msra.mxu0 %v7322_v0  ;;  %v7341_v19 = vld [vmem:[#allocation33_spill] sm:$0xff] }
 0x49b   :  { %4945 = vmatprep.subr.bf16.mxu1 %v7317_v54  ;;  %4965 = vmatprep.subr.bf16.mxu0 %v7317_v54 }
 0x49e   :  { %4946 = vmatpush3.bf16.msra.mxu1 %v7323_v1  ;;  %4966 = vmatpush3.bf16.msra.mxu0 %v7324_v2 }
 0x49f   :  { %4947 = vmatprep.subr.bf16.mxu1 %v7317_v54  ;;  %4967 = vmatprep.subr.bf16.mxu0 %v7317_v54 }
 0x4a2   :  { %4948 = vmatpush3.bf16.msra.mxu1 %v7325_v3  ;;  %4968 = vmatpush3.bf16.msra.mxu0 %v7326_v4 }
 0x4a3   :  { %4949 = vmatprep.subr.bf16.mxu1 %v7317_v54  ;;  %4969 = vmatprep.subr.bf16.mxu0 %v7317_v54 }
 0x4a6   :  { %4950 = vmatpush3.bf16.msra.mxu1 %v7327_v5  ;;  %4970 = vmatpush3.bf16.msra.mxu0 %v7328_v6 }
 0x4a7   :  { %4951 = vmatprep.subr.bf16.mxu1 %v7317_v54  ;;  %4971 = vmatprep.subr.bf16.mxu0 %v7317_v54 }
 0x4aa   :  { %4952 = vmatpush3.bf16.msra.mxu1 %v7329_v7  ;;  %4972 = vmatpush3.bf16.msra.mxu0 %v7330_v8 }
 0x4ab   :  { %4977 = vmatprep.subr.bf16.mxu1 %v7317_v54  ;;  %4997 = vmatprep.subr.bf16.mxu0 %v7317_v54 }
 0x4ad   :  { %4954 = vmatmul.mubr.bf16.vlgmr.msra.gmra.mrb[40].mxu1 %v6665_v32  ;;  %4974 = vmatmul.mubr.bf16.vlgmr.msra.gmra.mrb[72].mxu0 %v6667_v27 }
 0x4ae   :  { %4978 = vmatpush3.bf16.msra.mxu1 %v7331_v9  ;;  %4998 = vmatpush3.bf16.msra.mxu0 %v7332_v10 }
 0x4af   :  { %4979 = vmatprep.subr.bf16.mxu1 %v7317_v54  ;;  %4999 = vmatprep.subr.bf16.mxu0 %v7317_v54 }
 0x4b0   :  { %4993 = vmatprep.mubr.msk.bf16.mxu1 %vm5353_vm0, %v7317_v54  ;;  %5013 = vmatprep.mubr.msk.bf16.mxu0 %vm5353_vm0, %v7317_v54 }
 0x4b2   :  { %4980 = vmatpush3.bf16.msra.mxu1 %v7333_v11  ;;  %5000 = vmatpush3.bf16.msra.mxu0 %v7334_v12 }
 0x4b3   :  { %4981 = vmatprep.subr.bf16.mxu1 %v7317_v54  ;;  %5001 = vmatprep.subr.bf16.mxu0 %v7317_v54 }
 0x4b6   :  { %4982 = vmatpush3.bf16.msra.mxu1 %v7335_v13  ;;  %5002 = vmatpush3.bf16.msra.mxu0 %v7336_v14  ;;  %v4422_v13 = vld [vmem:[%s7241_s12] ss:$0 sm:$0xff] }
 0x4b7   :  { %4983 = vmatprep.subr.bf16.mxu1 %v7317_v54  ;;  %5003 = vmatprep.subr.bf16.mxu0 %v7317_v54 }
 0x4ba   :  { %4984 = vmatpush3.bf16.msra.mxu1 %v7337_v15  ;;  %5004 = vmatpush3.bf16.msra.mxu0 %v7338_v16 }
 0x4bb   :  { %4985 = vmatprep.subr.bf16.mxu1 %v7317_v54  ;;  %5005 = vmatprep.subr.bf16.mxu0 %v7317_v54 }
 0x4be   :  { %4986 = vmatpush3.bf16.msra.mxu1 %v7339_v17  ;;  %5006 = vmatpush3.bf16.msra.mxu0 %v7340_v18 }
 0x4bf   :  { %4987 = vmatprep.subr.bf16.mxu1 %v7317_v54  ;;  %5007 = vmatprep.subr.bf16.mxu0 %v7317_v54 }
 0x4c2   :  { %4988 = vmatpush3.bf16.msra.mxu1 %v7341_v19  ;;  %5008 = vmatpush3.bf16.msra.mxu0 %v7342_v24 }
 0x4c3   :  { %4989 = vmatprep.subr.bf16.mxu1 %v7317_v54  ;;  %5009 = vmatprep.subr.bf16.mxu0 %v7317_v54 }
 0x4c6   :  { %4990 = vmatpush3.bf16.msra.mxu1 %v7343_v25  ;;  %5010 = vmatpush3.bf16.msra.mxu0 %v7344_v26 }
 0x4c7   :  { %4991 = vmatprep.subr.bf16.mxu1 %v7317_v54  ;;  %5011 = vmatprep.subr.bf16.mxu0 %v7317_v54 }
 0x4ca   :  { %4992 = vmatpush3.bf16.msra.mxu1 %v7345_v55  ;;  %5012 = vmatpush3.bf16.msra.mxu0 %v7346_v53 }
 0x4cb   :  { %5017 = vmatprep.subr.bf16.mxu1 %v7317_v54  ;;  %5037 = vmatprep.subr.bf16.mxu0 %v7317_v54 }
 0x4cd   :  { %4994 = vmatmul.mubr.bf16.vlgmr.msra.gmra.mrb[44].mxu1 %v6669_v63  ;;  %5014 = vmatmul.mubr.bf16.vlgmr.msra.gmra.mrb[76].mxu0 %v6671_v29 }
 0x4ce   :  { %5018 = vmatpush3.bf16.msra.mxu1 %v7347_v45  ;;  %5038 = vmatpush3.bf16.msra.mxu0 %v7348_v39 }
 0x4cf   :  { %5019 = vmatprep.subr.bf16.mxu1 %v7317_v54  ;;  %5039 = vmatprep.subr.bf16.mxu0 %v7317_v54 }
 0x4d0   :  { %5033 = vmatprep.mubr.msk.bf16.mxu1 %vm5353_vm0, %v7317_v54  ;;  %5053 = vmatprep.mubr.msk.bf16.mxu0 %vm5353_vm0, %v7317_v54 }
 0x4d2   :  { %5020 = vmatpush3.bf16.msra.mxu1 %v7349_v28  ;;  %5040 = vmatpush3.bf16.msra.mxu0 %v7350_v56 }
 0x4d3   :  { %5021 = vmatprep.subr.bf16.mxu1 %v7317_v54  ;;  %5041 = vmatprep.subr.bf16.mxu0 %v7317_v54 }
 0x4d6   :  { %5022 = vmatpush3.bf16.msra.mxu1 %v7351_v21  ;;  %5042 = vmatpush3.bf16.msra.mxu0 %v7352_v36 }
 0x4d7   :  { %5023 = vmatprep.subr.bf16.mxu1 %v7317_v54  ;;  %5043 = vmatprep.subr.bf16.mxu0 %v7317_v54 }
 0x4da   :  { %5024 = vmatpush3.bf16.msra.mxu1 %v7353_v40  ;;  %5044 = vmatpush3.bf16.msra.mxu0 %v7354_v35 }
 0x4db   :  { %5025 = vmatprep.subr.bf16.mxu1 %v7317_v54  ;;  %5045 = vmatprep.subr.bf16.mxu0 %v7317_v54 }
 0x4de   :  { %5026 = vmatpush3.bf16.msra.mxu1 %v7355_v46  ;;  %5046 = vmatpush3.bf16.msra.mxu0 %v7356_v58 }
 0x4df   :  { %5027 = vmatprep.subr.bf16.mxu1 %v7317_v54  ;;  %5047 = vmatprep.subr.bf16.mxu0 %v7317_v54 }
 0x4e2   :  { %5028 = vmatpush3.bf16.msra.mxu1 %v7357_v60  ;;  %5048 = vmatpush3.bf16.msra.mxu0 %v7358_v59 }
 0x4e3   :  { %5029 = vmatprep.subr.bf16.mxu1 %v7317_v54  ;;  %5049 = vmatprep.subr.bf16.mxu0 %v7317_v54 }
 0x4e6   :  { %5030 = vmatpush3.bf16.msra.mxu1 %v7359_v44  ;;  %5050 = vmatpush3.bf16.msra.mxu0 %v7360_v34 }
 0x4e7   :  { %5031 = vmatprep.subr.bf16.mxu1 %v7317_v54  ;;  %5051 = vmatprep.subr.bf16.mxu0 %v7317_v54 }
 0x4ea   :  { %5032 = vmatpush3.bf16.msra.mxu1 %v7361_v49  ;;  %5052 = vmatpush3.bf16.msra.mxu0 %v7362_v50 }
 0x4ed   :  { %5034 = vmatmul.mubr.bf16.vlgmr.msra.gmra.mrb[48].mxu1 %v6673_v23  ;;  %5054 = vmatmul.mubr.bf16.vlgmr.msra.gmra.mrb[80].mxu0 %v6675_v30 }
 0x560   :  { %v2695_v42 = vpop.f32.mrb[36].mxu1  ;;  %v2735_v47 = vpop.f32.mrb[68].mxu0 }
 0x561   :  { %v2736_v62 = vadd.f32 %v2735_v47, %v2695_v42  ;;  %v4915_v31 = vpop.f32.mrb[37].mxu1  ;;  %v4935_v22 = vpop.f32.mrb[69].mxu0 }
 0x562   :  { %v2698_v41 = vpop.f32.mrb[38].mxu1  ;;  %v2738_v52 = vpop.f32.mrb[70].mxu0 }
 0x563   :  { %v4916_v51 = vpop.f32.mrb[39].mxu1  ;;  %v4936_v37 = vpop.f32.mrb[71].mxu0 }
 0x580   :  { %v2784_v61 = vpop.f32.mrb[40].mxu1  ;;  %v2834_v33 = vpop.f32.mrb[72].mxu0 }
 0x581   :  { %v2790_v57 = vadd.f32 %v2784_v61, %v2736_v62  ;;  %v4955_v38 = vpop.f32.mrb[41].mxu1  ;;  %v4975_v43 = vpop.f32.mrb[73].mxu0 }
 0x582   :  { %v2787_v20 = vpop.f32.mrb[42].mxu1  ;;  %v2837_v32 = vpop.f32.mrb[74].mxu0 }
 0x583   :  { %v2840_v27 = vadd.f32 %v2834_v33, %v2790_v57  ;;  %v4956_v63 = vpop.f32.mrb[43].mxu1  ;;  %v4976_v29 = vpop.f32.mrb[75].mxu0 }
 0x5a0   :  { %v2884_v23 = vpop.f32.mrb[44].mxu1  ;;  %v2934_v30 = vpop.f32.mrb[76].mxu0 }
 0x5a1   :  { %v2890_v0 = vadd.f32 %v2884_v23, %v2840_v27  ;;  %v4995_v1 = vpop.f32.mrb[45].mxu1  ;;  %v5015_v2 = vpop.f32.mrb[77].mxu0 }
 0x5a2   :  { %v2887_v3 = vpop.f32.mrb[46].mxu1  ;;  %v2937_v4 = vpop.f32.mrb[78].mxu0 }
 0x5a3   :  { %v2940_v5 = vadd.f32 %v2934_v30, %v2890_v0  ;;  %v4996_v6 = vpop.f32.mrb[47].mxu1  ;;  %v5016_v7 = vpop.f32.mrb[79].mxu0 }
 0x5c0   :  { %v2984_v8 = vpop.f32.mrb[48].mxu1  ;;  %v3034_v9 = vpop.f32.mrb[80].mxu0 }
 0x5c1   :  { %v2990_v10 = vadd.f32 %v2984_v8, %v2940_v5  ;;  %v5035_v11 = vpop.f32.mrb[49].mxu1  ;;  %v5055_v12 = vpop.f32.mrb[81].mxu0 }
 0x5c2   :  { %v2987_v14 = vpop.f32.mrb[50].mxu1  ;;  %v3037_v15 = vpop.f32.mrb[82].mxu0 }
 0x5c3   :  { %v3040_v16 = vadd.f32 %v3034_v9, %v2990_v10  ;;  %v5036_v17 = vpop.f32.mrb[51].mxu1  ;;  %v5056_v18 = vpop.f32.mrb[83].mxu0 }
 0x5c5   :  { %v6830_v19 = vadd.f32 %v4422_v13, %v3040_v16 }
 0x5c7   :  { %v3049_v24 = vmax.f32 %v6830_v19, 0.0 }
 0x5c8   :  { %5343 = dma.done.wait [#allocation5 + $0x1], 4096 }
 0x5c9   :  { %5344 = vsyncadd [#allocation5 + $0x1], 4294963200 }
 0x5ca   :  { %5345 = dma.done.wait [#allocation5 + $0x2], 4096 }
 0x5cb   :  { %5346 = vsyncadd [#allocation5 + $0x2], 4294963200  ;;  %3172 = vmatprep.mubr.f32.mxu1 %v7317_v54  ;;  %v7262_v25 = vmov 0   ;;  %v3254_v26 = vld [vmem:[#allocation3 + $0x18] sm:$0xff]  ;;  %v3253_v55 = vld [vmem:[#allocation3 + $0x10] sm:$0xff]  ;;  %vm3099_vm2 = vcmask 1043456   ;;  %v3250_v27 = vpack.c.bf16 %v3049_v24, %v3049_v24  ;;  %v3395_v4 = vpack.c.bf16 %v6383_v48, %v6383_v48 }
 0x5cc   :  { %3356 = vmatprep.mubr.bf16.mxu0 %v7262_v25  ;;  %5184 = vset.pattern.permute.xlu0 %v7262_v25  ;;  %v3057_v53 = vld [vmem:[%s7242_s13] sm:$0xff]  ;;  %v3058_v39 = vld [vmem:[%s7242_s13 + $0x8] sm:$0xff]  ;;  %v3258_v28 = vld [vmem:[#allocation3 + $0x38] sm:$0xff]  ;;  %s7363_s30 = sld [smem:[#allocation62_spill]]  ;;  %vm3095_vm3 = vcmask 31744   ;;  %s7364_s2 = sld [smem:[#allocation63_spill]] }
 0x5cd   :  { %3324 = vmatprep.subr.bf16.mxu0 %v3254_v26  ;;  %v3093_v45 = vcombine.high %v3057_v53, %v3057_v53  ;;  %v3094_v21 = vcombine.high %v3058_v39, %v3058_v39  ;;  %v3257_v36 = vld [vmem:[#allocation3 + $0x30] sm:$0xff]  ;;  %v3252_v40 = vld [vmem:[#allocation3 + $0x8] sm:$0xff]  ;;  %v3262_v35 = vld [vmem:[#allocation3 + $0x58] sm:$0xff]  ;;  %vm4101_vm4 = vcmask 1041408   ;;  %vm4104_vm5 = vcmask 1045504   ;;  %s5357_s8 = smov [#allocation10]  }
 0x5ce   :  { %3325 = vmatpush1.bf16.msra.mxu0 %v3253_v55  ;;  %v3251_v46 = vld [vmem:[#allocation3] sm:$0xff]  ;;  %v3261_v58 = vld [vmem:[#allocation3 + $0x50] sm:$0xff]  ;;  %v3256_v60 = vld [vmem:[#allocation3 + $0x28] sm:$0xff]  ;;  %s4135_s19 = sshll.u32 %s5357_s8, 4  ;;  %s7181_s19 = int_to_ptr.vmem [resolvable:$true] %s4135_s19 }
 0x5cf   :  { %4423 = vmatprep.subr.msk.mxu1 %vm3099_vm2, %v3093_v45  ;;  %3326 = vmatprep.subr.bf16.mxu0 %v3258_v28  ;;  %v3266_v59 = vld [vmem:[#allocation3 + $0x78] sm:$0xff]  ;;  %v3255_v44 = vld [vmem:[#allocation3 + $0x20] sm:$0xff]  ;;  %v3265_v34 = vld [vmem:[#allocation3 + $0x70] sm:$0xff] }
 0x5d0   :  { %4424 = vmatpush1.msk.msra.mxu1 %vm3099_vm2, %v3057_v53  ;;  %v3260_v49 = vld [vmem:[#allocation3 + $0x48] sm:$0xff]  ;;  %v3270_v50 = vld [vmem:[#allocation3 + $0x98] sm:$0xff]  ;;  %v3269_v42 = vld [vmem:[#allocation3 + $0x90] sm:$0xff] }
 0x5d1   :  { %4426 = vmatprep.subr.msk.mxu1 %vm3099_vm2, %v3094_v21  ;;  %v3264_v47 = vld [vmem:[#allocation3 + $0x68] sm:$0xff]  ;;  %v3274_v62 = vld [vmem:[#allocation3 + $0xb8] sm:$0xff]  ;;  %v3263_v31 = vld [vmem:[#allocation3 + $0x60] sm:$0xff] }
 0x5d2   :  { %v3056_v56 = vld [vmem:[%s7363_s30] sm:$0xff]  ;;  %3327 = vmatpush1.bf16.msra.mxu0 %v3257_v36  ;;  %v3273_v22 = vld [vmem:[#allocation3 + $0xb0] sm:$0xff]  ;;  %v3268_v41 = vld [vmem:[#allocation3 + $0x88] sm:$0xff]  ;;  %s5356_s30 = smov [#allocation6]  }
 0x5d3   :  { %4425 = vmatmul.mubr.msk.f32.vlgmr.msra.gmra.mrb[52].mxu1 %vm3095_vm3, %v3056_v56  ;;  %3328 = vmatprep.subr.bf16.mxu0 %v3262_v35  ;;  %v3278_v52 = vld [vmem:[#allocation3 + $0xd8] sm:$0xff]  ;;  %v3267_v51 = vld [vmem:[#allocation3 + $0x80] sm:$0xff]  ;;  %v3277_v37 = vld [vmem:[#allocation3 + $0xd0] sm:$0xff]  ;;  %s4115_s13 = sshll.u32 %s5356_s30, 4  ;;  %s7179_s13 = int_to_ptr.vmem [resolvable:$true] %s4115_s13 }
 0x5d4   :  { %4427 = vmatpush1.msk.msra.mxu1 %vm3099_vm2, %v3058_v39  ;;  %3243 = vmatprep.mubr.f32.mxu1 %v7317_v54  ;;  %v3259_v54 = vld [vmem:[#allocation3 + $0x40] sm:$0xff]  ;;  %v3272_v61 = vld [vmem:[#allocation3 + $0xa8] sm:$0xff]  ;;  %v3282_v33 = vld [vmem:[#allocation3 + $0xf8] sm:$0xff] }
 0x5d5   :  { %3283 = vmatprep.subr.bf16.mxu1 %v3252_v40  ;;  %v3271_v57 = vld [vmem:[#allocation3 + $0xa0] sm:$0xff]  ;;  %v3281_v38 = vld [vmem:[#allocation3 + $0xf0] sm:$0xff]  ;;  %v5189_v43 = vld [vmem:[%s7245_s16 + $0xc] ss:$16 sps:$4 sm:$0xff]  }
 0x5d6   :  { %3329 = vmatpush1.bf16.msra.mxu0 %v3261_v58  ;;  %v3059_v20 = vld [vmem:[%s7364_s2] sm:$0xff]  ;;  %v3276_v32 = vld [vmem:[#allocation3 + $0xc8] sm:$0xff]  ;;  %v6875_v3 = vld [vmem:[#allocation4 + $0x18] sm:$0xff] }
 0x5d7   :  { %4428 = vmatmul.mubr.msk.f32.vlgmr.msra.gmra.mrb[54].mxu1 %vm3095_vm3, %v3056_v56  ;;  %3330 = vmatprep.subr.bf16.mxu0 %v3266_v59  ;;  %v5187_v63 = vld [vmem:[%s7245_s16 + $0x8] ss:$16 sps:$4 sm:$0xff]   ;;  %v3275_v29 = vld [vmem:[#allocation3 + $0xc0] sm:$0xff]  ;;  %v5192_v23 = vld [vmem:[%s7245_s16 + $0x2c] ss:$16 sps:$4 sm:$0xff]  }
 0x5d8   :  { %3284 = vmatpush1.bf16.msra.mxu1 %v3251_v46  ;;  %3315 = vmatprep.mubr.bf16.mxu1 %v7262_v25  ;;  %v3280_v30 = vld [vmem:[#allocation3 + $0xe8] sm:$0xff]  ;;  %v3279_v1 = vld [vmem:[#allocation3 + $0xe0] sm:$0xff]  ;;  %v6883_v6 = vld [vmem:[#allocation4 + $0x10] sm:$0xff] }
 0x5d9   :  { %3285 = vmatprep.subr.bf16.mxu1 %v3256_v60  ;;  %3063 = vperm.xlu0 %5184, %v3059_v20   ;;  %v5190_v0 = vld [vmem:[%s7245_s16 + $0x28] ss:$16 sps:$4 sm:$0xff]   ;;  %v5195_v2 = vld [vmem:[%s7245_s16 + $0x4] ss:$16 sps:$4 sm:$0xff]   ;;  %v5193_v5 = vld [vmem:[%s7245_s16] ss:$16 sps:$4 sm:$0xff]  }
 0x5da   :  { %3331 = vmatpush1.bf16.msra.mxu0 %v3265_v34  ;;  %v5198_v7 = vld [vmem:[%s7245_s16 + $0x24] ss:$16 sps:$4 sm:$0xff]   ;;  %v6888_v8 = vld [vmem:[#allocation4 + $0x38] sm:$0xff]  ;;  %v5196_v48 = vld [vmem:[%s7245_s16 + $0x20] ss:$16 sps:$4 sm:$0xff]  }
 0x5db   :  { %3332 = vmatprep.subr.bf16.mxu0 %v3270_v50  ;;  %v6896_v9 = vld [vmem:[#allocation4 + $0x30] sm:$0xff]  ;;  %v6899_v10 = vld [vmem:[#allocation4 + $0x8] sm:$0xff]  ;;  %v6901_v11 = vld [vmem:[#allocation4 + $0x58] sm:$0xff] }
 0x5dc   :  { %3286 = vmatpush1.bf16.msra.mxu1 %v3255_v44  ;;  %v6906_v12 = vld [vmem:[#allocation4] sm:$0xff]  ;;  %v6909_v13 = vld [vmem:[#allocation4 + $0x50] sm:$0xff]  ;;  %v6911_v14 = vld [vmem:[#allocation4 + $0x28] sm:$0xff] }
 0x5dd   :  { %3287 = vmatprep.subr.bf16.mxu1 %v3260_v49  ;;  %v6913_v15 = vld [vmem:[#allocation4 + $0x78] sm:$0xff]  ;;  %v6919_v16 = vld [vmem:[#allocation4 + $0x20] sm:$0xff]  ;;  %v6922_v17 = vld [vmem:[#allocation4 + $0x70] sm:$0xff] }
 0x5de   :  { %3333 = vmatpush1.bf16.msra.mxu0 %v3269_v42  ;;  %v6924_v18 = vld [vmem:[#allocation4 + $0x48] sm:$0xff]  ;;  %v6926_v19 = vld [vmem:[#allocation4 + $0x98] sm:$0xff]  ;;  %v6932_v24 = vld [vmem:[#allocation4 + $0x40] sm:$0xff] }
 0x5df   :  { %3334 = vmatprep.subr.bf16.mxu0 %v3274_v62  ;;  %v6935_v26 = vld [vmem:[#allocation4 + $0x90] sm:$0xff]  ;;  %v6937_v55 = vld [vmem:[#allocation4 + $0x68] sm:$0xff]  ;;  %v6939_v53 = vld [vmem:[#allocation4 + $0xb8] sm:$0xff] }
 0x5e0   :  { %3288 = vmatpush1.bf16.msra.mxu1 %v3259_v54  ;;  %v6944_v45 = vld [vmem:[#allocation4 + $0x60] sm:$0xff]  ;;  %v6947_v39 = vld [vmem:[#allocation4 + $0xb0] sm:$0xff]  ;;  %v6949_v28 = vld [vmem:[#allocation4 + $0x88] sm:$0xff] }
 0x5e1   :  { %3289 = vmatprep.subr.bf16.mxu1 %v3264_v47  ;;  %v6951_v56 = vld [vmem:[#allocation4 + $0xd8] sm:$0xff]  ;;  %v6956_v21 = vld [vmem:[#allocation4 + $0x80] sm:$0xff]  ;;  %v6959_v36 = vld [vmem:[#allocation4 + $0xd0] sm:$0xff]  ;;  %v3067_v47 = vlaneseq }
 0x5e2   :  { %3335 = vmatpush1.bf16.msra.mxu0 %v3273_v22  ;;  %v6961_v40 = vld [vmem:[#allocation4 + $0xa8] sm:$0xff]  ;;  %v6963_v35 = vld [vmem:[#allocation4 + $0xf8] sm:$0xff]  ;;  %v6968_v46 = vld [vmem:[#allocation4 + $0xa0] sm:$0xff] }
 0x5e3   :  { %3336 = vmatprep.subr.bf16.mxu0 %v3278_v52  ;;  %v6971_v58 = vld [vmem:[#allocation4 + $0xf0] sm:$0xff]  ;;  %v6973_v60 = vld [vmem:[#allocation4 + $0xc8] sm:$0xff]  ;;  %v6978_v59 = vld [vmem:[#allocation4 + $0xc0] sm:$0xff]  ;;  %v7025_v62 = vshrl.u32 %v3067_v47, 7 }
 0x5e4   :  { %3290 = vmatpush1.bf16.msra.mxu1 %v3263_v31  ;;  %v6981_v44 = vld [vmem:[#allocation4 + $0xe8] sm:$0xff]  ;;  %v6987_v34 = vld [vmem:[#allocation4 + $0xe0] sm:$0xff] }
 0x5e5   :  { %3291 = vmatprep.subr.bf16.mxu1 %v3268_v41  ;;  %v7264_v31 = vsub.s32 2, %v7025_v62  ;;  %v7029_v22 = vsub.s32 3, %v7025_v62  ;;  %v3060_v41 = vld [vmem:[%s7243_s14] sm:$0xf] }
 0x5e6   :  { %3337 = vmatpush1.bf16.msra.mxu0 %v3277_v37 }
 0x5e7   :  { %3338 = vmatprep.subr.bf16.mxu0 %v3282_v33  ;;  %v3078_v52 = vrot.slane %v3060_v41, %v7264_v31 }
 0x5e8   :  { %3292 = vmatpush1.bf16.msra.mxu1 %v3267_v51  ;;  %v3082_v51 = vrot.slane %v3060_v41, %v7029_v22 }
 0x5e9   :  { %3293 = vmatprep.subr.bf16.mxu1 %v3272_v61  ;;  %v3069_v61 = vsub.s32 0, %v7025_v62 }
 0x5ea   :  { %3339 = vmatpush1.bf16.msra.mxu0 %v3281_v38 }
 0x5eb   :  { %3505 = vmatprep.subr.bf16.mxu0 %v5189_v43  ;;  %v3070_v43 = vrot.slane %v3060_v41, %v3069_v61 }
 0x5ec   :  { %3294 = vmatpush1.bf16.msra.mxu1 %v3271_v57  ;;  %v3073_v57 = vsub.s32 1, %v7025_v62 }
 0x5ed   :  { %3295 = vmatprep.subr.bf16.mxu1 %v3276_v32  ;;  %3357 = vmatmul.mubr.bf16.vlgmr.msra.gmra.mrb[84].mxu0 %v3250_v27 }
 0x5ee   :  { %3506 = vmatpush1.bf16.msra.mxu0 %v5187_v63  ;;  %3537 = vmatprep.mubr.bf16.mxu0 %v7262_v25  ;;  %v3074_v32 = vrot.slane %v3060_v41, %v3073_v57 }
 0x5ef   :  { %3507 = vmatprep.subr.bf16.mxu0 %v5192_v23 }
 0x5f0   :  { %3296 = vmatpush1.bf16.msra.mxu1 %v3275_v29 }
 0x5f1   :  { %3297 = vmatprep.subr.bf16.mxu1 %v3280_v30 }
 0x5f2   :  { %3508 = vmatpush1.bf16.msra.mxu0 %v5190_v0 }
 0x5f3   :  { %3636 = vmatprep.subr.bf16.mxu0 %v6875_v3 }
 0x5f4   :  { %3298 = vmatpush1.bf16.msra.mxu1 %v3279_v1 }
 0x5f5   :  { %3464 = vmatprep.subr.bf16.mxu1 %v5195_v2  ;;  %4438 = vmatmul.mubr.msk.bf16.vlgmr.msra.gmra.mrb[88].mxu0 %vm1550_vm1, %v3395_v4 }
 0x5f6   :  { %3637 = vmatpush1.bf16.msra.mxu0 %v6883_v6  ;;  %3668 = vmatprep.mubr.bf16.mxu0 %v7262_v25 }
 0x5f7   :  { %3316 = vmatmul.mubr.bf16.vlgmr.msra.gmra.mrb[56].mxu1 %v3250_v27  ;;  %3638 = vmatprep.subr.bf16.mxu0 %v6888_v8 }
 0x5f8   :  { %3465 = vmatpush1.bf16.msra.mxu1 %v5193_v5  ;;  %3496 = vmatprep.mubr.bf16.mxu1 %v7262_v25 }
 0x5f9   :  { %3466 = vmatprep.subr.bf16.mxu1 %v5198_v7 }
 0x5fa   :  { %3639 = vmatpush1.bf16.msra.mxu0 %v6896_v9 }
 0x5fb   :  { %3640 = vmatprep.subr.bf16.mxu0 %v6901_v11 }
 0x5fc   :  { %3467 = vmatpush1.bf16.msra.mxu1 %v5196_v48 }
 0x5fd   :  { %3595 = vmatprep.subr.bf16.mxu1 %v6899_v10 }
 0x5fe   :  { %3641 = vmatpush1.bf16.msra.mxu0 %v6909_v13 }
 0x5ff   :  { %4437 = vmatmul.mubr.msk.bf16.vlgmr.msra.gmra.mrb[60].mxu1 %vm1550_vm1, %v3395_v4  ;;  %3642 = vmatprep.subr.bf16.mxu0 %v6913_v15 }
 0x600   :  { %3596 = vmatpush1.bf16.msra.mxu1 %v6906_v12  ;;  %3627 = vmatprep.mubr.bf16.mxu1 %v7262_v25 }
 0x601   :  { %3597 = vmatprep.subr.bf16.mxu1 %v6911_v14 }
 0x602   :  { %3643 = vmatpush1.bf16.msra.mxu0 %v6922_v17 }
 0x603   :  { %3644 = vmatprep.subr.bf16.mxu0 %v6926_v19 }
 0x604   :  { %3598 = vmatpush1.bf16.msra.mxu1 %v6919_v16 }
 0x605   :  { %3599 = vmatprep.subr.bf16.mxu1 %v6924_v18 }
 0x606   :  { %3645 = vmatpush1.bf16.msra.mxu0 %v6935_v26 }
 0x607   :  { %3646 = vmatprep.subr.bf16.mxu0 %v6939_v53 }
 0x608   :  { %3600 = vmatpush1.bf16.msra.mxu1 %v6932_v24 }
 0x609   :  { %3601 = vmatprep.subr.bf16.mxu1 %v6937_v55 }
 0x60a   :  { %3647 = vmatpush1.bf16.msra.mxu0 %v6947_v39 }
 0x60b   :  { %3648 = vmatprep.subr.bf16.mxu0 %v6951_v56 }
 0x60c   :  { %3602 = vmatpush1.bf16.msra.mxu1 %v6944_v45 }
 0x60d   :  { %3603 = vmatprep.subr.bf16.mxu1 %v6949_v28 }
 0x60e   :  { %3649 = vmatpush1.bf16.msra.mxu0 %v6959_v36 }
 0x60f   :  { %3650 = vmatprep.subr.bf16.mxu0 %v6963_v35 }
 0x610   :  { %3604 = vmatpush1.bf16.msra.mxu1 %v6956_v21 }
 0x611   :  { %3605 = vmatprep.subr.bf16.mxu1 %v6961_v40 }
 0x612   :  { %3651 = vmatpush1.bf16.msra.mxu0 %v6971_v58 }
 0x613   :  { %3750 = vmatprep.subr.bf16.mxu0 %v6875_v3 }
 0x614   :  { %3606 = vmatpush1.bf16.msra.mxu1 %v6968_v46 }
 0x615   :  { %3607 = vmatprep.subr.bf16.mxu1 %v6973_v60  ;;  %3669 = vmatmul.mubr.bf16.vlgmr.msra.gmra.mrb[92].mxu0 %v7262_v25 }
 0x616   :  { %3751 = vmatpush1.bf16.msra.mxu0 %v6883_v6  ;;  %3782 = vmatprep.mubr.bf16.mxu0 %v7262_v25 }
 0x617   :  { %3752 = vmatprep.subr.bf16.mxu0 %v6888_v8 }
 0x618   :  { %3608 = vmatpush1.bf16.msra.mxu1 %v6978_v59 }
 0x619   :  { %3609 = vmatprep.subr.bf16.mxu1 %v6981_v44 }
 0x61a   :  { %3753 = vmatpush1.bf16.msra.mxu0 %v6896_v9 }
 0x61b   :  { %3754 = vmatprep.subr.bf16.mxu0 %v6901_v11 }
 0x61c   :  { %3610 = vmatpush1.bf16.msra.mxu1 %v6987_v34 }
 0x61d   :  { %3709 = vmatprep.subr.bf16.mxu1 %v6899_v10 }
 0x61e   :  { %3755 = vmatpush1.bf16.msra.mxu0 %v6909_v13 }
 0x61f   :  { %3628 = vmatmul.mubr.bf16.vlgmr.msra.gmra.mrb[64].mxu1 %v7262_v25  ;;  %3756 = vmatprep.subr.bf16.mxu0 %v6913_v15 }
 0x620   :  { %3710 = vmatpush1.bf16.msra.mxu1 %v6906_v12  ;;  %3741 = vmatprep.mubr.bf16.mxu1 %v7262_v25 }
 0x621   :  { %3711 = vmatprep.subr.bf16.mxu1 %v6911_v14 }
 0x622   :  { %3757 = vmatpush1.bf16.msra.mxu0 %v6922_v17 }
 0x623   :  { %3758 = vmatprep.subr.bf16.mxu0 %v6926_v19 }
 0x624   :  { %3712 = vmatpush1.bf16.msra.mxu1 %v6919_v16 }
 0x625   :  { %3713 = vmatprep.subr.bf16.mxu1 %v6924_v18 }
 0x626   :  { %3759 = vmatpush1.bf16.msra.mxu0 %v6935_v26 }
 0x627   :  { %3760 = vmatprep.subr.bf16.mxu0 %v6939_v53 }
 0x628   :  { %3714 = vmatpush1.bf16.msra.mxu1 %v6932_v24 }
 0x629   :  { %3715 = vmatprep.subr.bf16.mxu1 %v6937_v55 }
 0x62a   :  { %3761 = vmatpush1.bf16.msra.mxu0 %v6947_v39 }
 0x62b   :  { %3762 = vmatprep.subr.bf16.mxu0 %v6951_v56 }
 0x62c   :  { %3716 = vmatpush1.bf16.msra.mxu1 %v6944_v45 }
 0x62d   :  { %3717 = vmatprep.subr.bf16.mxu1 %v6949_v28 }
 0x62e   :  { %3763 = vmatpush1.bf16.msra.mxu0 %v6959_v36 }
 0x62f   :  { %3764 = vmatprep.subr.bf16.mxu0 %v6963_v35 }
 0x630   :  { %3718 = vmatpush1.bf16.msra.mxu1 %v6956_v21 }
 0x631   :  { %3719 = vmatprep.subr.bf16.mxu1 %v6961_v40 }
 0x632   :  { %3765 = vmatpush1.bf16.msra.mxu0 %v6971_v58 }
 0x633   :  { %3882 = vmatprep.subr.bf16.mxu0 %v6875_v3 }
 0x634   :  { %3720 = vmatpush1.bf16.msra.mxu1 %v6968_v46 }
 0x635   :  { %3721 = vmatprep.subr.bf16.mxu1 %v6973_v60 }
 0x638   :  { %3722 = vmatpush1.bf16.msra.mxu1 %v6978_v59 }
 0x639   :  { %3723 = vmatprep.subr.bf16.mxu1 %v6981_v44 }
 0x63c   :  { %3724 = vmatpush1.bf16.msra.mxu1 %v6987_v34 }
 0x63d   :  { %3841 = vmatprep.subr.bf16.mxu1 %v6899_v10 }
 0x658   :  { %v3064_v37 = vpop.permute.xlu0 %3063 }
 0x659   :  { %v3089_v33 = vmul.f32 %v3078_v52, %v3064_v37  ;;  %v3090_v38 = vmul.f32 %v3082_v51, %v3064_v37  ;;  %v3087_v1 = vmul.f32 %v3070_v43, %v3064_v37  ;;  %v3088_v4 = vmul.f32 %v3074_v32, %v3064_v37  ;;  %v3404_v37 = vld [vmem:[%s7246_s17] sm:$0xf] }
 0x6a6   :  { %v3174_v49 = vpop.f32.mrb[52].mxu1 }
 0x6a7   :  { %v3176_v50 = vpop.f32.mrb[53].mxu1  ;;  %v3175_v5 = vadd.f32 %v3174_v49, %v3087_v1  ;;  %v3409_v49 = vrot.slane %v3404_v37, %v3069_v61 }
 0x6a8   :  { %v3177_v7 = vadd.f32 %v3176_v50, %v3088_v4  ;;  %v3413_v50 = vrot.slane %v3404_v37, %v3073_v57 }
 0x6aa   :  { %v3245_v54 = vpop.f32.mrb[54].mxu1 }
 0x6ab   :  { %v3247_v42 = vpop.f32.mrb[55].mxu1  ;;  %v3246_v20 = vadd.f32 %v3245_v54, %v3089_v33 }
 0x6ac   :  { %v3248_v27 = vadd.f32 %v3247_v42, %v3090_v38 }
 0x6c0   :  { %v3358_v63 = vpop.f32.mrb[84].mxu0 }
 0x6c1   :  { %v7039_v29 = vadd.f32 %v3358_v63, %v3246_v20  ;;  %v3360_v23 = vpop.f32.mrb[85].mxu0 }
 0x6c2   :  { %v3368_v30 = vadd.f32 %v3360_v23, %v3248_v27  ;;  %v3362_v0 = vpop.f32.mrb[86].mxu0 }
 0x6c3   :  { %v3363_v2 = vpop.f32.mrb[87].mxu0 }
 0x6c8   :  { %v3539_v47 = vpop.f32.mrb[88].mxu0 }
 0x6c9   :  { %v3540_v51 = vpop.f32.mrb[89].mxu0 }
 0x6ca   :  { %v3317_v48 = vpop.f32.mrb[56].mxu1  ;;  %v3542_v41 = vpop.f32.mrb[90].mxu0 }
 0x6cb   :  { %v3365_v52 = vadd.f32 %v3317_v48, %v3175_v5  ;;  %v3319_v25 = vpop.f32.mrb[57].mxu1  ;;  %v3543_v33 = vpop.f32.mrb[91].mxu0 }
 0x6cc   :  { %v3366_v31 = vadd.f32 %v3319_v25, %v3177_v7  ;;  %v3321_v54 = vpop.f32.mrb[58].mxu1  ;;  %v3369_v25 = vld [vmem:[%s7244_s15] sm:$0xf]  ;;  %s5355_s15 = smov [#allocation8]  }
 0x6cd   :  { %v3322_v42 = vpop.f32.mrb[59].mxu1  ;;  %v3374_v2 = vrot.slane %v3369_v25, %v3069_v61  ;;  %v3378_v7 = vrot.slane %v3369_v25, %v3073_v57  ;;  %s4125_s17 = sshll.u32 %s5355_s15, 4  ;;  %s4126_s17 = int_to_ptr.vmem [resolvable:$true] %s4125_s17 }
 0x6ce   :  { %v3386_v42 = vrot.slane %v3369_v25, %v7029_v22  ;;  %s5275_s24 = scalar_lea.vmem %s4126_s17, 32  ;;  %p5280_p1 = scmp.lt.s32.totalorder %s4126_s17, %s4126_s17 }
 0x6cf   :  { %v7047_v47 = vadd.f32 %v3374_v2, %v3365_v52  ;;  %v7049_v54 = vadd.f32 %v3378_v7, %v3366_v31  ;;  %p5276_p0 = scmp.ne.s32.totalorder %s4126_s17, %s5275_s24  ;;  %p5281_p2 = scmp.lt.s32.totalorder %s5275_s24, %s5275_s24 }
 0x6d0   :  { %v7055_v52 = vadd.f32 %v3386_v42, %v3368_v30 }
 0x6d1   :  { %p5282_p3 = por %p5281_p2, %p5280_p1 }
 0x6d2   :  { %v3498_v38 = vpop.f32.mrb[60].mxu1 }
 0x6d3   :  { %v3500_v20 = vpop.f32.mrb[61].mxu1  ;;  %v3499_v43 = vadd.f32 %v3498_v38, %v3409_v49  ;;  %p5283_p4 = pnand %p5282_p3, %p5276_p0 }
 0x6d4   :  { %v3502_v63 = vpop.f32.mrb[62].mxu1  ;;  %v3501_v32 = vadd.f32 %v3500_v20, %v3413_v50  ;;  %v3417_v20 = vrot.slane %v3404_v37, %v7029_v22 }
 0x6d5   :  { %v3503_v27 = vpop.f32.mrb[63].mxu1  ;;  %v4439_v4 = vmul.f32 -1.442695, %v3499_v43 }
 0x6d6   :  { %v4440_v48 = vmul.f32 -1.442695, %v3501_v32  ;;  %v3541_v31 = vadd.f32 %v3540_v51, %v3417_v20 }
 0x6d7   :  { %5199 = vpow2.f32 %v4439_v4 }
 0x6d8   :  { %5201 = vpow2.f32 %v4440_v48  ;;  %v4441_v4 = vmul.f32 -1.442695, %v3541_v31 }
 0x6e1   :  { %v5200_v43 = vpop.eup %5199 }
 0x6e2   :  { %v5202_v32 = vpop.eup %5201  ;;  %v3554_v37 = vadd.f32 1.0, %v5200_v43 }
 0x6e8   :  { %v3670_v23 = vpop.f32.mrb[92].mxu0 }
 0x6e9   :  { %v3672_v0 = vpop.f32.mrb[93].mxu0 }
 0x6ea   :  { %v3674_v1 = vpop.f32.mrb[94].mxu0  ;;  %v3680_v50 = vadd.f32 %v3672_v0, %v7055_v52 }
 0x6eb   :  { %v3675_v5 = vpop.f32.mrb[95].mxu0  ;;  %v7365_v1 = vsub.s32 2, %v7025_v62 }
 0x6ec   :  { %v4444_v22 = vmul.f32 -1.442695, %v3680_v50  ;;  %v3555_v5 = vadd.f32 1.0, %v5202_v32 }
 0x6ed   :  { %v3382_v2 = vrot.slane %v3369_v25, %v7365_v1 }
 0x6ef   :  { %v7061_v7 = vadd.f32 %v3382_v2, %v7039_v29 }
 0x6f1   :  { %v3679_v51 = vadd.f32 %v3670_v23, %v7061_v7 }
 0x6f2   :  { %v3629_v41 = vpop.f32.mrb[64].mxu1 }
 0x6f3   :  { %v3677_v33 = vadd.f32 %v3629_v41, %v7047_v47  ;;  %v3631_v38 = vpop.f32.mrb[65].mxu1 }
 0x6f4   :  { %v3678_v61 = vadd.f32 %v3631_v38, %v7049_v54  ;;  %v3633_v63 = vpop.f32.mrb[66].mxu1 }
 0x6f5   :  { %v4442_v27 = vmul.f32 -1.442695, %v3677_v33  ;;  %v3634_v57 = vpop.f32.mrb[67].mxu1 }
 0x6f6   :  { %v4443_v49 = vmul.f32 -1.442695, %v3678_v61 }
 0x6f7   :  { %5203 = vpow2.f32 %v4442_v27 }
 0x6f8   :  { %5205 = vpow2.f32 %v4443_v49 }
 0x6f9   :  { %5207 = vpow2.f32 %v4441_v4 }
 0x6fa   :  { %5209 = vpow2.f32 %v4444_v22  ;;  %v7366_v22 = vmov 0  }
 0x6fb   :  { %5211 = vrcp.f32 %v3554_v37 }
 0x6fc   :  { %5213 = vrcp.f32 %v3555_v5 }
 0x701   :  { %v5204_v30 = vpop.eup %5203 }
 0x702   :  { %v5206_v48 = vpop.eup %5205  ;;  %v3684_v0 = vadd.f32 1.0, %v5204_v30 }
 0x703   :  { %v3691_v41 = vadd.f32 1.0, %v5206_v48  ;;  %v5208_v62 = vpop.eup %5207 }
 0x704   :  { %5215 = vrcp.f32 %v3684_v0  ;;  %v5210_v25 = vpop.eup %5209  ;;  %v3556_v27 = vadd.f32 1.0, %v5208_v62 }
 0x705   :  { %5217 = vrcp.f32 %v3691_v41  ;;  %v7064_v42 = vpop.eup %5211  ;;  %v3699_v38 = vadd.f32 1.0, %v5210_v25 }
 0x706   :  { %5219 = vtanh.f32 %v3679_v51  ;;  %v7066_v33 = vpop.eup %5213 }
 0x707   :  { %5221 = vrcp.f32 %v3699_v38 }
 0x708   :  { %5223 = vrcp.f32 %v3556_v27 }
 0x70e   :  { %v5216_v29 = vpop.eup %5215 }
 0x70f   :  { %v5218_v20 = vpop.eup %5217  ;;  %v3687_v61 = vmul.f32 %v5216_v29, %v7064_v42 }
 0x710   :  { %v5220_v63 = vpop.eup %5219  ;;  %v3694_v23 = vmul.f32 %v5218_v20, %v7066_v33 }
 0x711   :  { %v3704_v57 = vmul.f32 %v5220_v63, %v3687_v61  ;;  %v5222_v50 = vpop.eup %5221 }
 0x712   :  { %v3703_v49 = vmul.f32 0.0, %v3694_v23  ;;  %v7073_v43 = vpop.eup %5223 }
 0x713   :  { %v3702_v32 = vmul.f32 %v7073_v43, %v5222_v50 }
 0x714   :  { %v7070_v31 = vadd.f32 %v3704_v57, %v3703_v49 }
 0x716   :  { %5225 = vtanh.f32 %v7070_v31 }
 0x720   :  { %v5226_v1 = vpop.eup %5225 }
 0x721   :  { %v7076_v2 = vmul.f32 %v5226_v1, %v3702_v32 }
 0x723   :  { %v3708_v4 = vpack.c.bf16 %v7076_v2, %v7076_v2 }
 0x725   :  { %3742 = vmatmul.mubr.bf16.vlgmr.msra.gmra.mrb[68].mxu1 %v3708_v4  ;;  %3783 = vmatmul.mubr.bf16.vlgmr.msra.gmra.mrb[96].mxu0 %v3708_v4 }
 0x726   :  { %3842 = vmatpush1.bf16.msra.mxu1 %v6906_v12  ;;  %3883 = vmatpush1.bf16.msra.mxu0 %v6883_v6 }
 0x727   :  { %3843 = vmatprep.subr.bf16.mxu1 %v6911_v14  ;;  %3884 = vmatprep.subr.bf16.mxu0 %v6888_v8 }
 0x728   :  { %3873 = vmatprep.mubr.bf16.mxu1 %v7366_v22  ;;  %3914 = vmatprep.mubr.bf16.mxu0 %v7366_v22 }
 0x72a   :  { %3844 = vmatpush1.bf16.msra.mxu1 %v6919_v16  ;;  %3885 = vmatpush1.bf16.msra.mxu0 %v6896_v9 }
 0x72b   :  { %3845 = vmatprep.subr.bf16.mxu1 %v6924_v18  ;;  %3886 = vmatprep.subr.bf16.mxu0 %v6901_v11 }
 0x72e   :  { %3846 = vmatpush1.bf16.msra.mxu1 %v6932_v24  ;;  %3887 = vmatpush1.bf16.msra.mxu0 %v6909_v13 }
 0x72f   :  { %3847 = vmatprep.subr.bf16.mxu1 %v6937_v55  ;;  %3888 = vmatprep.subr.bf16.mxu0 %v6913_v15 }
 0x732   :  { %3848 = vmatpush1.bf16.msra.mxu1 %v6944_v45  ;;  %3889 = vmatpush1.bf16.msra.mxu0 %v6922_v17 }
 0x733   :  { %3849 = vmatprep.subr.bf16.mxu1 %v6949_v28  ;;  %3890 = vmatprep.subr.bf16.mxu0 %v6926_v19 }
 0x736   :  { %3850 = vmatpush1.bf16.msra.mxu1 %v6956_v21  ;;  %3891 = vmatpush1.bf16.msra.mxu0 %v6935_v26 }
 0x737   :  { %3851 = vmatprep.subr.bf16.mxu1 %v6961_v40  ;;  %3892 = vmatprep.subr.bf16.mxu0 %v6939_v53 }
 0x73a   :  { %3852 = vmatpush1.bf16.msra.mxu1 %v6968_v46  ;;  %3893 = vmatpush1.bf16.msra.mxu0 %v6947_v39 }
 0x73b   :  { %3853 = vmatprep.subr.bf16.mxu1 %v6973_v60  ;;  %3894 = vmatprep.subr.bf16.mxu0 %v6951_v56 }
 0x73e   :  { %3854 = vmatpush1.bf16.msra.mxu1 %v6978_v59  ;;  %3895 = vmatpush1.bf16.msra.mxu0 %v6959_v36 }
 0x73f   :  { %3855 = vmatprep.subr.bf16.mxu1 %v6981_v44  ;;  %3896 = vmatprep.subr.bf16.mxu0 %v6963_v35 }
 0x742   :  { %3856 = vmatpush1.bf16.msra.mxu1 %v6987_v34  ;;  %3897 = vmatpush1.bf16.msra.mxu0 %v6971_v58 }
 0x743   :  { %3973 = vmatprep.subr.bf16.mxu1 %v6899_v10  ;;  %4014 = vmatprep.subr.bf16.mxu0 %v6875_v3 }
 0x7f8   :  { %v3743_v37 = vpop.f32.mrb[68].mxu1  ;;  %v3784_v5 = vpop.f32.mrb[96].mxu0 }
 0x7f9   :  { %v3795_v30 = vrot.slane %v3743_v37, 6  ;;  %v3745_v48 = vpop.f32.mrb[69].mxu1  ;;  %v3786_v51 = vpop.f32.mrb[97].mxu0  ;;  %v3797_v23 = vrot.slane %v3784_v5, 6 }
 0x7fa   :  { %v3796_v0 = vrot.slane %v3745_v48, 6  ;;  %v3747_v41 = vpop.f32.mrb[70].mxu1  ;;  %v3788_v62 = vpop.f32.mrb[98].mxu0  ;;  %v3798_v63 = vrot.slane %v3786_v51, 6 }
 0x7fb   :  { %v3803_v25 = vadd.f32 %v3795_v30, %v7047_v47  ;;  %v3748_v29 = vpop.f32.mrb[71].mxu1  ;;  %v3789_v38 = vpop.f32.mrb[99].mxu0  ;;  %v3805_v32 = vadd.f32 %v3797_v23, %v7061_v7  ;;  %v3830_v41 = vrot.slane %v7070_v31, 6 }
 0x7fc   :  { %v3804_v20 = vadd.f32 %v3796_v0, %v7049_v54  ;;  %v3806_v3 = vadd.f32 %v3798_v63, %v7055_v52 }
 0x7fd   :  { %v4445_v61 = vmul.f32 -1.442695, %v3803_v25 }
 0x7fe   :  { %v4446_v27 = vmul.f32 -1.442695, %v3804_v20  ;;  %v4447_v10 = vmul.f32 -1.442695, %v3806_v3 }
 0x7ff   :  { %5227 = vpow2.f32 %v4445_v61 }
 0x800   :  { %5229 = vpow2.f32 %v4446_v27 }
 0x801   :  { %5231 = vpow2.f32 %v4447_v10 }
 0x809   :  { %v5228_v57 = vpop.eup %5227 }
 0x80a   :  { %v5230_v49 = vpop.eup %5229  ;;  %v3810_v50 = vadd.f32 1.0, %v5228_v57 }
 0x80b   :  { %v3817_v1 = vadd.f32 1.0, %v5230_v49  ;;  %v5232_v4 = vpop.eup %5231 }
 0x80c   :  { %5233 = vrcp.f32 %v3810_v50  ;;  %v3825_v30 = vadd.f32 1.0, %v5232_v4 }
 0x80d   :  { %5235 = vrcp.f32 %v3817_v1 }
 0x80e   :  { %5237 = vtanh.f32 %v3805_v32 }
 0x80f   :  { %5239 = vrcp.f32 %v3825_v30 }
 0x816   :  { %v5234_v37 = vpop.eup %5233 }
 0x817   :  { %v5236_v48 = vpop.eup %5235  ;;  %v3813_v51 = vmul.f32 %v5234_v37, %v7064_v42 }
 0x818   :  { %v5238_v0 = vpop.eup %5237  ;;  %v3820_v5 = vmul.f32 %v5236_v48, %v7066_v33 }
 0x819   :  { %v3833_v62 = vmul.f32 %v5238_v0, %v3813_v51  ;;  %v5240_v38 = vpop.eup %5239 }
 0x81a   :  { %v3832_v25 = vmul.f32 %v3830_v41, %v3820_v5  ;;  %v3828_v20 = vmul.f32 %v5240_v38, %v7073_v43 }
 0x81c   :  { %v7121_v29 = vadd.f32 %v3833_v62, %v3832_v25 }
 0x81e   :  { %5241 = vtanh.f32 %v7121_v29  ;;  %v3962_v31 = vrot.slane %v7121_v29, 6 }
 0x828   :  { %v5242_v61 = vpop.eup %5241 }
 0x829   :  { %v7125_v63 = vmul.f32 %v5242_v61, %v3828_v20 }
 0x82b   :  { %v3837_v27 = vpack.c.bf16 %v7125_v63, %v7125_v63  ;;  %v4102_v1 = vsel %vm4101_vm4, %v7076_v2, %v7125_v63 }
 0x82d   :  { %v3839_v3 = vrot.slane %v3837_v27, 1 }
 0x82f   :  { %3874 = vmatmul.mubr.bf16.vlgmr.msra.gmra.mrb[72].mxu1 %v3839_v3  ;;  %3915 = vmatmul.mubr.bf16.vlgmr.msra.gmra.mrb[100].mxu0 %v3839_v3 }
 0x830   :  { %3974 = vmatpush1.bf16.msra.mxu1 %v6906_v12  ;;  %4015 = vmatpush1.bf16.msra.mxu0 %v6883_v6 }
 0x831   :  { %3975 = vmatprep.subr.bf16.mxu1 %v6911_v14  ;;  %4016 = vmatprep.subr.bf16.mxu0 %v6888_v8 }
 0x832   :  { %4005 = vmatprep.mubr.bf16.mxu1 %v7366_v22  ;;  %4046 = vmatprep.mubr.bf16.mxu0 %v7366_v22 }
 0x834   :  { %3976 = vmatpush1.bf16.msra.mxu1 %v6919_v16  ;;  %4017 = vmatpush1.bf16.msra.mxu0 %v6896_v9 }
 0x835   :  { %3977 = vmatprep.subr.bf16.mxu1 %v6924_v18  ;;  %4018 = vmatprep.subr.bf16.mxu0 %v6901_v11 }
 0x838   :  { %3978 = vmatpush1.bf16.msra.mxu1 %v6932_v24  ;;  %4019 = vmatpush1.bf16.msra.mxu0 %v6909_v13 }
 0x839   :  { %3979 = vmatprep.subr.bf16.mxu1 %v6937_v55  ;;  %4020 = vmatprep.subr.bf16.mxu0 %v6913_v15 }
 0x83c   :  { %3980 = vmatpush1.bf16.msra.mxu1 %v6944_v45  ;;  %4021 = vmatpush1.bf16.msra.mxu0 %v6922_v17 }
 0x83d   :  { %3981 = vmatprep.subr.bf16.mxu1 %v6949_v28  ;;  %4022 = vmatprep.subr.bf16.mxu0 %v6926_v19 }
 0x840   :  { %3982 = vmatpush1.bf16.msra.mxu1 %v6956_v21  ;;  %4023 = vmatpush1.bf16.msra.mxu0 %v6935_v26 }
 0x841   :  { %3983 = vmatprep.subr.bf16.mxu1 %v6961_v40  ;;  %4024 = vmatprep.subr.bf16.mxu0 %v6939_v53 }
 0x844   :  { %3984 = vmatpush1.bf16.msra.mxu1 %v6968_v46  ;;  %4025 = vmatpush1.bf16.msra.mxu0 %v6947_v39 }
 0x845   :  { %3985 = vmatprep.subr.bf16.mxu1 %v6973_v60  ;;  %4026 = vmatprep.subr.bf16.mxu0 %v6951_v56 }
 0x848   :  { %3986 = vmatpush1.bf16.msra.mxu1 %v6978_v59  ;;  %4027 = vmatpush1.bf16.msra.mxu0 %v6959_v36 }
 0x849   :  { %3987 = vmatprep.subr.bf16.mxu1 %v6981_v44  ;;  %4028 = vmatprep.subr.bf16.mxu0 %v6963_v35 }
 0x84c   :  { %3988 = vmatpush1.bf16.msra.mxu1 %v6987_v34  ;;  %4029 = vmatpush1.bf16.msra.mxu0 %v6971_v58 }
 0x902   :  { %v3875_v6 = vpop.f32.mrb[72].mxu1  ;;  %v3916_v8 = vpop.f32.mrb[100].mxu0 }
 0x903   :  { %v3927_v9 = vrot.slane %v3875_v6, 4  ;;  %v3877_v11 = vpop.f32.mrb[73].mxu1  ;;  %v3918_v12 = vpop.f32.mrb[101].mxu0  ;;  %v3929_v39 = vrot.slane %v3916_v8, 4 }
 0x904   :  { %v3928_v13 = vrot.slane %v3877_v11, 4  ;;  %v3879_v14 = vpop.f32.mrb[74].mxu1  ;;  %v3920_v15 = vpop.f32.mrb[102].mxu0  ;;  %v3930_v26 = vrot.slane %v3918_v12, 4 }
 0x905   :  { %v3935_v16 = vadd.f32 %v3927_v9, %v7047_v47  ;;  %v3880_v17 = vpop.f32.mrb[75].mxu1  ;;  %v3921_v18 = vpop.f32.mrb[103].mxu0  ;;  %v3937_v36 = vadd.f32 %v3929_v39, %v7061_v7 }
 0x906   :  { %v3936_v19 = vadd.f32 %v3928_v13, %v7049_v54  ;;  %v3938_v53 = vadd.f32 %v3930_v26, %v7055_v52 }
 0x907   :  { %v4448_v24 = vmul.f32 -1.442695, %v3935_v16 }
 0x908   :  { %v4449_v55 = vmul.f32 -1.442695, %v3936_v19  ;;  %v4450_v45 = vmul.f32 -1.442695, %v3938_v53 }
 0x909   :  { %5243 = vpow2.f32 %v4448_v24 }
 0x90a   :  { %5245 = vpow2.f32 %v4449_v55 }
 0x90b   :  { %5247 = vpow2.f32 %v4450_v45 }
 0x913   :  { %v5244_v28 = vpop.eup %5243 }
 0x914   :  { %v5246_v56 = vpop.eup %5245  ;;  %v3942_v21 = vadd.f32 1.0, %v5244_v28 }
 0x915   :  { %v3949_v40 = vadd.f32 1.0, %v5246_v56  ;;  %v5248_v35 = vpop.eup %5247 }
 0x916   :  { %5249 = vrcp.f32 %v3942_v21  ;;  %v3957_v58 = vadd.f32 1.0, %v5248_v35 }
 0x917   :  { %5251 = vrcp.f32 %v3949_v40 }
 0x918   :  { %5253 = vtanh.f32 %v3937_v36 }
 0x919   :  { %5255 = vrcp.f32 %v3957_v58 }
 0x920   :  { %v5250_v46 = vpop.eup %5249 }
 0x921   :  { %v5252_v60 = vpop.eup %5251  ;;  %v3945_v59 = vmul.f32 %v5250_v46, %v7064_v42 }
 0x922   :  { %v5254_v44 = vpop.eup %5253  ;;  %v3952_v34 = vmul.f32 %v5252_v60, %v7066_v33 }
 0x923   :  { %v3965_v22 = vmul.f32 %v5254_v44, %v3945_v59  ;;  %v5256_v57 = vpop.eup %5255 }
 0x924   :  { %v3964_v10 = vmul.f32 %v3962_v31, %v3952_v34  ;;  %v3960_v49 = vmul.f32 %v5256_v57, %v7073_v43 }
 0x926   :  { %v3966_v23 = vadd.f32 %v3965_v22, %v3964_v10 }
 0x928   :  { %5257 = vtanh.f32 %v3966_v23  ;;  %v4094_v24 = vrot.slane %v3966_v23, 6 }
 0x932   :  { %v5258_v50 = vpop.eup %5257 }
 0x933   :  { %v3968_v32 = vmul.f32 %v5258_v50, %v3960_v49 }
 0x935   :  { %v3969_v4 = vpack.c.bf16 %v3968_v32, %v3968_v32  ;;  %v4103_v37 = vsel %vm3099_vm2, %v4102_v1, %v3968_v32 }
 0x937   :  { %v3971_v30 = vrot.slane %v3969_v4, 2 }
 0x939   :  { %4006 = vmatmul.mubr.bf16.vlgmr.msra.gmra.mrb[76].mxu1 %v3971_v30  ;;  %4047 = vmatmul.mubr.bf16.vlgmr.msra.gmra.mrb[104].mxu0 %v3971_v30 }
 0xa0c   :  { %v4007_v48 = vpop.f32.mrb[76].mxu1  ;;  %v4048_v51 = vpop.f32.mrb[104].mxu0 }
 0xa0d   :  { %v4059_v0 = vrot.slane %v4007_v48, 2  ;;  %v4009_v41 = vpop.f32.mrb[77].mxu1  ;;  %v4050_v5 = vpop.f32.mrb[105].mxu0  ;;  %v4061_v9 = vrot.slane %v4048_v51, 2 }
 0xa0e   :  { %v4060_v62 = vrot.slane %v4009_v41, 2  ;;  %v4011_v25 = vpop.f32.mrb[78].mxu1  ;;  %v4052_v29 = vpop.f32.mrb[106].mxu0  ;;  %v4062_v27 = vrot.slane %v4050_v5, 2 }
 0xa0f   :  { %v4067_v38 = vadd.f32 %v4059_v0, %v7047_v47  ;;  %v4012_v20 = vpop.f32.mrb[79].mxu1  ;;  %v4053_v61 = vpop.f32.mrb[107].mxu0  ;;  %v4069_v14 = vadd.f32 %v4061_v9, %v7061_v7 }
 0xa10   :  { %v4068_v2 = vadd.f32 %v4060_v62, %v7049_v54  ;;  %v4070_v6 = vadd.f32 %v4062_v27, %v7055_v52 }
 0xa11   :  { %v4451_v63 = vmul.f32 -1.442695, %v4067_v38 }
 0xa12   :  { %v4452_v3 = vmul.f32 -1.442695, %v4068_v2  ;;  %v4453_v8 = vmul.f32 -1.442695, %v4070_v6 }
 0xa13   :  { %5259 = vpow2.f32 %v4451_v63 }
 0xa14   :  { %5261 = vpow2.f32 %v4452_v3 }
 0xa15   :  { %5263 = vpow2.f32 %v4453_v8 }
 0xa1d   :  { %v5260_v11 = vpop.eup %5259 }
 0xa1e   :  { %v5262_v12 = vpop.eup %5261  ;;  %v4074_v13 = vadd.f32 1.0, %v5260_v11 }
 0xa1f   :  { %v4081_v47 = vadd.f32 1.0, %v5262_v12  ;;  %v5264_v54 = vpop.eup %5263 }
 0xa20   :  { %5265 = vrcp.f32 %v4074_v13  ;;  %v4089_v16 = vadd.f32 1.0, %v5264_v54 }
 0xa21   :  { %5267 = vrcp.f32 %v4081_v47 }
 0xa22   :  { %5269 = vtanh.f32 %v4069_v14 }
 0xa23   :  { %5271 = vrcp.f32 %v4089_v16 }
 0xa2a   :  { %v5266_v15 = vpop.eup %5265 }
 0xa2b   :  { %v5268_v17 = vpop.eup %5267  ;;  %v4077_v18 = vmul.f32 %v5266_v15, %v7064_v42 }
 0xa2c   :  { %v5270_v19 = vpop.eup %5269  ;;  %v4084_v52 = vmul.f32 %v5268_v17, %v7066_v33 }
 0xa2d   :  { %v4097_v26 = vmul.f32 %v5270_v19, %v4077_v18  ;;  %v5272_v7 = vpop.eup %5271 }
 0xa2e   :  { %v4096_v55 = vmul.f32 %v4094_v24, %v4084_v52  ;;  %v4092_v45 = vmul.f32 %v5272_v7, %v7073_v43 }
 0xa30   :  { %v4098_v53 = vadd.f32 %v4097_v26, %v4096_v55 }
 0xa32   :  { %5273 = vtanh.f32 %v4098_v53  ;;  %4108 = vst [vmem:[#allocation10 - $0x6] sm:$0xc0] %v4098_v53 }
 0xa3c   :  { %v5274_v39 = vpop.eup %5273 }
 0xa3d   :  { %v4100_v42 = vmul.f32 %v5274_v39, %v4092_v45 }
 0xa3f   :  { %4107 = vst [vmem:[#allocation8 - $0x6] sm:$0xc0] %v4100_v42  ;;  %v4105_v33 = vsel %vm4104_vm5, %v4103_v37, %v4100_v42 }
 0xa40   :  { %5286 = shalt.err (!%p5283_p4)
}
 0xa41   :  { %s5287_s20 = scalar_lea.hbm %s7251_s22, 32 }
 0xa42   :  { %p5288_p5 = scmp.ne.s32.totalorder %s7251_s22, %s5287_s20  ;;  %p5291_p6 = scmp.lt.u32.totalorder %s5287_s20, %s7251_s22 }
 0xa44   :  { %p5293_p7 = pnand %p5291_p6, %p5288_p5 }
 0xa46   :  { %5296 = shalt.err (!%p5293_p7)
}
 0xa47   :  { %4128 = dma.vmem_to_hbm [thread:$0]  %s4126_s17, 32, %s7251_s22, [#allocation9]   ;;  %4106 = vst [vmem:[#allocation6] sm:$0xff] %v4105_v33 }
 0xa48   :  { %s5297_s0 = scalar_lea.vmem %s7179_s13, 128  ;;  %p5302_p9 = scmp.lt.s32.totalorder %s7179_s13, %s7179_s13 }
 0xa49   :  { %p5298_p8 = scmp.ne.s32.totalorder %s7179_s13, %s5297_s0  ;;  %p5303_p10 = scmp.lt.s32.totalorder %s5297_s0, %s5297_s0 }
 0xa4b   :  { %p5304_p11 = por %p5303_p10, %p5302_p9 }
 0xa4d   :  { %p5305_p12 = pnand %p5304_p11, %p5298_p8 }
 0xa4f   :  { %5308 = shalt.err (!%p5305_p12)
}
 0xa50   :  { %s5309_s11 = scalar_lea.hbm %s7250_s21, 128 }
 0xa51   :  { %p5310_p13 = scmp.ne.s32.totalorder %s7250_s21, %s5309_s11  ;;  %p5313_p0 = scmp.lt.u32.totalorder %s5309_s11, %s7250_s21 }
 0xa53   :  { %p5315_p1 = pnand %p5313_p0, %p5310_p13 }
 0xa55   :  { %5318 = shalt.err (!%p5315_p1)
}
 0xa56   :  { %4118 = dma.vmem_to_hbm [thread:$0]  %s7179_s13, 128, %s7250_s21, [#allocation7]  }
 0xa57   :  { %s5319_s3 = scalar_lea.vmem %s7181_s19, 32  ;;  %p5324_p3 = scmp.lt.s32.totalorder %s7181_s19, %s7181_s19 }
 0xa58   :  { %p5320_p2 = scmp.ne.s32.totalorder %s7181_s19, %s5319_s3  ;;  %p5325_p4 = scmp.lt.s32.totalorder %s5319_s3, %s5319_s3 }
 0xa5a   :  { %p5326_p5 = por %p5325_p4, %p5324_p3 }
 0xa5c   :  { %p5327_p6 = pnand %p5326_p5, %p5320_p2 }
 0xa5e   :  { %5330 = shalt.err (!%p5327_p6)
}
 0xa5f   :  { %s5331_s15 = scalar_lea.hbm %s7252_s23, 32 }
 0xa60   :  { %p5332_p7 = scmp.ne.s32.totalorder %s7252_s23, %s5331_s15  ;;  %p5335_p8 = scmp.lt.u32.totalorder %s5331_s15, %s7252_s23 }
 0xa62   :  { %p5337_p9 = pnand %p5335_p8, %p5332_p7 }
 0xa64   :  { %5340 = shalt.err (!%p5337_p9)
}
 0xa65   :  { %4138 = dma.vmem_to_hbm [thread:$0]  %s7181_s19, 32, %s7252_s23, [#allocation9]  }
 0xa66   :  { %5347 = dma.done.wait [#allocation7], 128  }
 0xa67   :  { %5348 = vsyncadd [#allocation7], 4294967168 }
 0xa68   :  { %5349 = dma.done.wait [#allocation9], 64  }
 0xa69   :  { %5350 = vsyncadd [#allocation9], 4294967232 }
 0xa6a   :  { %4148 = vsyncpa [#allocation7], 1 }
 0xa6b   :  { %4149 = vsyncpa [#allocation9], 1 }
 0xa6c   :  { %4150 = vsyncmov [#allocation5] }
 0xa6f   :  { %s4151_s2 = vpop.sfrf %4150 }
 0xa70   :  { %p4454_p10 = scmp.ne.s32.totalorder %s4151_s2, 0 }
 0xa72   :  { %4155 = shalt.err (%p4454_p10)  }
 0xa73   :  { %4157 = vsyncmov [#allocation5 + $0x1] }
 0xa76   :  { %s4158_s25 = vpop.sfrf %4157 }
 0xa77   :  { %p4455_p11 = scmp.ne.s32.totalorder %s4158_s25, 0 }
 0xa79   :  { %4162 = shalt.err (%p4455_p11)  }
 0xa7a   :  { %4164 = vsyncmov [#allocation5 + $0x2] }
 0xa7d   :  { %s4165_s20 = vpop.sfrf %4164 }
 0xa7e   :  { %p4456_p12 = scmp.ne.s32.totalorder %s4165_s20, 0 }
 0xa80   :  { %4169 = shalt.err (%p4456_p12)  }

</bundles_post_ra>
